<compile_context>
chip_gen: v6e
topology: v6e:2x2x1
jax: 0.10.0
libtpu: 0.0.40
codegen_flags: <defaults>
</compile_context>

<pallas_src>
import functools
import math

import jax
import jax.numpy as jnp
from jax import lax
from jax.experimental import pallas as pl
from jax.experimental.pallas import tpu as pltpu

CFG = dict(vocab=64, d_model=128, d_kv=32, num_heads=4, d_ff=256,
           num_layers=2, num_buckets=8, max_distance=16, padding_idx=0)

_NEG = -1e9


# ------------------------- in-kernel helpers -------------------------

def _rmsnorm(x, gamma):
    var = jnp.mean(x * x, axis=-1, keepdims=True)
    return x * lax.rsqrt(var + 1e-6) * gamma


def _softmax_attend(s, v):
    m = jnp.max(s, axis=-1, keepdims=True)
    p = jnp.exp(s - m)
    denom = jnp.sum(p, axis=-1, keepdims=True)
    attn = p * pl.reciprocal(denom, approx=True)
    return jnp.dot(attn.astype(jnp.bfloat16), v, preferred_element_type=jnp.float32)


# ------------------------- fused decoder-layer kernel -------------------------

def _decoder_layer_kernel(h_ref, enc_ref, rel_ref, smask_ref, emask_ref,
                          ln_self_ref, wqkv_ref, wo_ref,
                          ln_cross_ref, cq_ref, ckv_ref, co_ref,
                          ln_ff_ref, wi_ref, wo_ff_ref,
                          final_ln_ref,
                          o_ref, *, H, Dh, F, apply_final_norm):
    """One full T5 decoder layer for one batch element (grid over batch)."""
    T = h_ref.shape[1]
    inner = H * Dh

    h = h_ref[0].astype(jnp.float32)                         # [T, D]
    enc = enc_ref[0].astype(jnp.bfloat16)                    # [Te, D]

    # ---------------- self-attention block ----------------
    n = _rmsnorm(h, ln_self_ref[...])
    qkv = jnp.dot(n.astype(jnp.bfloat16), wqkv_ref[...],
                  preferred_element_type=jnp.float32).astype(jnp.bfloat16)   # [T, 3*inner]

    keymask = smask_ref[0]                                    # [1, T] (1 keep / 0 pad)
    row = lax.broadcasted_iota(jnp.int32, (T, T), 0)
    col = lax.broadcasted_iota(jnp.int32, (T, T), 1)
    keep = (row >= col) & (keymask > 0.5)
    base = jnp.where(keep, 0.0, _NEG).astype(jnp.float32)     # causal + pad, [T, T]

    outs = []
    for hh in range(H):                                       # static unroll over heads
        q = qkv[:, hh * Dh:(hh + 1) * Dh]
        k = qkv[:, inner + hh * Dh:inner + (hh + 1) * Dh]
        v = qkv[:, 2 * inner + hh * Dh:2 * inner + (hh + 1) * Dh]
        # T5: no 1/sqrt(d_k) scaling
        s = lax.dot_general(q, k, (((1,), (1,)), ((), ())),
                            preferred_element_type=jnp.float32)
        s = s + rel_ref[hh] + base
        outs.append(_softmax_attend(s, v))
    a = jnp.concatenate(outs, axis=-1)                        # [T, inner] f32
    h = h + jnp.dot(a.astype(jnp.bfloat16), wo_ref[...],
                    preferred_element_type=jnp.float32)

    # ---------------- cross-attention block ----------------
    n = _rmsnorm(h, ln_cross_ref[...])
    q_all = jnp.dot(n.astype(jnp.bfloat16), cq_ref[...],
                    preferred_element_type=jnp.float32).astype(jnp.bfloat16)  # [T, inner]
    kv = jnp.dot(enc, ckv_ref[...],
                 preferred_element_type=jnp.float32).astype(jnp.bfloat16)     # [Te, 2*inner]

    ekeymask = emask_ref[0]                                   # [1, Te]
    ebase = jnp.where(ekeymask > 0.5, 0.0, _NEG).astype(jnp.float32)

    outs = []
    for hh in range(H):
        q = q_all[:, hh * Dh:(hh + 1) * Dh]
        k = kv[:, hh * Dh:(hh + 1) * Dh]
        v = kv[:, inner + hh * Dh:inner + (hh + 1) * Dh]
        s = lax.dot_general(q, k, (((1,), (1,)), ((), ())),
                            preferred_element_type=jnp.float32) + ebase
        outs.append(_softmax_attend(s, v))
    a = jnp.concatenate(outs, axis=-1)
    h = h + jnp.dot(a.astype(jnp.bfloat16), co_ref[...],
                    preferred_element_type=jnp.float32)

    # ---------------- gated-GELU feed-forward (mT5 DenseGatedActDense) ----------------
    n = _rmsnorm(h, ln_ff_ref[...])
    y = jnp.dot(n.astype(jnp.bfloat16), wi_ref[...],
                preferred_element_type=jnp.float32)           # [T, 2F]
    ag = y[:, :F]
    bg = y[:, F:]
    g = 0.5 * ag * (1.0 + jnp.tanh(0.7978845608028654 * (ag + 0.044715 * ag * ag * ag)))
    h = h + jnp.dot((g * bg).astype(jnp.bfloat16), wo_ff_ref[...],
                    preferred_element_type=jnp.float32)

    if apply_final_norm:
        h = _rmsnorm(h, final_ln_ref[...])

    o_ref[0] = h.astype(o_ref.dtype)


def pallas_decoder_layer(h, enc, rel, smask, emask, layer, final_ln,
                         *, H, Dh, F, apply_final_norm):
    B, T, D = h.shape
    Te = enc.shape[1]
    inner = H * Dh
    kernel = functools.partial(_decoder_layer_kernel, H=H, Dh=Dh, F=F,
                               apply_final_norm=apply_final_norm)
    return pl.pallas_call(
        kernel,
        out_shape=jax.ShapeDtypeStruct((B, T, D), jnp.float32),
        grid=(B,),
        in_specs=[
            pl.BlockSpec((1, T, D), lambda b: (b, 0, 0)),        # hidden
            pl.BlockSpec((1, Te, D), lambda b: (b, 0, 0)),       # encoder output
            pl.BlockSpec((H, T, T), lambda b: (0, 0, 0)),        # rel-pos bias
            pl.BlockSpec((1, 1, T), lambda b: (b, 0, 0)),        # decoder key mask
            pl.BlockSpec((1, 1, Te), lambda b: (b, 0, 0)),       # encoder key mask
            pl.BlockSpec((1, D), lambda b: (0, 0)),              # ln_self
            pl.BlockSpec((D, 3 * inner), lambda b: (0, 0)),      # wqkv
            pl.BlockSpec((inner, D), lambda b: (0, 0)),          # wo
            pl.BlockSpec((1, D), lambda b: (0, 0)),              # ln_cross
            pl.BlockSpec((D, inner), lambda b: (0, 0)),          # cq
            pl.BlockSpec((D, 2 * inner), lambda b: (0, 0)),      # ckv
            pl.BlockSpec((inner, D), lambda b: (0, 0)),          # co
            pl.BlockSpec((1, D), lambda b: (0, 0)),              # ln_ff
            pl.BlockSpec((D, 2 * F), lambda b: (0, 0)),          # wi (wi0|wi1)
            pl.BlockSpec((F, D), lambda b: (0, 0)),              # wo_ff
            pl.BlockSpec((1, D), lambda b: (0, 0)),              # final_ln (used iff last)
        ],
        out_specs=pl.BlockSpec((1, T, D), lambda b: (b, 0, 0)),
        compiler_params=pltpu.CompilerParams(dimension_semantics=("parallel",)),
    )(h, enc, rel, smask, emask,
      layer['ln_self'].reshape(1, D), layer['wqkv'], layer['wo'],
      layer['ln_cross'].reshape(1, D), layer['cq'], layer['ckv'], layer['co'],
      layer['ln_ff'].reshape(1, D), layer['wi'], layer['wo_ff'],
      final_ln.reshape(1, D))


# --------------------- glue (plain JAX, no hot loops) ---------------------

def relative_position_bias(rel_weight, Tq, Tk, num_buckets, max_distance):
    """HF T5 _relative_position_bucket, decoder (unidirectional) variant -> [H,Tq,Tk]."""
    ctx = jnp.arange(Tq)[:, None]
    mem = jnp.arange(Tk)[None, :]
    rp = mem - ctx
    rp_neg = -jnp.minimum(rp, 0)
    max_exact = num_buckets // 2
    is_small = rp_neg < max_exact
    rp_float = jnp.maximum(rp_neg, 1).astype(jnp.float32)
    rel_if_large = max_exact + (
        jnp.log(rp_float / max_exact) / math.log(max_distance / max_exact)
        * (num_buckets - max_exact)
    ).astype(jnp.int32)
    rel_if_large = jnp.minimum(rel_if_large, num_buckets - 1)
    buckets = jnp.where(is_small, rp_neg, rel_if_large)          # [Tq, Tk]
    values = rel_weight[buckets]                                  # [Tq, Tk, H]
    return values.transpose(2, 0, 1).astype(jnp.float32)         # [H, Tq, Tk]


def parlai_mgen_decoder_forward(params, input_ids, encoder_output, encoder_mask,
                                incr_state=None):
    c = CFG
    B, T = input_ids.shape
    Te = encoder_output.shape[1]
    H, Dh, D, F = c['num_heads'], c['d_kv'], c['d_model'], c['d_ff']

    # ParlAI mask construction: mask = input != padding_idx ; mask[:, 0] = True
    mask = (input_ids != c['padding_idx'])
    mask = mask.at[:, 0].set(True)
    self_key_mask = mask.astype(jnp.float32).reshape(B, 1, T)
    enc_key_mask = (encoder_mask != 0).astype(jnp.float32).reshape(B, 1, Te)

    # token embeddings (T5 does not scale embeddings)
    h = jnp.take(params['embed'], input_ids, axis=0).astype(jnp.float32)  # [B, T, D]

    # relative-position bias shared by all layers (HF ties it to layer 0's table)
    rel = relative_position_bias(params['rel_bias'], T, T,
                                 c['num_buckets'], c['max_distance'])      # [H,T,T]

    enc = encoder_output.astype(jnp.float32)                               # [B, Te, D]

    n_layers = len(params['layers'])
    for li, layer in enumerate(params['layers']):
        h = pallas_decoder_layer(h, enc, rel, self_key_mask, enc_key_mask,
                                 layer, params['final_ln'],
                                 H=H, Dh=Dh, F=F,
                                 apply_final_norm=(li == n_layers - 1))

    # TODO(synk): incremental decoding cache (incr_state) and stack.parallelize()
    # (HF model parallel / set_device) have no single-kernel equivalent; incr_state
    # passes through unchanged.
    return h, incr_state


# ------------------------- deterministic params -------------------------

def init_params(key):
    c = CFG
    D, H, Dh, F = c['d_model'], c['num_heads'], c['d_kv'], c['d_ff']
    inner = H * Dh
    keys = jax.random.split(key, 2 + c['num_layers'])

    def dense(k, i, o, scale=0.05):
        return (scale * jax.random.normal(k, (i, o))).astype(jnp.float32)

    params = {
        'embed': dense(keys[0], c['vocab'], D, 1.0),
        'rel_bias': dense(keys[1], c['num_buckets'], H, 0.1),
        'final_ln': jnp.ones((D,), jnp.float32),
        'layers': [],
    }
    for l in range(c['num_layers']):
        lk = jax.random.split(keys[2 + l], 11)
        wq, wk, wv = dense(lk[0], D, inner), dense(lk[1], D, inner), dense(lk[2], D, inner)
        ck, cv = dense(lk[5], D, inner), dense(lk[6], D, inner)
        wi0, wi1 = dense(lk[8], D, F), dense(lk[9], D, F)
        params['layers'].append(dict(
            ln_self=jnp.ones((D,), jnp.float32),
            wqkv=jnp.concatenate([wq, wk, wv], axis=1).astype(jnp.bfloat16),
            wo=dense(lk[3], inner, D).astype(jnp.bfloat16),
            ln_cross=jnp.ones((D,), jnp.float32),
            cq=dense(lk[4], D, inner).astype(jnp.bfloat16),
            ckv=jnp.concatenate([ck, cv], axis=1).astype(jnp.bfloat16),
            co=dense(lk[7], inner, D).astype(jnp.bfloat16),
            ln_ff=jnp.ones((D,), jnp.float32),
            wi=jnp.concatenate([wi0, wi1], axis=1).astype(jnp.bfloat16),
            wo_ff=dense(lk[10], F, D).astype(jnp.bfloat16),
        ))
    return params


if __name__ == "__main__":
    key = jax.random.PRNGKey(0)
    k1, k2, k3 = jax.random.split(key, 3)
    B, T, Te = 2, 16, 16
    params = init_params(k1)

    input_ids = jax.random.randint(k2, (B, T), 1, CFG['vocab'])
    input_ids = input_ids.at[0, -3:].set(CFG['padding_idx'])   # some padding tokens
    encoder_output = jax.random.normal(k3, (B, Te, CFG['d_model']), jnp.float32)
    encoder_mask = jnp.ones((B, Te), jnp.int32).at[1, -4:].set(0)

    fwd = jax.jit(parlai_mgen_decoder_forward)
    out, incr = fwd(params, input_ids, encoder_output, encoder_mask)
    out = jax.block_until_ready(out)

    assert out.shape == (B, T, CFG['d_model'])
    assert bool(jnp.all(jnp.isfinite(out)))
    assert incr is None
    print("KERNEL_OK")
</pallas_src>

<mosaic_0001>
module attributes {stable_mosaic.version = 11 : i64} {
  func.func @_decoder_layer_kernel(%arg0: i32, %arg1: memref<1x16x128xf32, #tpu.memory_space<vmem>>, %arg2: memref<1x16x128xf32, #tpu.memory_space<vmem>>, %arg3: memref<4x16x16xf32, #tpu.memory_space<vmem>>, %arg4: memref<1x1x16xf32, #tpu.memory_space<vmem>>, %arg5: memref<1x1x16xf32, #tpu.memory_space<vmem>>, %arg6: memref<1x128xf32, #tpu.memory_space<vmem>>, %arg7: memref<128x384xbf16, #tpu.memory_space<vmem>>, %arg8: memref<128x128xbf16, #tpu.memory_space<vmem>>, %arg9: memref<1x128xf32, #tpu.memory_space<vmem>>, %arg10: memref<128x128xbf16, #tpu.memory_space<vmem>>, %arg11: memref<128x256xbf16, #tpu.memory_space<vmem>>, %arg12: memref<128x128xbf16, #tpu.memory_space<vmem>>, %arg13: memref<1x128xf32, #tpu.memory_space<vmem>>, %arg14: memref<128x512xbf16, #tpu.memory_space<vmem>>, %arg15: memref<256x128xbf16, #tpu.memory_space<vmem>>, %arg16: memref<1x128xf32, #tpu.memory_space<vmem>>, %arg17: memref<1x16x128xf32, #tpu.memory_space<vmem>>) attributes {dimension_semantics = [#tpu.dimension_semantics<parallel>], iteration_bounds = array<i64: 2>, scalar_prefetch = 0 : i64, scratch_operands = 0 : i64, tpu.core_type = #tpu.core_type<tc>, window_params = [{transform_indices = @transform_0, window_bounds = array<i64: 1, 16, 128>}, {transform_indices = @transform_1, window_bounds = array<i64: 1, 16, 128>}, {pipeline_mode = #tpu.pipeline_mode<synchronous>, transform_indices = @transform_2, window_bounds = array<i64: 4, 16, 16>}, {transform_indices = @transform_3, window_bounds = array<i64: 1, 1, 16>}, {transform_indices = @transform_4, window_bounds = array<i64: 1, 1, 16>}, {pipeline_mode = #tpu.pipeline_mode<synchronous>, transform_indices = @transform_5, window_bounds = array<i64: 1, 128>}, {pipeline_mode = #tpu.pipeline_mode<synchronous>, transform_indices = @transform_6, window_bounds = array<i64: 128, 384>}, {pipeline_mode = #tpu.pipeline_mode<synchronous>, transform_indices = @transform_7, window_bounds = array<i64: 128, 128>}, {pipeline_mode = #tpu.pipeline_mode<synchronous>, transform_indices = @transform_8, window_bounds = array<i64: 1, 128>}, {pipeline_mode = #tpu.pipeline_mode<synchronous>, transform_indices = @transform_9, window_bounds = array<i64: 128, 128>}, {pipeline_mode = #tpu.pipeline_mode<synchronous>, transform_indices = @transform_10, window_bounds = array<i64: 128, 256>}, {pipeline_mode = #tpu.pipeline_mode<synchronous>, transform_indices = @transform_11, window_bounds = array<i64: 128, 128>}, {pipeline_mode = #tpu.pipeline_mode<synchronous>, transform_indices = @transform_12, window_bounds = array<i64: 1, 128>}, {pipeline_mode = #tpu.pipeline_mode<synchronous>, transform_indices = @transform_13, window_bounds = array<i64: 128, 512>}, {pipeline_mode = #tpu.pipeline_mode<synchronous>, transform_indices = @transform_14, window_bounds = array<i64: 256, 128>}, {pipeline_mode = #tpu.pipeline_mode<synchronous>, transform_indices = @transform_15, window_bounds = array<i64: 1, 128>}, {transform_indices = @transform_16, window_bounds = array<i64: 1, 16, 128>}]} {
    %c0 = arith.constant 0 : index
    %c0_0 = arith.constant 0 : index
    %c0_1 = arith.constant 0 : index
    %0 = vector.load %arg1[%c0, %c0_0, %c0_1] : memref<1x16x128xf32, #tpu.memory_space<vmem>>, vector<1x16x128xf32>
    %1 = vector.shape_cast %0 : vector<1x16x128xf32> to vector<16x128xf32>
    %c0_2 = arith.constant 0 : index
    %c0_3 = arith.constant 0 : index
    %c0_4 = arith.constant 0 : index
    %2 = vector.load %arg2[%c0_2, %c0_3, %c0_4] : memref<1x16x128xf32, #tpu.memory_space<vmem>>, vector<1x16x128xf32>
    %3 = vector.shape_cast %2 : vector<1x16x128xf32> to vector<16x128xf32>
    %4 = arith.truncf %3 : vector<16x128xf32> to vector<16x128xbf16>
    %c0_5 = arith.constant 0 : index
    %c0_6 = arith.constant 0 : index
    %5 = vector.load %arg6[%c0_5, %c0_6] : memref<1x128xf32, #tpu.memory_space<vmem>>, vector<1x128xf32>
    %6 = arith.mulf %1, %1 : vector<16x128xf32>
    %cst = arith.constant dense<0.000000e+00> : vector<16xf32>
    %7 = vector.multi_reduction <add>, %6, %cst [1] : vector<16x128xf32> to vector<16xf32>
    %8 = vector.shape_cast %7 : vector<16xf32> to vector<16x1xf32>
    %cst_7 = arith.constant 1.280000e+02 : f32
    %9 = vector.broadcast %cst_7 : f32 to vector<16x1xf32>
    %10 = arith.divf %8, %9 : vector<16x1xf32>
    %cst_8 = arith.constant 9.99999997E-7 : f32
    %11 = vector.broadcast %cst_8 : f32 to vector<16x1xf32>
    %12 = arith.addf %10, %11 : vector<16x1xf32>
    %13 = math.rsqrt %12 : vector<16x1xf32>
    %14 = vector.broadcast %13 : vector<16x1xf32> to vector<16x128xf32>
    %15 = arith.mulf %1, %14 : vector<16x128xf32>
    %16 = vector.broadcast %5 : vector<1x128xf32> to vector<16x128xf32>
    %17 = arith.mulf %15, %16 : vector<16x128xf32>
    %18 = arith.truncf %17 : vector<16x128xf32> to vector<16x128xbf16>
    %c0_9 = arith.constant 0 : index
    %c0_10 = arith.constant 0 : index
    %19 = vector.load %arg7[%c0_9, %c0_10] : memref<128x384xbf16, #tpu.memory_space<vmem>>, vector<128x384xbf16>
    %cst_11 = arith.constant dense<0.000000e+00> : vector<16x384xf32>
    %20 = tpu.matmul %18, %19, %cst_11 {dimension_numbers = #tpu.dot_dimension_numbers<[1], [0], [0], [1], [0, 0, 1, 1], [], []>} : vector<16x128xbf16>, vector<128x384xbf16>, vector<16x384xf32> -> vector<16x384xf32>
    %21 = arith.truncf %20 : vector<16x384xf32> to vector<16x384xbf16>
    %c0_12 = arith.constant 0 : index
    %c0_13 = arith.constant 0 : index
    %c0_14 = arith.constant 0 : index
    %22 = vector.load %arg4[%c0_12, %c0_13, %c0_14] : memref<1x1x16xf32, #tpu.memory_space<vmem>>, vector<1x1x16xf32>
    %23 = vector.shape_cast %22 : vector<1x1x16xf32> to vector<1x16xf32>
    %24 = tpu.iota {dimensions = array<i32: 0>} : vector<16x16xi32>
    %25 = tpu.iota {dimensions = array<i32: 1>} : vector<16x16xi32>
    %26 = arith.cmpi sge, %24, %25 : vector<16x16xi32>
    %cst_15 = arith.constant 5.000000e-01 : f32
    %27 = vector.broadcast %cst_15 : f32 to vector<1x16xf32>
    %28 = arith.cmpf ogt, %23, %27 : vector<1x16xf32>
    %29 = vector.broadcast %28 : vector<1x16xi1> to vector<16x16xi1>
    %30 = arith.andi %26, %29 : vector<16x16xi1>
    %cst_16 = arith.constant 0.000000e+00 : f32
    %cst_17 = arith.constant -1.000000e+09 : f32
    %31 = vector.broadcast %cst_16 : f32 to vector<16x16xf32>
    %32 = vector.broadcast %cst_17 : f32 to vector<16x16xf32>
    %33 = arith.select %30, %31, %32 : vector<16x16xi1>, vector<16x16xf32>
    %34 = vector.extract_strided_slice %21 {offsets = [0, 0], sizes = [16, 32], strides = [1, 1]} : vector<16x384xbf16> to vector<16x32xbf16>
    %35 = vector.extract_strided_slice %21 {offsets = [0, 128], sizes = [16, 32], strides = [1, 1]} : vector<16x384xbf16> to vector<16x32xbf16>
    %36 = vector.extract_strided_slice %21 {offsets = [0, 256], sizes = [16, 32], strides = [1, 1]} : vector<16x384xbf16> to vector<16x32xbf16>
    %cst_18 = arith.constant dense<0.000000e+00> : vector<16x16xf32>
    %37 = tpu.matmul %34, %35, %cst_18 {dimension_numbers = #tpu.dot_dimension_numbers<[1], [1], [0], [0], [0, 0, 1, 0], [], []>} : vector<16x32xbf16>, vector<16x32xbf16>, vector<16x16xf32> -> vector<16x16xf32>
    %c0_19 = arith.constant 0 : index
    %c0_20 = arith.constant 0 : index
    %c0_21 = arith.constant 0 : index
    %38 = vector.load %arg3[%c0_19, %c0_20, %c0_21] : memref<4x16x16xf32, #tpu.memory_space<vmem>>, vector<1x16x16xf32>
    %39 = vector.shape_cast %38 : vector<1x16x16xf32> to vector<16x16xf32>
    %40 = arith.addf %37, %39 : vector<16x16xf32>
    %41 = arith.addf %40, %33 : vector<16x16xf32>
    %cst_22 = arith.constant dense<0xFF800000> : vector<16xf32>
    %42 = vector.multi_reduction <maximumf>, %41, %cst_22 [1] : vector<16x16xf32> to vector<16xf32>
    %43 = vector.shape_cast %42 : vector<16xf32> to vector<16x1xf32>
    %44 = vector.broadcast %43 : vector<16x1xf32> to vector<16x16xf32>
    %45 = arith.subf %41, %44 : vector<16x16xf32>
    %46 = math.exp %45 : vector<16x16xf32>
    %cst_23 = arith.constant dense<0.000000e+00> : vector<16xf32>
    %47 = vector.multi_reduction <add>, %46, %cst_23 [1] : vector<16x16xf32> to vector<16xf32>
    %48 = vector.shape_cast %47 : vector<16xf32> to vector<16x1xf32>
    %49 = tpu.reciprocal %48 {approx = true} : vector<16x1xf32> -> vector<16x1xf32>
    %50 = vector.broadcast %49 : vector<16x1xf32> to vector<16x16xf32>
    %51 = arith.mulf %46, %50 : vector<16x16xf32>
    %52 = arith.truncf %51 : vector<16x16xf32> to vector<16x16xbf16>
    %cst_24 = arith.constant dense<0.000000e+00> : vector<16x32xf32>
    %53 = tpu.matmul %52, %36, %cst_24 {dimension_numbers = #tpu.dot_dimension_numbers<[1], [0], [0], [1], [0, 0, 1, 1], [], []>} : vector<16x16xbf16>, vector<16x32xbf16>, vector<16x32xf32> -> vector<16x32xf32>
    %54 = vector.extract_strided_slice %21 {offsets = [0, 32], sizes = [16, 32], strides = [1, 1]} : vector<16x384xbf16> to vector<16x32xbf16>
    %55 = vector.extract_strided_slice %21 {offsets = [0, 160], sizes = [16, 32], strides = [1, 1]} : vector<16x384xbf16> to vector<16x32xbf16>
    %56 = vector.extract_strided_slice %21 {offsets = [0, 288], sizes = [16, 32], strides = [1, 1]} : vector<16x384xbf16> to vector<16x32xbf16>
    %cst_25 = arith.constant dense<0.000000e+00> : vector<16x16xf32>
    %57 = tpu.matmul %54, %55, %cst_25 {dimension_numbers = #tpu.dot_dimension_numbers<[1], [1], [0], [0], [0, 0, 1, 0], [], []>} : vector<16x32xbf16>, vector<16x32xbf16>, vector<16x16xf32> -> vector<16x16xf32>
    %c1 = arith.constant 1 : index
    %c0_26 = arith.constant 0 : index
    %c0_27 = arith.constant 0 : index
    %58 = vector.load %arg3[%c1, %c0_26, %c0_27] : memref<4x16x16xf32, #tpu.memory_space<vmem>>, vector<1x16x16xf32>
    %59 = vector.shape_cast %58 : vector<1x16x16xf32> to vector<16x16xf32>
    %60 = arith.addf %57, %59 : vector<16x16xf32>
    %61 = arith.addf %60, %33 : vector<16x16xf32>
    %cst_28 = arith.constant dense<0xFF800000> : vector<16xf32>
    %62 = vector.multi_reduction <maximumf>, %61, %cst_28 [1] : vector<16x16xf32> to vector<16xf32>
    %63 = vector.shape_cast %62 : vector<16xf32> to vector<16x1xf32>
    %64 = vector.broadcast %63 : vector<16x1xf32> to vector<16x16xf32>
    %65 = arith.subf %61, %64 : vector<16x16xf32>
    %66 = math.exp %65 : vector<16x16xf32>
    %cst_29 = arith.constant dense<0.000000e+00> : vector<16xf32>
    %67 = vector.multi_reduction <add>, %66, %cst_29 [1] : vector<16x16xf32> to vector<16xf32>
    %68 = vector.shape_cast %67 : vector<16xf32> to vector<16x1xf32>
    %69 = tpu.reciprocal %68 {approx = true} : vector<16x1xf32> -> vector<16x1xf32>
    %70 = vector.broadcast %69 : vector<16x1xf32> to vector<16x16xf32>
    %71 = arith.mulf %66, %70 : vector<16x16xf32>
    %72 = arith.truncf %71 : vector<16x16xf32> to vector<16x16xbf16>
    %cst_30 = arith.constant dense<0.000000e+00> : vector<16x32xf32>
    %73 = tpu.matmul %72, %56, %cst_30 {dimension_numbers = #tpu.dot_dimension_numbers<[1], [0], [0], [1], [0, 0, 1, 1], [], []>} : vector<16x16xbf16>, vector<16x32xbf16>, vector<16x32xf32> -> vector<16x32xf32>
    %74 = vector.extract_strided_slice %21 {offsets = [0, 64], sizes = [16, 32], strides = [1, 1]} : vector<16x384xbf16> to vector<16x32xbf16>
    %75 = vector.extract_strided_slice %21 {offsets = [0, 192], sizes = [16, 32], strides = [1, 1]} : vector<16x384xbf16> to vector<16x32xbf16>
    %76 = vector.extract_strided_slice %21 {offsets = [0, 320], sizes = [16, 32], strides = [1, 1]} : vector<16x384xbf16> to vector<16x32xbf16>
    %cst_31 = arith.constant dense<0.000000e+00> : vector<16x16xf32>
    %77 = tpu.matmul %74, %75, %cst_31 {dimension_numbers = #tpu.dot_dimension_numbers<[1], [1], [0], [0], [0, 0, 1, 0], [], []>} : vector<16x32xbf16>, vector<16x32xbf16>, vector<16x16xf32> -> vector<16x16xf32>
    %c2 = arith.constant 2 : index
    %c0_32 = arith.constant 0 : index
    %c0_33 = arith.constant 0 : index
    %78 = vector.load %arg3[%c2, %c0_32, %c0_33] : memref<4x16x16xf32, #tpu.memory_space<vmem>>, vector<1x16x16xf32>
    %79 = vector.shape_cast %78 : vector<1x16x16xf32> to vector<16x16xf32>
    %80 = arith.addf %77, %79 : vector<16x16xf32>
    %81 = arith.addf %80, %33 : vector<16x16xf32>
    %cst_34 = arith.constant dense<0xFF800000> : vector<16xf32>
    %82 = vector.multi_reduction <maximumf>, %81, %cst_34 [1] : vector<16x16xf32> to vector<16xf32>
    %83 = vector.shape_cast %82 : vector<16xf32> to vector<16x1xf32>
    %84 = vector.broadcast %83 : vector<16x1xf32> to vector<16x16xf32>
    %85 = arith.subf %81, %84 : vector<16x16xf32>
    %86 = math.exp %85 : vector<16x16xf32>
    %cst_35 = arith.constant dense<0.000000e+00> : vector<16xf32>
    %87 = vector.multi_reduction <add>, %86, %cst_35 [1] : vector<16x16xf32> to vector<16xf32>
    %88 = vector.shape_cast %87 : vector<16xf32> to vector<16x1xf32>
    %89 = tpu.reciprocal %88 {approx = true} : vector<16x1xf32> -> vector<16x1xf32>
    %90 = vector.broadcast %89 : vector<16x1xf32> to vector<16x16xf32>
    %91 = arith.mulf %86, %90 : vector<16x16xf32>
    %92 = arith.truncf %91 : vector<16x16xf32> to vector<16x16xbf16>
    %cst_36 = arith.constant dense<0.000000e+00> : vector<16x32xf32>
    %93 = tpu.matmul %92, %76, %cst_36 {dimension_numbers = #tpu.dot_dimension_numbers<[1], [0], [0], [1], [0, 0, 1, 1], [], []>} : vector<16x16xbf16>, vector<16x32xbf16>, vector<16x32xf32> -> vector<16x32xf32>
    %94 = vector.extract_strided_slice %21 {offsets = [0, 96], sizes = [16, 32], strides = [1, 1]} : vector<16x384xbf16> to vector<16x32xbf16>
    %95 = vector.extract_strided_slice %21 {offsets = [0, 224], sizes = [16, 32], strides = [1, 1]} : vector<16x384xbf16> to vector<16x32xbf16>
    %96 = vector.extract_strided_slice %21 {offsets = [0, 352], sizes = [16, 32], strides = [1, 1]} : vector<16x384xbf16> to vector<16x32xbf16>
    %cst_37 = arith.constant dense<0.000000e+00> : vector<16x16xf32>
    %97 = tpu.matmul %94, %95, %cst_37 {dimension_numbers = #tpu.dot_dimension_numbers<[1], [1], [0], [0], [0, 0, 1, 0], [], []>} : vector<16x32xbf16>, vector<16x32xbf16>, vector<16x16xf32> -> vector<16x16xf32>
    %c3 = arith.constant 3 : index
    %c0_38 = arith.constant 0 : index
    %c0_39 = arith.constant 0 : index
    %98 = vector.load %arg3[%c3, %c0_38, %c0_39] : memref<4x16x16xf32, #tpu.memory_space<vmem>>, vector<1x16x16xf32>
    %99 = vector.shape_cast %98 : vector<1x16x16xf32> to vector<16x16xf32>
    %100 = arith.addf %97, %99 : vector<16x16xf32>
    %101 = arith.addf %100, %33 : vector<16x16xf32>
    %cst_40 = arith.constant dense<0xFF800000> : vector<16xf32>
    %102 = vector.multi_reduction <maximumf>, %101, %cst_40 [1] : vector<16x16xf32> to vector<16xf32>
    %103 = vector.shape_cast %102 : vector<16xf32> to vector<16x1xf32>
    %104 = vector.broadcast %103 : vector<16x1xf32> to vector<16x16xf32>
    %105 = arith.subf %101, %104 : vector<16x16xf32>
    %106 = math.exp %105 : vector<16x16xf32>
    %cst_41 = arith.constant dense<0.000000e+00> : vector<16xf32>
    %107 = vector.multi_reduction <add>, %106, %cst_41 [1] : vector<16x16xf32> to vector<16xf32>
    %108 = vector.shape_cast %107 : vector<16xf32> to vector<16x1xf32>
    %109 = tpu.reciprocal %108 {approx = true} : vector<16x1xf32> -> vector<16x1xf32>
    %110 = vector.broadcast %109 : vector<16x1xf32> to vector<16x16xf32>
    %111 = arith.mulf %106, %110 : vector<16x16xf32>
    %112 = arith.truncf %111 : vector<16x16xf32> to vector<16x16xbf16>
    %cst_42 = arith.constant dense<0.000000e+00> : vector<16x32xf32>
    %113 = tpu.matmul %112, %96, %cst_42 {dimension_numbers = #tpu.dot_dimension_numbers<[1], [0], [0], [1], [0, 0, 1, 1], [], []>} : vector<16x16xbf16>, vector<16x32xbf16>, vector<16x32xf32> -> vector<16x32xf32>
    %114 = tpu.concatenate %53, %73, %93, %113 in 1 : vector<16x32xf32>, vector<16x32xf32>, vector<16x32xf32>, vector<16x32xf32> -> vector<16x128xf32>
    %115 = arith.truncf %114 : vector<16x128xf32> to vector<16x128xbf16>
    %c0_43 = arith.constant 0 : index
    %c0_44 = arith.constant 0 : index
    %116 = vector.load %arg8[%c0_43, %c0_44] : memref<128x128xbf16, #tpu.memory_space<vmem>>, vector<128x128xbf16>
    %cst_45 = arith.constant dense<0.000000e+00> : vector<16x128xf32>
    %117 = tpu.matmul %115, %116, %cst_45 {dimension_numbers = #tpu.dot_dimension_numbers<[1], [0], [0], [1], [0, 0, 1, 1], [], []>} : vector<16x128xbf16>, vector<128x128xbf16>, vector<16x128xf32> -> vector<16x128xf32>
    %118 = arith.addf %1, %117 : vector<16x128xf32>
    %c0_46 = arith.constant 0 : index
    %c0_47 = arith.constant 0 : index
    %119 = vector.load %arg9[%c0_46, %c0_47] : memref<1x128xf32, #tpu.memory_space<vmem>>, vector<1x128xf32>
    %120 = arith.mulf %118, %118 : vector<16x128xf32>
    %cst_48 = arith.constant dense<0.000000e+00> : vector<16xf32>
    %121 = vector.multi_reduction <add>, %120, %cst_48 [1] : vector<16x128xf32> to vector<16xf32>
    %122 = vector.shape_cast %121 : vector<16xf32> to vector<16x1xf32>
    %cst_49 = arith.constant 1.280000e+02 : f32
    %123 = vector.broadcast %cst_49 : f32 to vector<16x1xf32>
    %124 = arith.divf %122, %123 : vector<16x1xf32>
    %cst_50 = arith.constant 9.99999997E-7 : f32
    %125 = vector.broadcast %cst_50 : f32 to vector<16x1xf32>
    %126 = arith.addf %124, %125 : vector<16x1xf32>
    %127 = math.rsqrt %126 : vector<16x1xf32>
    %128 = vector.broadcast %127 : vector<16x1xf32> to vector<16x128xf32>
    %129 = arith.mulf %118, %128 : vector<16x128xf32>
    %130 = vector.broadcast %119 : vector<1x128xf32> to vector<16x128xf32>
    %131 = arith.mulf %129, %130 : vector<16x128xf32>
    %132 = arith.truncf %131 : vector<16x128xf32> to vector<16x128xbf16>
    %c0_51 = arith.constant 0 : index
    %c0_52 = arith.constant 0 : index
    %133 = vector.load %arg10[%c0_51, %c0_52] : memref<128x128xbf16, #tpu.memory_space<vmem>>, vector<128x128xbf16>
    %cst_53 = arith.constant dense<0.000000e+00> : vector<16x128xf32>
    %134 = tpu.matmul %132, %133, %cst_53 {dimension_numbers = #tpu.dot_dimension_numbers<[1], [0], [0], [1], [0, 0, 1, 1], [], []>} : vector<16x128xbf16>, vector<128x128xbf16>, vector<16x128xf32> -> vector<16x128xf32>
    %135 = arith.truncf %134 : vector<16x128xf32> to vector<16x128xbf16>
    %c0_54 = arith.constant 0 : index
    %c0_55 = arith.constant 0 : index
    %136 = vector.load %arg11[%c0_54, %c0_55] : memref<128x256xbf16, #tpu.memory_space<vmem>>, vector<128x256xbf16>
    %cst_56 = arith.constant dense<0.000000e+00> : vector<16x256xf32>
    %137 = tpu.matmul %4, %136, %cst_56 {dimension_numbers = #tpu.dot_dimension_numbers<[1], [0], [0], [1], [0, 0, 1, 1], [], []>} : vector<16x128xbf16>, vector<128x256xbf16>, vector<16x256xf32> -> vector<16x256xf32>
    %138 = arith.truncf %137 : vector<16x256xf32> to vector<16x256xbf16>
    %c0_57 = arith.constant 0 : index
    %c0_58 = arith.constant 0 : index
    %c0_59 = arith.constant 0 : index
    %139 = vector.load %arg5[%c0_57, %c0_58, %c0_59] : memref<1x1x16xf32, #tpu.memory_space<vmem>>, vector<1x1x16xf32>
    %140 = vector.shape_cast %139 : vector<1x1x16xf32> to vector<1x16xf32>
    %cst_60 = arith.constant 5.000000e-01 : f32
    %141 = vector.broadcast %cst_60 : f32 to vector<1x16xf32>
    %142 = arith.cmpf ogt, %140, %141 : vector<1x16xf32>
    %cst_61 = arith.constant 0.000000e+00 : f32
    %cst_62 = arith.constant -1.000000e+09 : f32
    %143 = vector.broadcast %cst_61 : f32 to vector<1x16xf32>
    %144 = vector.broadcast %cst_62 : f32 to vector<1x16xf32>
    %145 = arith.select %142, %143, %144 : vector<1x16xi1>, vector<1x16xf32>
    %146 = vector.extract_strided_slice %135 {offsets = [0, 0], sizes = [16, 32], strides = [1, 1]} : vector<16x128xbf16> to vector<16x32xbf16>
    %147 = vector.extract_strided_slice %138 {offsets = [0, 0], sizes = [16, 32], strides = [1, 1]} : vector<16x256xbf16> to vector<16x32xbf16>
    %148 = vector.extract_strided_slice %138 {offsets = [0, 128], sizes = [16, 32], strides = [1, 1]} : vector<16x256xbf16> to vector<16x32xbf16>
    %cst_63 = arith.constant dense<0.000000e+00> : vector<16x16xf32>
    %149 = tpu.matmul %146, %147, %cst_63 {dimension_numbers = #tpu.dot_dimension_numbers<[1], [1], [0], [0], [0, 0, 1, 0], [], []>} : vector<16x32xbf16>, vector<16x32xbf16>, vector<16x16xf32> -> vector<16x16xf32>
    %150 = vector.broadcast %145 : vector<1x16xf32> to vector<16x16xf32>
    %151 = arith.addf %149, %150 : vector<16x16xf32>
    %cst_64 = arith.constant dense<0xFF800000> : vector<16xf32>
    %152 = vector.multi_reduction <maximumf>, %151, %cst_64 [1] : vector<16x16xf32> to vector<16xf32>
    %153 = vector.shape_cast %152 : vector<16xf32> to vector<16x1xf32>
    %154 = vector.broadcast %153 : vector<16x1xf32> to vector<16x16xf32>
    %155 = arith.subf %151, %154 : vector<16x16xf32>
    %156 = math.exp %155 : vector<16x16xf32>
    %cst_65 = arith.constant dense<0.000000e+00> : vector<16xf32>
    %157 = vector.multi_reduction <add>, %156, %cst_65 [1] : vector<16x16xf32> to vector<16xf32>
    %158 = vector.shape_cast %157 : vector<16xf32> to vector<16x1xf32>
    %159 = tpu.reciprocal %158 {approx = true} : vector<16x1xf32> -> vector<16x1xf32>
    %160 = vector.broadcast %159 : vector<16x1xf32> to vector<16x16xf32>
    %161 = arith.mulf %156, %160 : vector<16x16xf32>
    %162 = arith.truncf %161 : vector<16x16xf32> to vector<16x16xbf16>
    %cst_66 = arith.constant dense<0.000000e+00> : vector<16x32xf32>
    %163 = tpu.matmul %162, %148, %cst_66 {dimension_numbers = #tpu.dot_dimension_numbers<[1], [0], [0], [1], [0, 0, 1, 1], [], []>} : vector<16x16xbf16>, vector<16x32xbf16>, vector<16x32xf32> -> vector<16x32xf32>
    %164 = vector.extract_strided_slice %135 {offsets = [0, 32], sizes = [16, 32], strides = [1, 1]} : vector<16x128xbf16> to vector<16x32xbf16>
    %165 = vector.extract_strided_slice %138 {offsets = [0, 32], sizes = [16, 32], strides = [1, 1]} : vector<16x256xbf16> to vector<16x32xbf16>
    %166 = vector.extract_strided_slice %138 {offsets = [0, 160], sizes = [16, 32], strides = [1, 1]} : vector<16x256xbf16> to vector<16x32xbf16>
    %cst_67 = arith.constant dense<0.000000e+00> : vector<16x16xf32>
    %167 = tpu.matmul %164, %165, %cst_67 {dimension_numbers = #tpu.dot_dimension_numbers<[1], [1], [0], [0], [0, 0, 1, 0], [], []>} : vector<16x32xbf16>, vector<16x32xbf16>, vector<16x16xf32> -> vector<16x16xf32>
    %168 = vector.broadcast %145 : vector<1x16xf32> to vector<16x16xf32>
    %169 = arith.addf %167, %168 : vector<16x16xf32>
    %cst_68 = arith.constant dense<0xFF800000> : vector<16xf32>
    %170 = vector.multi_reduction <maximumf>, %169, %cst_68 [1] : vector<16x16xf32> to vector<16xf32>
    %171 = vector.shape_cast %170 : vector<16xf32> to vector<16x1xf32>
    %172 = vector.broadcast %171 : vector<16x1xf32> to vector<16x16xf32>
    %173 = arith.subf %169, %172 : vector<16x16xf32>
    %174 = math.exp %173 : vector<16x16xf32>
    %cst_69 = arith.constant dense<0.000000e+00> : vector<16xf32>
    %175 = vector.multi_reduction <add>, %174, %cst_69 [1] : vector<16x16xf32> to vector<16xf32>
    %176 = vector.shape_cast %175 : vector<16xf32> to vector<16x1xf32>
    %177 = tpu.reciprocal %176 {approx = true} : vector<16x1xf32> -> vector<16x1xf32>
    %178 = vector.broadcast %177 : vector<16x1xf32> to vector<16x16xf32>
    %179 = arith.mulf %174, %178 : vector<16x16xf32>
    %180 = arith.truncf %179 : vector<16x16xf32> to vector<16x16xbf16>
    %cst_70 = arith.constant dense<0.000000e+00> : vector<16x32xf32>
    %181 = tpu.matmul %180, %166, %cst_70 {dimension_numbers = #tpu.dot_dimension_numbers<[1], [0], [0], [1], [0, 0, 1, 1], [], []>} : vector<16x16xbf16>, vector<16x32xbf16>, vector<16x32xf32> -> vector<16x32xf32>
    %182 = vector.extract_strided_slice %135 {offsets = [0, 64], sizes = [16, 32], strides = [1, 1]} : vector<16x128xbf16> to vector<16x32xbf16>
    %183 = vector.extract_strided_slice %138 {offsets = [0, 64], sizes = [16, 32], strides = [1, 1]} : vector<16x256xbf16> to vector<16x32xbf16>
    %184 = vector.extract_strided_slice %138 {offsets = [0, 192], sizes = [16, 32], strides = [1, 1]} : vector<16x256xbf16> to vector<16x32xbf16>
    %cst_71 = arith.constant dense<0.000000e+00> : vector<16x16xf32>
    %185 = tpu.matmul %182, %183, %cst_71 {dimension_numbers = #tpu.dot_dimension_numbers<[1], [1], [0], [0], [0, 0, 1, 0], [], []>} : vector<16x32xbf16>, vector<16x32xbf16>, vector<16x16xf32> -> vector<16x16xf32>
    %186 = vector.broadcast %145 : vector<1x16xf32> to vector<16x16xf32>
    %187 = arith.addf %185, %186 : vector<16x16xf32>
    %cst_72 = arith.constant dense<0xFF800000> : vector<16xf32>
    %188 = vector.multi_reduction <maximumf>, %187, %cst_72 [1] : vector<16x16xf32> to vector<16xf32>
    %189 = vector.shape_cast %188 : vector<16xf32> to vector<16x1xf32>
    %190 = vector.broadcast %189 : vector<16x1xf32> to vector<16x16xf32>
    %191 = arith.subf %187, %190 : vector<16x16xf32>
    %192 = math.exp %191 : vector<16x16xf32>
    %cst_73 = arith.constant dense<0.000000e+00> : vector<16xf32>
    %193 = vector.multi_reduction <add>, %192, %cst_73 [1] : vector<16x16xf32> to vector<16xf32>
    %194 = vector.shape_cast %193 : vector<16xf32> to vector<16x1xf32>
    %195 = tpu.reciprocal %194 {approx = true} : vector<16x1xf32> -> vector<16x1xf32>
    %196 = vector.broadcast %195 : vector<16x1xf32> to vector<16x16xf32>
    %197 = arith.mulf %192, %196 : vector<16x16xf32>
    %198 = arith.truncf %197 : vector<16x16xf32> to vector<16x16xbf16>
    %cst_74 = arith.constant dense<0.000000e+00> : vector<16x32xf32>
    %199 = tpu.matmul %198, %184, %cst_74 {dimension_numbers = #tpu.dot_dimension_numbers<[1], [0], [0], [1], [0, 0, 1, 1], [], []>} : vector<16x16xbf16>, vector<16x32xbf16>, vector<16x32xf32> -> vector<16x32xf32>
    %200 = vector.extract_strided_slice %135 {offsets = [0, 96], sizes = [16, 32], strides = [1, 1]} : vector<16x128xbf16> to vector<16x32xbf16>
    %201 = vector.extract_strided_slice %138 {offsets = [0, 96], sizes = [16, 32], strides = [1, 1]} : vector<16x256xbf16> to vector<16x32xbf16>
    %202 = vector.extract_strided_slice %138 {offsets = [0, 224], sizes = [16, 32], strides = [1, 1]} : vector<16x256xbf16> to vector<16x32xbf16>
    %cst_75 = arith.constant dense<0.000000e+00> : vector<16x16xf32>
    %203 = tpu.matmul %200, %201, %cst_75 {dimension_numbers = #tpu.dot_dimension_numbers<[1], [1], [0], [0], [0, 0, 1, 0], [], []>} : vector<16x32xbf16>, vector<16x32xbf16>, vector<16x16xf32> -> vector<16x16xf32>
    %204 = vector.broadcast %145 : vector<1x16xf32> to vector<16x16xf32>
    %205 = arith.addf %203, %204 : vector<16x16xf32>
    %cst_76 = arith.constant dense<0xFF800000> : vector<16xf32>
    %206 = vector.multi_reduction <maximumf>, %205, %cst_76 [1] : vector<16x16xf32> to vector<16xf32>
    %207 = vector.shape_cast %206 : vector<16xf32> to vector<16x1xf32>
    %208 = vector.broadcast %207 : vector<16x1xf32> to vector<16x16xf32>
    %209 = arith.subf %205, %208 : vector<16x16xf32>
    %210 = math.exp %209 : vector<16x16xf32>
    %cst_77 = arith.constant dense<0.000000e+00> : vector<16xf32>
    %211 = vector.multi_reduction <add>, %210, %cst_77 [1] : vector<16x16xf32> to vector<16xf32>
    %212 = vector.shape_cast %211 : vector<16xf32> to vector<16x1xf32>
    %213 = tpu.reciprocal %212 {approx = true} : vector<16x1xf32> -> vector<16x1xf32>
    %214 = vector.broadcast %213 : vector<16x1xf32> to vector<16x16xf32>
    %215 = arith.mulf %210, %214 : vector<16x16xf32>
    %216 = arith.truncf %215 : vector<16x16xf32> to vector<16x16xbf16>
    %cst_78 = arith.constant dense<0.000000e+00> : vector<16x32xf32>
    %217 = tpu.matmul %216, %202, %cst_78 {dimension_numbers = #tpu.dot_dimension_numbers<[1], [0], [0], [1], [0, 0, 1, 1], [], []>} : vector<16x16xbf16>, vector<16x32xbf16>, vector<16x32xf32> -> vector<16x32xf32>
    %218 = tpu.concatenate %163, %181, %199, %217 in 1 : vector<16x32xf32>, vector<16x32xf32>, vector<16x32xf32>, vector<16x32xf32> -> vector<16x128xf32>
    %219 = arith.truncf %218 : vector<16x128xf32> to vector<16x128xbf16>
    %c0_79 = arith.constant 0 : index
    %c0_80 = arith.constant 0 : index
    %220 = vector.load %arg12[%c0_79, %c0_80] : memref<128x128xbf16, #tpu.memory_space<vmem>>, vector<128x128xbf16>
    %cst_81 = arith.constant dense<0.000000e+00> : vector<16x128xf32>
    %221 = tpu.matmul %219, %220, %cst_81 {dimension_numbers = #tpu.dot_dimension_numbers<[1], [0], [0], [1], [0, 0, 1, 1], [], []>} : vector<16x128xbf16>, vector<128x128xbf16>, vector<16x128xf32> -> vector<16x128xf32>
    %222 = arith.addf %118, %221 : vector<16x128xf32>
    %c0_82 = arith.constant 0 : index
    %c0_83 = arith.constant 0 : index
    %223 = vector.load %arg13[%c0_82, %c0_83] : memref<1x128xf32, #tpu.memory_space<vmem>>, vector<1x128xf32>
    %224 = arith.mulf %222, %222 : vector<16x128xf32>
    %cst_84 = arith.constant dense<0.000000e+00> : vector<16xf32>
    %225 = vector.multi_reduction <add>, %224, %cst_84 [1] : vector<16x128xf32> to vector<16xf32>
    %226 = vector.shape_cast %225 : vector<16xf32> to vector<16x1xf32>
    %cst_85 = arith.constant 1.280000e+02 : f32
    %227 = vector.broadcast %cst_85 : f32 to vector<16x1xf32>
    %228 = arith.divf %226, %227 : vector<16x1xf32>
    %cst_86 = arith.constant 9.99999997E-7 : f32
    %229 = vector.broadcast %cst_86 : f32 to vector<16x1xf32>
    %230 = arith.addf %228, %229 : vector<16x1xf32>
    %231 = math.rsqrt %230 : vector<16x1xf32>
    %232 = vector.broadcast %231 : vector<16x1xf32> to vector<16x128xf32>
    %233 = arith.mulf %222, %232 : vector<16x128xf32>
    %234 = vector.broadcast %223 : vector<1x128xf32> to vector<16x128xf32>
    %235 = arith.mulf %233, %234 : vector<16x128xf32>
    %236 = arith.truncf %235 : vector<16x128xf32> to vector<16x128xbf16>
    %c0_87 = arith.constant 0 : index
    %c0_88 = arith.constant 0 : index
    %237 = vector.load %arg14[%c0_87, %c0_88] : memref<128x512xbf16, #tpu.memory_space<vmem>>, vector<128x512xbf16>
    %cst_89 = arith.constant dense<0.000000e+00> : vector<16x512xf32>
    %238 = tpu.matmul %236, %237, %cst_89 {dimension_numbers = #tpu.dot_dimension_numbers<[1], [0], [0], [1], [0, 0, 1, 1], [], []>} : vector<16x128xbf16>, vector<128x512xbf16>, vector<16x512xf32> -> vector<16x512xf32>
    %239 = vector.extract_strided_slice %238 {offsets = [0, 0], sizes = [16, 256], strides = [1, 1]} : vector<16x512xf32> to vector<16x256xf32>
    %240 = vector.extract_strided_slice %238 {offsets = [0, 256], sizes = [16, 256], strides = [1, 1]} : vector<16x512xf32> to vector<16x256xf32>
    %cst_90 = arith.constant 5.000000e-01 : f32
    %241 = vector.broadcast %cst_90 : f32 to vector<16x256xf32>
    %242 = arith.mulf %241, %239 : vector<16x256xf32>
    %cst_91 = arith.constant 4.471500e-02 : f32
    %243 = vector.broadcast %cst_91 : f32 to vector<16x256xf32>
    %244 = arith.mulf %243, %239 : vector<16x256xf32>
    %245 = arith.mulf %244, %239 : vector<16x256xf32>
    %246 = arith.mulf %245, %239 : vector<16x256xf32>
    %247 = arith.addf %239, %246 : vector<16x256xf32>
    %cst_92 = arith.constant 0.797884583 : f32
    %248 = vector.broadcast %cst_92 : f32 to vector<16x256xf32>
    %249 = arith.mulf %248, %247 : vector<16x256xf32>
    %250 = math.tanh %249 : vector<16x256xf32>
    %cst_93 = arith.constant 1.000000e+00 : f32
    %251 = vector.broadcast %cst_93 : f32 to vector<16x256xf32>
    %252 = arith.addf %251, %250 : vector<16x256xf32>
    %253 = arith.mulf %242, %252 : vector<16x256xf32>
    %254 = arith.mulf %253, %240 : vector<16x256xf32>
    %255 = arith.truncf %254 : vector<16x256xf32> to vector<16x256xbf16>
    %c0_94 = arith.constant 0 : index
    %c0_95 = arith.constant 0 : index
    %256 = vector.load %arg15[%c0_94, %c0_95] : memref<256x128xbf16, #tpu.memory_space<vmem>>, vector<256x128xbf16>
    %cst_96 = arith.constant dense<0.000000e+00> : vector<16x128xf32>
    %257 = tpu.matmul %255, %256, %cst_96 {dimension_numbers = #tpu.dot_dimension_numbers<[1], [0], [0], [1], [0, 0, 1, 1], [], []>} : vector<16x256xbf16>, vector<256x128xbf16>, vector<16x128xf32> -> vector<16x128xf32>
    %258 = arith.addf %222, %257 : vector<16x128xf32>
    %c0_97 = arith.constant 0 : index
    %c0_98 = arith.constant 0 : index
    %259 = vector.load %arg16[%c0_97, %c0_98] : memref<1x128xf32, #tpu.memory_space<vmem>>, vector<1x128xf32>
    %260 = arith.mulf %258, %258 : vector<16x128xf32>
    %cst_99 = arith.constant dense<0.000000e+00> : vector<16xf32>
    %261 = vector.multi_reduction <add>, %260, %cst_99 [1] : vector<16x128xf32> to vector<16xf32>
    %262 = vector.shape_cast %261 : vector<16xf32> to vector<16x1xf32>
    %cst_100 = arith.constant 1.280000e+02 : f32
    %263 = vector.broadcast %cst_100 : f32 to vector<16x1xf32>
    %264 = arith.divf %262, %263 : vector<16x1xf32>
    %cst_101 = arith.constant 9.99999997E-7 : f32
    %265 = vector.broadcast %cst_101 : f32 to vector<16x1xf32>
    %266 = arith.addf %264, %265 : vector<16x1xf32>
    %267 = math.rsqrt %266 : vector<16x1xf32>
    %268 = vector.broadcast %267 : vector<16x1xf32> to vector<16x128xf32>
    %269 = arith.mulf %258, %268 : vector<16x128xf32>
    %270 = vector.broadcast %259 : vector<1x128xf32> to vector<16x128xf32>
    %271 = arith.mulf %269, %270 : vector<16x128xf32>
    %c0_102 = arith.constant 0 : index
    %c0_103 = arith.constant 0 : index
    %c0_104 = arith.constant 0 : index
    %272 = vector.load %arg17[%c0_102, %c0_103, %c0_104] : memref<1x16x128xf32, #tpu.memory_space<vmem>>, vector<1x16x128xf32>
    %273 = vector.shape_cast %272 : vector<1x16x128xf32> to vector<16x128xf32>
    %274 = vector.shape_cast %271 : vector<16x128xf32> to vector<1x16x128xf32>
    tpu.vector_store %arg17[%c0_102, %c0_103, %c0_104], %274 {strides = array<i32>} : memref<1x16x128xf32, #tpu.memory_space<vmem>>, vector<1x16x128xf32>,
    return
  }
  func.func @transform_0(%arg0: i32) -> (i32, i32, i32) {
    %c0_i32 = arith.constant 0 : i32
    %c0_i32_0 = arith.constant 0 : i32
    %c0_i32_1 = arith.constant 0 : i32
    return %arg0, %c0_i32, %c0_i32_0 : i32, i32, i32
  }
  func.func @transform_1(%arg0: i32) -> (i32, i32, i32) {
    %c0_i32 = arith.constant 0 : i32
    %c0_i32_0 = arith.constant 0 : i32
    %c0_i32_1 = arith.constant 0 : i32
    return %arg0, %c0_i32, %c0_i32_0 : i32, i32, i32
  }
  func.func @transform_2(%arg0: i32) -> (i32, i32, i32) {
    %c0_i32 = arith.constant 0 : i32
    %c0_i32_0 = arith.constant 0 : i32
    %c0_i32_1 = arith.constant 0 : i32
    %c0_i32_2 = arith.constant 0 : i32
    return %c0_i32, %c0_i32_0, %c0_i32_1 : i32, i32, i32
  }
  func.func @transform_3(%arg0: i32) -> (i32, i32, i32) {
    %c0_i32 = arith.constant 0 : i32
    %c0_i32_0 = arith.constant 0 : i32
    %c0_i32_1 = arith.constant 0 : i32
    return %arg0, %c0_i32, %c0_i32_0 : i32, i32, i32
  }
  func.func @transform_4(%arg0: i32) -> (i32, i32, i32) {
    %c0_i32 = arith.constant 0 : i32
    %c0_i32_0 = arith.constant 0 : i32
    %c0_i32_1 = arith.constant 0 : i32
    return %arg0, %c0_i32, %c0_i32_0 : i32, i32, i32
  }
  func.func @transform_5(%arg0: i32) -> (i32, i32) {
    %c0_i32 = arith.constant 0 : i32
    %c0_i32_0 = arith.constant 0 : i32
    %c0_i32_1 = arith.constant 0 : i32
    return %c0_i32, %c0_i32_0 : i32, i32
  }
  func.func @transform_6(%arg0: i32) -> (i32, i32) {
    %c0_i32 = arith.constant 0 : i32
    %c0_i32_0 = arith.constant 0 : i32
    %c0_i32_1 = arith.constant 0 : i32
    return %c0_i32, %c0_i32_0 : i32, i32
  }
  func.func @transform_7(%arg0: i32) -> (i32, i32) {
    %c0_i32 = arith.constant 0 : i32
    %c0_i32_0 = arith.constant 0 : i32
    %c0_i32_1 = arith.constant 0 : i32
    return %c0_i32, %c0_i32_0 : i32, i32
  }
  func.func @transform_8(%arg0: i32) -> (i32, i32) {
    %c0_i32 = arith.constant 0 : i32
    %c0_i32_0 = arith.constant 0 : i32
    %c0_i32_1 = arith.constant 0 : i32
    return %c0_i32, %c0_i32_0 : i32, i32
  }
  func.func @transform_9(%arg0: i32) -> (i32, i32) {
    %c0_i32 = arith.constant 0 : i32
    %c0_i32_0 = arith.constant 0 : i32
    %c0_i32_1 = arith.constant 0 : i32
    return %c0_i32, %c0_i32_0 : i32, i32
  }
  func.func @transform_10(%arg0: i32) -> (i32, i32) {
    %c0_i32 = arith.constant 0 : i32
    %c0_i32_0 = arith.constant 0 : i32
    %c0_i32_1 = arith.constant 0 : i32
    return %c0_i32, %c0_i32_0 : i32, i32
  }
  func.func @transform_11(%arg0: i32) -> (i32, i32) {
    %c0_i32 = arith.constant 0 : i32
    %c0_i32_0 = arith.constant 0 : i32
    %c0_i32_1 = arith.constant 0 : i32
    return %c0_i32, %c0_i32_0 : i32, i32
  }
  func.func @transform_12(%arg0: i32) -> (i32, i32) {
    %c0_i32 = arith.constant 0 : i32
    %c0_i32_0 = arith.constant 0 : i32
    %c0_i32_1 = arith.constant 0 : i32
    return %c0_i32, %c0_i32_0 : i32, i32
  }
  func.func @transform_13(%arg0: i32) -> (i32, i32) {
    %c0_i32 = arith.constant 0 : i32
    %c0_i32_0 = arith.constant 0 : i32
    %c0_i32_1 = arith.constant 0 : i32
    return %c0_i32, %c0_i32_0 : i32, i32
  }
  func.func @transform_14(%arg0: i32) -> (i32, i32) {
    %c0_i32 = arith.constant 0 : i32
    %c0_i32_0 = arith.constant 0 : i32
    %c0_i32_1 = arith.constant 0 : i32
    return %c0_i32, %c0_i32_0 : i32, i32
  }
  func.func @transform_15(%arg0: i32) -> (i32, i32) {
    %c0_i32 = arith.constant 0 : i32
    %c0_i32_0 = arith.constant 0 : i32
    %c0_i32_1 = arith.constant 0 : i32
    return %c0_i32, %c0_i32_0 : i32, i32
  }
  func.func @transform_16(%arg0: i32) -> (i32, i32, i32) {
    %c0_i32 = arith.constant 0 : i32
    %c0_i32_0 = arith.constant 0 : i32
    %c0_i32_1 = arith.constant 0 : i32
    return %arg0, %c0_i32, %c0_i32_0 : i32, i32, i32
  }
}

module attributes {stable_mosaic.version = 11 : i64} {
  func.func @_decoder_layer_kernel(%arg0: i32, %arg1: memref<1x16x128xf32, #tpu.memory_space<vmem>>, %arg2: memref<1x16x128xf32, #tpu.memory_space<vmem>>, %arg3: memref<4x16x16xf32, #tpu.memory_space<vmem>>, %arg4: memref<1x1x16xf32, #tpu.memory_space<vmem>>, %arg5: memref<1x1x16xf32, #tpu.memory_space<vmem>>, %arg6: memref<1x128xf32, #tpu.memory_space<vmem>>, %arg7: memref<128x384xbf16, #tpu.memory_space<vmem>>, %arg8: memref<128x128xbf16, #tpu.memory_space<vmem>>, %arg9: memref<1x128xf32, #tpu.memory_space<vmem>>, %arg10: memref<128x128xbf16, #tpu.memory_space<vmem>>, %arg11: memref<128x256xbf16, #tpu.memory_space<vmem>>, %arg12: memref<128x128xbf16, #tpu.memory_space<vmem>>, %arg13: memref<1x128xf32, #tpu.memory_space<vmem>>, %arg14: memref<128x512xbf16, #tpu.memory_space<vmem>>, %arg15: memref<256x128xbf16, #tpu.memory_space<vmem>>, %arg16: memref<1x128xf32, #tpu.memory_space<vmem>>, %arg17: memref<1x16x128xf32, #tpu.memory_space<vmem>>) attributes {dimension_semantics = [#tpu.dimension_semantics<parallel>], iteration_bounds = array<i64: 2>, scalar_prefetch = 0 : i64, scratch_operands = 0 : i64, tpu.core_type = #tpu.core_type<tc>, window_params = [{transform_indices = @transform_0, window_bounds = array<i64: 1, 16, 128>}, {transform_indices = @transform_1, window_bounds = array<i64: 1, 16, 128>}, {pipeline_mode = #tpu.pipeline_mode<synchronous>, transform_indices = @transform_2, window_bounds = array<i64: 4, 16, 16>}, {transform_indices = @transform_3, window_bounds = array<i64: 1, 1, 16>}, {transform_indices = @transform_4, window_bounds = array<i64: 1, 1, 16>}, {pipeline_mode = #tpu.pipeline_mode<synchronous>, transform_indices = @transform_5, window_bounds = array<i64: 1, 128>}, {pipeline_mode = #tpu.pipeline_mode<synchronous>, transform_indices = @transform_6, window_bounds = array<i64: 128, 384>}, {pipeline_mode = #tpu.pipeline_mode<synchronous>, transform_indices = @transform_7, window_bounds = array<i64: 128, 128>}, {pipeline_mode = #tpu.pipeline_mode<synchronous>, transform_indices = @transform_8, window_bounds = array<i64: 1, 128>}, {pipeline_mode = #tpu.pipeline_mode<synchronous>, transform_indices = @transform_9, window_bounds = array<i64: 128, 128>}, {pipeline_mode = #tpu.pipeline_mode<synchronous>, transform_indices = @transform_10, window_bounds = array<i64: 128, 256>}, {pipeline_mode = #tpu.pipeline_mode<synchronous>, transform_indices = @transform_11, window_bounds = array<i64: 128, 128>}, {pipeline_mode = #tpu.pipeline_mode<synchronous>, transform_indices = @transform_12, window_bounds = array<i64: 1, 128>}, {pipeline_mode = #tpu.pipeline_mode<synchronous>, transform_indices = @transform_13, window_bounds = array<i64: 128, 512>}, {pipeline_mode = #tpu.pipeline_mode<synchronous>, transform_indices = @transform_14, window_bounds = array<i64: 256, 128>}, {pipeline_mode = #tpu.pipeline_mode<synchronous>, transform_indices = @transform_15, window_bounds = array<i64: 1, 128>}, {transform_indices = @transform_16, window_bounds = array<i64: 1, 16, 128>}]} {
    %c0 = arith.constant 0 : index
    %c0_0 = arith.constant 0 : index
    %c0_1 = arith.constant 0 : index
    %0 = vector.load %arg1[%c0, %c0_0, %c0_1] : memref<1x16x128xf32, #tpu.memory_space<vmem>>, vector<1x16x128xf32>
    %1 = vector.shape_cast %0 : vector<1x16x128xf32> to vector<16x128xf32>
    %c0_2 = arith.constant 0 : index
    %c0_3 = arith.constant 0 : index
    %c0_4 = arith.constant 0 : index
    %2 = vector.load %arg2[%c0_2, %c0_3, %c0_4] : memref<1x16x128xf32, #tpu.memory_space<vmem>>, vector<1x16x128xf32>
    %3 = vector.shape_cast %2 : vector<1x16x128xf32> to vector<16x128xf32>
    %4 = arith.truncf %3 : vector<16x128xf32> to vector<16x128xbf16>
    %c0_5 = arith.constant 0 : index
    %c0_6 = arith.constant 0 : index
    %5 = vector.load %arg6[%c0_5, %c0_6] : memref<1x128xf32, #tpu.memory_space<vmem>>, vector<1x128xf32>
    %6 = arith.mulf %1, %1 : vector<16x128xf32>
    %cst = arith.constant dense<0.000000e+00> : vector<16xf32>
    %7 = vector.multi_reduction <add>, %6, %cst [1] : vector<16x128xf32> to vector<16xf32>
    %8 = vector.shape_cast %7 : vector<16xf32> to vector<16x1xf32>
    %cst_7 = arith.constant 1.280000e+02 : f32
    %9 = vector.broadcast %cst_7 : f32 to vector<16x1xf32>
    %10 = arith.divf %8, %9 : vector<16x1xf32>
    %cst_8 = arith.constant 9.99999997E-7 : f32
    %11 = vector.broadcast %cst_8 : f32 to vector<16x1xf32>
    %12 = arith.addf %10, %11 : vector<16x1xf32>
    %13 = math.rsqrt %12 : vector<16x1xf32>
    %14 = vector.broadcast %13 : vector<16x1xf32> to vector<16x128xf32>
    %15 = arith.mulf %1, %14 : vector<16x128xf32>
    %16 = vector.broadcast %5 : vector<1x128xf32> to vector<16x128xf32>
    %17 = arith.mulf %15, %16 : vector<16x128xf32>
    %18 = arith.truncf %17 : vector<16x128xf32> to vector<16x128xbf16>
    %c0_9 = arith.constant 0 : index
    %c0_10 = arith.constant 0 : index
    %19 = vector.load %arg7[%c0_9, %c0_10] : memref<128x384xbf16, #tpu.memory_space<vmem>>, vector<128x384xbf16>
    %cst_11 = arith.constant dense<0.000000e+00> : vector<16x384xf32>
    %20 = tpu.matmul %18, %19, %cst_11 {dimension_numbers = #tpu.dot_dimension_numbers<[1], [0], [0], [1], [0, 0, 1, 1], [], []>} : vector<16x128xbf16>, vector<128x384xbf16>, vector<16x384xf32> -> vector<16x384xf32>
    %21 = arith.truncf %20 : vector<16x384xf32> to vector<16x384xbf16>
    %c0_12 = arith.constant 0 : index
    %c0_13 = arith.constant 0 : index
    %c0_14 = arith.constant 0 : index
    %22 = vector.load %arg4[%c0_12, %c0_13, %c0_14] : memref<1x1x16xf32, #tpu.memory_space<vmem>>, vector<1x1x16xf32>
    %23 = vector.shape_cast %22 : vector<1x1x16xf32> to vector<1x16xf32>
    %24 = tpu.iota {dimensions = array<i32: 0>} : vector<16x16xi32>
    %25 = tpu.iota {dimensions = array<i32: 1>} : vector<16x16xi32>
    %26 = arith.cmpi sge, %24, %25 : vector<16x16xi32>
    %cst_15 = arith.constant 5.000000e-01 : f32
    %27 = vector.broadcast %cst_15 : f32 to vector<1x16xf32>
    %28 = arith.cmpf ogt, %23, %27 : vector<1x16xf32>
    %29 = vector.broadcast %28 : vector<1x16xi1> to vector<16x16xi1>
    %30 = arith.andi %26, %29 : vector<16x16xi1>
    %cst_16 = arith.constant 0.000000e+00 : f32
    %cst_17 = arith.constant -1.000000e+09 : f32
    %31 = vector.broadcast %cst_16 : f32 to vector<16x16xf32>
    %32 = vector.broadcast %cst_17 : f32 to vector<16x16xf32>
    %33 = arith.select %30, %31, %32 : vector<16x16xi1>, vector<16x16xf32>
    %34 = vector.extract_strided_slice %21 {offsets = [0, 0], sizes = [16, 32], strides = [1, 1]} : vector<16x384xbf16> to vector<16x32xbf16>
    %35 = vector.extract_strided_slice %21 {offsets = [0, 128], sizes = [16, 32], strides = [1, 1]} : vector<16x384xbf16> to vector<16x32xbf16>
    %36 = vector.extract_strided_slice %21 {offsets = [0, 256], sizes = [16, 32], strides = [1, 1]} : vector<16x384xbf16> to vector<16x32xbf16>
    %cst_18 = arith.constant dense<0.000000e+00> : vector<16x16xf32>
    %37 = tpu.matmul %34, %35, %cst_18 {dimension_numbers = #tpu.dot_dimension_numbers<[1], [1], [0], [0], [0, 0, 1, 0], [], []>} : vector<16x32xbf16>, vector<16x32xbf16>, vector<16x16xf32> -> vector<16x16xf32>
    %c0_19 = arith.constant 0 : index
    %c0_20 = arith.constant 0 : index
    %c0_21 = arith.constant 0 : index
    %38 = vector.load %arg3[%c0_19, %c0_20, %c0_21] : memref<4x16x16xf32, #tpu.memory_space<vmem>>, vector<1x16x16xf32>
    %39 = vector.shape_cast %38 : vector<1x16x16xf32> to vector<16x16xf32>
    %40 = arith.addf %37, %39 : vector<16x16xf32>
    %41 = arith.addf %40, %33 : vector<16x16xf32>
    %cst_22 = arith.constant dense<0xFF800000> : vector<16xf32>
    %42 = vector.multi_reduction <maximumf>, %41, %cst_22 [1] : vector<16x16xf32> to vector<16xf32>
    %43 = vector.shape_cast %42 : vector<16xf32> to vector<16x1xf32>
    %44 = vector.broadcast %43 : vector<16x1xf32> to vector<16x16xf32>
    %45 = arith.subf %41, %44 : vector<16x16xf32>
    %46 = math.exp %45 : vector<16x16xf32>
    %cst_23 = arith.constant dense<0.000000e+00> : vector<16xf32>
    %47 = vector.multi_reduction <add>, %46, %cst_23 [1] : vector<16x16xf32> to vector<16xf32>
    %48 = vector.shape_cast %47 : vector<16xf32> to vector<16x1xf32>
    %49 = tpu.reciprocal %48 {approx = true} : vector<16x1xf32> -> vector<16x1xf32>
    %50 = vector.broadcast %49 : vector<16x1xf32> to vector<16x16xf32>
    %51 = arith.mulf %46, %50 : vector<16x16xf32>
    %52 = arith.truncf %51 : vector<16x16xf32> to vector<16x16xbf16>
    %cst_24 = arith.constant dense<0.000000e+00> : vector<16x32xf32>
    %53 = tpu.matmul %52, %36, %cst_24 {dimension_numbers = #tpu.dot_dimension_numbers<[1], [0], [0], [1], [0, 0, 1, 1], [], []>} : vector<16x16xbf16>, vector<16x32xbf16>, vector<16x32xf32> -> vector<16x32xf32>
    %54 = vector.extract_strided_slice %21 {offsets = [0, 32], sizes = [16, 32], strides = [1, 1]} : vector<16x384xbf16> to vector<16x32xbf16>
    %55 = vector.extract_strided_slice %21 {offsets = [0, 160], sizes = [16, 32], strides = [1, 1]} : vector<16x384xbf16> to vector<16x32xbf16>
    %56 = vector.extract_strided_slice %21 {offsets = [0, 288], sizes = [16, 32], strides = [1, 1]} : vector<16x384xbf16> to vector<16x32xbf16>
    %cst_25 = arith.constant dense<0.000000e+00> : vector<16x16xf32>
    %57 = tpu.matmul %54, %55, %cst_25 {dimension_numbers = #tpu.dot_dimension_numbers<[1], [1], [0], [0], [0, 0, 1, 0], [], []>} : vector<16x32xbf16>, vector<16x32xbf16>, vector<16x16xf32> -> vector<16x16xf32>
    %c1 = arith.constant 1 : index
    %c0_26 = arith.constant 0 : index
    %c0_27 = arith.constant 0 : index
    %58 = vector.load %arg3[%c1, %c0_26, %c0_27] : memref<4x16x16xf32, #tpu.memory_space<vmem>>, vector<1x16x16xf32>
    %59 = vector.shape_cast %58 : vector<1x16x16xf32> to vector<16x16xf32>
    %60 = arith.addf %57, %59 : vector<16x16xf32>
    %61 = arith.addf %60, %33 : vector<16x16xf32>
    %cst_28 = arith.constant dense<0xFF800000> : vector<16xf32>
    %62 = vector.multi_reduction <maximumf>, %61, %cst_28 [1] : vector<16x16xf32> to vector<16xf32>
    %63 = vector.shape_cast %62 : vector<16xf32> to vector<16x1xf32>
    %64 = vector.broadcast %63 : vector<16x1xf32> to vector<16x16xf32>
    %65 = arith.subf %61, %64 : vector<16x16xf32>
    %66 = math.exp %65 : vector<16x16xf32>
    %cst_29 = arith.constant dense<0.000000e+00> : vector<16xf32>
    %67 = vector.multi_reduction <add>, %66, %cst_29 [1] : vector<16x16xf32> to vector<16xf32>
    %68 = vector.shape_cast %67 : vector<16xf32> to vector<16x1xf32>
    %69 = tpu.reciprocal %68 {approx = true} : vector<16x1xf32> -> vector<16x1xf32>
    %70 = vector.broadcast %69 : vector<16x1xf32> to vector<16x16xf32>
    %71 = arith.mulf %66, %70 : vector<16x16xf32>
    %72 = arith.truncf %71 : vector<16x16xf32> to vector<16x16xbf16>
    %cst_30 = arith.constant dense<0.000000e+00> : vector<16x32xf32>
    %73 = tpu.matmul %72, %56, %cst_30 {dimension_numbers = #tpu.dot_dimension_numbers<[1], [0], [0], [1], [0, 0, 1, 1], [], []>} : vector<16x16xbf16>, vector<16x32xbf16>, vector<16x32xf32> -> vector<16x32xf32>
    %74 = vector.extract_strided_slice %21 {offsets = [0, 64], sizes = [16, 32], strides = [1, 1]} : vector<16x384xbf16> to vector<16x32xbf16>
    %75 = vector.extract_strided_slice %21 {offsets = [0, 192], sizes = [16, 32], strides = [1, 1]} : vector<16x384xbf16> to vector<16x32xbf16>
    %76 = vector.extract_strided_slice %21 {offsets = [0, 320], sizes = [16, 32], strides = [1, 1]} : vector<16x384xbf16> to vector<16x32xbf16>
    %cst_31 = arith.constant dense<0.000000e+00> : vector<16x16xf32>
    %77 = tpu.matmul %74, %75, %cst_31 {dimension_numbers = #tpu.dot_dimension_numbers<[1], [1], [0], [0], [0, 0, 1, 0], [], []>} : vector<16x32xbf16>, vector<16x32xbf16>, vector<16x16xf32> -> vector<16x16xf32>
    %c2 = arith.constant 2 : index
    %c0_32 = arith.constant 0 : index
    %c0_33 = arith.constant 0 : index
    %78 = vector.load %arg3[%c2, %c0_32, %c0_33] : memref<4x16x16xf32, #tpu.memory_space<vmem>>, vector<1x16x16xf32>
    %79 = vector.shape_cast %78 : vector<1x16x16xf32> to vector<16x16xf32>
    %80 = arith.addf %77, %79 : vector<16x16xf32>
    %81 = arith.addf %80, %33 : vector<16x16xf32>
    %cst_34 = arith.constant dense<0xFF800000> : vector<16xf32>
    %82 = vector.multi_reduction <maximumf>, %81, %cst_34 [1] : vector<16x16xf32> to vector<16xf32>
    %83 = vector.shape_cast %82 : vector<16xf32> to vector<16x1xf32>
    %84 = vector.broadcast %83 : vector<16x1xf32> to vector<16x16xf32>
    %85 = arith.subf %81, %84 : vector<16x16xf32>
    %86 = math.exp %85 : vector<16x16xf32>
    %cst_35 = arith.constant dense<0.000000e+00> : vector<16xf32>
    %87 = vector.multi_reduction <add>, %86, %cst_35 [1] : vector<16x16xf32> to vector<16xf32>
    %88 = vector.shape_cast %87 : vector<16xf32> to vector<16x1xf32>
    %89 = tpu.reciprocal %88 {approx = true} : vector<16x1xf32> -> vector<16x1xf32>
    %90 = vector.broadcast %89 : vector<16x1xf32> to vector<16x16xf32>
    %91 = arith.mulf %86, %90 : vector<16x16xf32>
    %92 = arith.truncf %91 : vector<16x16xf32> to vector<16x16xbf16>
    %cst_36 = arith.constant dense<0.000000e+00> : vector<16x32xf32>
    %93 = tpu.matmul %92, %76, %cst_36 {dimension_numbers = #tpu.dot_dimension_numbers<[1], [0], [0], [1], [0, 0, 1, 1], [], []>} : vector<16x16xbf16>, vector<16x32xbf16>, vector<16x32xf32> -> vector<16x32xf32>
    %94 = vector.extract_strided_slice %21 {offsets = [0, 96], sizes = [16, 32], strides = [1, 1]} : vector<16x384xbf16> to vector<16x32xbf16>
    %95 = vector.extract_strided_slice %21 {offsets = [0, 224], sizes = [16, 32], strides = [1, 1]} : vector<16x384xbf16> to vector<16x32xbf16>
    %96 = vector.extract_strided_slice %21 {offsets = [0, 352], sizes = [16, 32], strides = [1, 1]} : vector<16x384xbf16> to vector<16x32xbf16>
    %cst_37 = arith.constant dense<0.000000e+00> : vector<16x16xf32>
    %97 = tpu.matmul %94, %95, %cst_37 {dimension_numbers = #tpu.dot_dimension_numbers<[1], [1], [0], [0], [0, 0, 1, 0], [], []>} : vector<16x32xbf16>, vector<16x32xbf16>, vector<16x16xf32> -> vector<16x16xf32>
    %c3 = arith.constant 3 : index
    %c0_38 = arith.constant 0 : index
    %c0_39 = arith.constant 0 : index
    %98 = vector.load %arg3[%c3, %c0_38, %c0_39] : memref<4x16x16xf32, #tpu.memory_space<vmem>>, vector<1x16x16xf32>
    %99 = vector.shape_cast %98 : vector<1x16x16xf32> to vector<16x16xf32>
    %100 = arith.addf %97, %99 : vector<16x16xf32>
    %101 = arith.addf %100, %33 : vector<16x16xf32>
    %cst_40 = arith.constant dense<0xFF800000> : vector<16xf32>
    %102 = vector.multi_reduction <maximumf>, %101, %cst_40 [1] : vector<16x16xf32> to vector<16xf32>
    %103 = vector.shape_cast %102 : vector<16xf32> to vector<16x1xf32>
    %104 = vector.broadcast %103 : vector<16x1xf32> to vector<16x16xf32>
    %105 = arith.subf %101, %104 : vector<16x16xf32>
    %106 = math.exp %105 : vector<16x16xf32>
    %cst_41 = arith.constant dense<0.000000e+00> : vector<16xf32>
    %107 = vector.multi_reduction <add>, %106, %cst_41 [1] : vector<16x16xf32> to vector<16xf32>
    %108 = vector.shape_cast %107 : vector<16xf32> to vector<16x1xf32>
    %109 = tpu.reciprocal %108 {approx = true} : vector<16x1xf32> -> vector<16x1xf32>
    %110 = vector.broadcast %109 : vector<16x1xf32> to vector<16x16xf32>
    %111 = arith.mulf %106, %110 : vector<16x16xf32>
    %112 = arith.truncf %111 : vector<16x16xf32> to vector<16x16xbf16>
    %cst_42 = arith.constant dense<0.000000e+00> : vector<16x32xf32>
    %113 = tpu.matmul %112, %96, %cst_42 {dimension_numbers = #tpu.dot_dimension_numbers<[1], [0], [0], [1], [0, 0, 1, 1], [], []>} : vector<16x16xbf16>, vector<16x32xbf16>, vector<16x32xf32> -> vector<16x32xf32>
    %114 = tpu.concatenate %53, %73, %93, %113 in 1 : vector<16x32xf32>, vector<16x32xf32>, vector<16x32xf32>, vector<16x32xf32> -> vector<16x128xf32>
    %115 = arith.truncf %114 : vector<16x128xf32> to vector<16x128xbf16>
    %c0_43 = arith.constant 0 : index
    %c0_44 = arith.constant 0 : index
    %116 = vector.load %arg8[%c0_43, %c0_44] : memref<128x128xbf16, #tpu.memory_space<vmem>>, vector<128x128xbf16>
    %cst_45 = arith.constant dense<0.000000e+00> : vector<16x128xf32>
    %117 = tpu.matmul %115, %116, %cst_45 {dimension_numbers = #tpu.dot_dimension_numbers<[1], [0], [0], [1], [0, 0, 1, 1], [], []>} : vector<16x128xbf16>, vector<128x128xbf16>, vector<16x128xf32> -> vector<16x128xf32>
    %118 = arith.addf %1, %117 : vector<16x128xf32>
    %c0_46 = arith.constant 0 : index
    %c0_47 = arith.constant 0 : index
    %119 = vector.load %arg9[%c0_46, %c0_47] : memref<1x128xf32, #tpu.memory_space<vmem>>, vector<1x128xf32>
    %120 = arith.mulf %118, %118 : vector<16x128xf32>
    %cst_48 = arith.constant dense<0.000000e+00> : vector<16xf32>
    %121 = vector.multi_reduction <add>, %120, %cst_48 [1] : vector<16x128xf32> to vector<16xf32>
    %122 = vector.shape_cast %121 : vector<16xf32> to vector<16x1xf32>
    %cst_49 = arith.constant 1.280000e+02 : f32
    %123 = vector.broadcast %cst_49 : f32 to vector<16x1xf32>
    %124 = arith.divf %122, %123 : vector<16x1xf32>
    %cst_50 = arith.constant 9.99999997E-7 : f32
    %125 = vector.broadcast %cst_50 : f32 to vector<16x1xf32>
    %126 = arith.addf %124, %125 : vector<16x1xf32>
    %127 = math.rsqrt %126 : vector<16x1xf32>
    %128 = vector.broadcast %127 : vector<16x1xf32> to vector<16x128xf32>
    %129 = arith.mulf %118, %128 : vector<16x128xf32>
    %130 = vector.broadcast %119 : vector<1x128xf32> to vector<16x128xf32>
    %131 = arith.mulf %129, %130 : vector<16x128xf32>
    %132 = arith.truncf %131 : vector<16x128xf32> to vector<16x128xbf16>
    %c0_51 = arith.constant 0 : index
    %c0_52 = arith.constant 0 : index
    %133 = vector.load %arg10[%c0_51, %c0_52] : memref<128x128xbf16, #tpu.memory_space<vmem>>, vector<128x128xbf16>
    %cst_53 = arith.constant dense<0.000000e+00> : vector<16x128xf32>
    %134 = tpu.matmul %132, %133, %cst_53 {dimension_numbers = #tpu.dot_dimension_numbers<[1], [0], [0], [1], [0, 0, 1, 1], [], []>} : vector<16x128xbf16>, vector<128x128xbf16>, vector<16x128xf32> -> vector<16x128xf32>
    %135 = arith.truncf %134 : vector<16x128xf32> to vector<16x128xbf16>
    %c0_54 = arith.constant 0 : index
    %c0_55 = arith.constant 0 : index
    %136 = vector.load %arg11[%c0_54, %c0_55] : memref<128x256xbf16, #tpu.memory_space<vmem>>, vector<128x256xbf16>
    %cst_56 = arith.constant dense<0.000000e+00> : vector<16x256xf32>
    %137 = tpu.matmul %4, %136, %cst_56 {dimension_numbers = #tpu.dot_dimension_numbers<[1], [0], [0], [1], [0, 0, 1, 1], [], []>} : vector<16x128xbf16>, vector<128x256xbf16>, vector<16x256xf32> -> vector<16x256xf32>
    %138 = arith.truncf %137 : vector<16x256xf32> to vector<16x256xbf16>
    %c0_57 = arith.constant 0 : index
    %c0_58 = arith.constant 0 : index
    %c0_59 = arith.constant 0 : index
    %139 = vector.load %arg5[%c0_57, %c0_58, %c0_59] : memref<1x1x16xf32, #tpu.memory_space<vmem>>, vector<1x1x16xf32>
    %140 = vector.shape_cast %139 : vector<1x1x16xf32> to vector<1x16xf32>
    %cst_60 = arith.constant 5.000000e-01 : f32
    %141 = vector.broadcast %cst_60 : f32 to vector<1x16xf32>
    %142 = arith.cmpf ogt, %140, %141 : vector<1x16xf32>
    %cst_61 = arith.constant 0.000000e+00 : f32
    %cst_62 = arith.constant -1.000000e+09 : f32
    %143 = vector.broadcast %cst_61 : f32 to vector<1x16xf32>
    %144 = vector.broadcast %cst_62 : f32 to vector<1x16xf32>
    %145 = arith.select %142, %143, %144 : vector<1x16xi1>, vector<1x16xf32>
    %146 = vector.extract_strided_slice %135 {offsets = [0, 0], sizes = [16, 32], strides = [1, 1]} : vector<16x128xbf16> to vector<16x32xbf16>
    %147 = vector.extract_strided_slice %138 {offsets = [0, 0], sizes = [16, 32], strides = [1, 1]} : vector<16x256xbf16> to vector<16x32xbf16>
    %148 = vector.extract_strided_slice %138 {offsets = [0, 128], sizes = [16, 32], strides = [1, 1]} : vector<16x256xbf16> to vector<16x32xbf16>
    %cst_63 = arith.constant dense<0.000000e+00> : vector<16x16xf32>
    %149 = tpu.matmul %146, %147, %cst_63 {dimension_numbers = #tpu.dot_dimension_numbers<[1], [1], [0], [0], [0, 0, 1, 0], [], []>} : vector<16x32xbf16>, vector<16x32xbf16>, vector<16x16xf32> -> vector<16x16xf32>
    %150 = vector.broadcast %145 : vector<1x16xf32> to vector<16x16xf32>
    %151 = arith.addf %149, %150 : vector<16x16xf32>
    %cst_64 = arith.constant dense<0xFF800000> : vector<16xf32>
    %152 = vector.multi_reduction <maximumf>, %151, %cst_64 [1] : vector<16x16xf32> to vector<16xf32>
    %153 = vector.shape_cast %152 : vector<16xf32> to vector<16x1xf32>
    %154 = vector.broadcast %153 : vector<16x1xf32> to vector<16x16xf32>
    %155 = arith.subf %151, %154 : vector<16x16xf32>
    %156 = math.exp %155 : vector<16x16xf32>
    %cst_65 = arith.constant dense<0.000000e+00> : vector<16xf32>
    %157 = vector.multi_reduction <add>, %156, %cst_65 [1] : vector<16x16xf32> to vector<16xf32>
    %158 = vector.shape_cast %157 : vector<16xf32> to vector<16x1xf32>
    %159 = tpu.reciprocal %158 {approx = true} : vector<16x1xf32> -> vector<16x1xf32>
    %160 = vector.broadcast %159 : vector<16x1xf32> to vector<16x16xf32>
    %161 = arith.mulf %156, %160 : vector<16x16xf32>
    %162 = arith.truncf %161 : vector<16x16xf32> to vector<16x16xbf16>
    %cst_66 = arith.constant dense<0.000000e+00> : vector<16x32xf32>
    %163 = tpu.matmul %162, %148, %cst_66 {dimension_numbers = #tpu.dot_dimension_numbers<[1], [0], [0], [1], [0, 0, 1, 1], [], []>} : vector<16x16xbf16>, vector<16x32xbf16>, vector<16x32xf32> -> vector<16x32xf32>
    %164 = vector.extract_strided_slice %135 {offsets = [0, 32], sizes = [16, 32], strides = [1, 1]} : vector<16x128xbf16> to vector<16x32xbf16>
    %165 = vector.extract_strided_slice %138 {offsets = [0, 32], sizes = [16, 32], strides = [1, 1]} : vector<16x256xbf16> to vector<16x32xbf16>
    %166 = vector.extract_strided_slice %138 {offsets = [0, 160], sizes = [16, 32], strides = [1, 1]} : vector<16x256xbf16> to vector<16x32xbf16>
    %cst_67 = arith.constant dense<0.000000e+00> : vector<16x16xf32>
    %167 = tpu.matmul %164, %165, %cst_67 {dimension_numbers = #tpu.dot_dimension_numbers<[1], [1], [0], [0], [0, 0, 1, 0], [], []>} : vector<16x32xbf16>, vector<16x32xbf16>, vector<16x16xf32> -> vector<16x16xf32>
    %168 = vector.broadcast %145 : vector<1x16xf32> to vector<16x16xf32>
    %169 = arith.addf %167, %168 : vector<16x16xf32>
    %cst_68 = arith.constant dense<0xFF800000> : vector<16xf32>
    %170 = vector.multi_reduction <maximumf>, %169, %cst_68 [1] : vector<16x16xf32> to vector<16xf32>
    %171 = vector.shape_cast %170 : vector<16xf32> to vector<16x1xf32>
    %172 = vector.broadcast %171 : vector<16x1xf32> to vector<16x16xf32>
    %173 = arith.subf %169, %172 : vector<16x16xf32>
    %174 = math.exp %173 : vector<16x16xf32>
    %cst_69 = arith.constant dense<0.000000e+00> : vector<16xf32>
    %175 = vector.multi_reduction <add>, %174, %cst_69 [1] : vector<16x16xf32> to vector<16xf32>
    %176 = vector.shape_cast %175 : vector<16xf32> to vector<16x1xf32>
    %177 = tpu.reciprocal %176 {approx = true} : vector<16x1xf32> -> vector<16x1xf32>
    %178 = vector.broadcast %177 : vector<16x1xf32> to vector<16x16xf32>
    %179 = arith.mulf %174, %178 : vector<16x16xf32>
    %180 = arith.truncf %179 : vector<16x16xf32> to vector<16x16xbf16>
    %cst_70 = arith.constant dense<0.000000e+00> : vector<16x32xf32>
    %181 = tpu.matmul %180, %166, %cst_70 {dimension_numbers = #tpu.dot_dimension_numbers<[1], [0], [0], [1], [0, 0, 1, 1], [], []>} : vector<16x16xbf16>, vector<16x32xbf16>, vector<16x32xf32> -> vector<16x32xf32>
    %182 = vector.extract_strided_slice %135 {offsets = [0, 64], sizes = [16, 32], strides = [1, 1]} : vector<16x128xbf16> to vector<16x32xbf16>
    %183 = vector.extract_strided_slice %138 {offsets = [0, 64], sizes = [16, 32], strides = [1, 1]} : vector<16x256xbf16> to vector<16x32xbf16>
    %184 = vector.extract_strided_slice %138 {offsets = [0, 192], sizes = [16, 32], strides = [1, 1]} : vector<16x256xbf16> to vector<16x32xbf16>
    %cst_71 = arith.constant dense<0.000000e+00> : vector<16x16xf32>
    %185 = tpu.matmul %182, %183, %cst_71 {dimension_numbers = #tpu.dot_dimension_numbers<[1], [1], [0], [0], [0, 0, 1, 0], [], []>} : vector<16x32xbf16>, vector<16x32xbf16>, vector<16x16xf32> -> vector<16x16xf32>
    %186 = vector.broadcast %145 : vector<1x16xf32> to vector<16x16xf32>
    %187 = arith.addf %185, %186 : vector<16x16xf32>
    %cst_72 = arith.constant dense<0xFF800000> : vector<16xf32>
    %188 = vector.multi_reduction <maximumf>, %187, %cst_72 [1] : vector<16x16xf32> to vector<16xf32>
    %189 = vector.shape_cast %188 : vector<16xf32> to vector<16x1xf32>
    %190 = vector.broadcast %189 : vector<16x1xf32> to vector<16x16xf32>
    %191 = arith.subf %187, %190 : vector<16x16xf32>
    %192 = math.exp %191 : vector<16x16xf32>
    %cst_73 = arith.constant dense<0.000000e+00> : vector<16xf32>
    %193 = vector.multi_reduction <add>, %192, %cst_73 [1] : vector<16x16xf32> to vector<16xf32>
    %194 = vector.shape_cast %193 : vector<16xf32> to vector<16x1xf32>
    %195 = tpu.reciprocal %194 {approx = true} : vector<16x1xf32> -> vector<16x1xf32>
    %196 = vector.broadcast %195 : vector<16x1xf32> to vector<16x16xf32>
    %197 = arith.mulf %192, %196 : vector<16x16xf32>
    %198 = arith.truncf %197 : vector<16x16xf32> to vector<16x16xbf16>
    %cst_74 = arith.constant dense<0.000000e+00> : vector<16x32xf32>
    %199 = tpu.matmul %198, %184, %cst_74 {dimension_numbers = #tpu.dot_dimension_numbers<[1], [0], [0], [1], [0, 0, 1, 1], [], []>} : vector<16x16xbf16>, vector<16x32xbf16>, vector<16x32xf32> -> vector<16x32xf32>
    %200 = vector.extract_strided_slice %135 {offsets = [0, 96], sizes = [16, 32], strides = [1, 1]} : vector<16x128xbf16> to vector<16x32xbf16>
    %201 = vector.extract_strided_slice %138 {offsets = [0, 96], sizes = [16, 32], strides = [1, 1]} : vector<16x256xbf16> to vector<16x32xbf16>
    %202 = vector.extract_strided_slice %138 {offsets = [0, 224], sizes = [16, 32], strides = [1, 1]} : vector<16x256xbf16> to vector<16x32xbf16>
    %cst_75 = arith.constant dense<0.000000e+00> : vector<16x16xf32>
    %203 = tpu.matmul %200, %201, %cst_75 {dimension_numbers = #tpu.dot_dimension_numbers<[1], [1], [0], [0], [0, 0, 1, 0], [], []>} : vector<16x32xbf16>, vector<16x32xbf16>, vector<16x16xf32> -> vector<16x16xf32>
    %204 = vector.broadcast %145 : vector<1x16xf32> to vector<16x16xf32>
    %205 = arith.addf %203, %204 : vector<16x16xf32>
    %cst_76 = arith.constant dense<0xFF800000> : vector<16xf32>
    %206 = vector.multi_reduction <maximumf>, %205, %cst_76 [1] : vector<16x16xf32> to vector<16xf32>
    %207 = vector.shape_cast %206 : vector<16xf32> to vector<16x1xf32>
    %208 = vector.broadcast %207 : vector<16x1xf32> to vector<16x16xf32>
    %209 = arith.subf %205, %208 : vector<16x16xf32>
    %210 = math.exp %209 : vector<16x16xf32>
    %cst_77 = arith.constant dense<0.000000e+00> : vector<16xf32>
    %211 = vector.multi_reduction <add>, %210, %cst_77 [1] : vector<16x16xf32> to vector<16xf32>
    %212 = vector.shape_cast %211 : vector<16xf32> to vector<16x1xf32>
    %213 = tpu.reciprocal %212 {approx = true} : vector<16x1xf32> -> vector<16x1xf32>
    %214 = vector.broadcast %213 : vector<16x1xf32> to vector<16x16xf32>
    %215 = arith.mulf %210, %214 : vector<16x16xf32>
    %216 = arith.truncf %215 : vector<16x16xf32> to vector<16x16xbf16>
    %cst_78 = arith.constant dense<0.000000e+00> : vector<16x32xf32>
    %217 = tpu.matmul %216, %202, %cst_78 {dimension_numbers = #tpu.dot_dimension_numbers<[1], [0], [0], [1], [0, 0, 1, 1], [], []>} : vector<16x16xbf16>, vector<16x32xbf16>, vector<16x32xf32> -> vector<16x32xf32>
    %218 = tpu.concatenate %163, %181, %199, %217 in 1 : vector<16x32xf32>, vector<16x32xf32>, vector<16x32xf32>, vector<16x32xf32> -> vector<16x128xf32>
    %219 = arith.truncf %218 : vector<16x128xf32> to vector<16x128xbf16>
    %c0_79 = arith.constant 0 : index
    %c0_80 = arith.constant 0 : index
    %220 = vector.load %arg12[%c0_79, %c0_80] : memref<128x128xbf16, #tpu.memory_space<vmem>>, vector<128x128xbf16>
    %cst_81 = arith.constant dense<0.000000e+00> : vector<16x128xf32>
    %221 = tpu.matmul %219, %220, %cst_81 {dimension_numbers = #tpu.dot_dimension_numbers<[1], [0], [0], [1], [0, 0, 1, 1], [], []>} : vector<16x128xbf16>, vector<128x128xbf16>, vector<16x128xf32> -> vector<16x128xf32>
    %222 = arith.addf %118, %221 : vector<16x128xf32>
    %c0_82 = arith.constant 0 : index
    %c0_83 = arith.constant 0 : index
    %223 = vector.load %arg13[%c0_82, %c0_83] : memref<1x128xf32, #tpu.memory_space<vmem>>, vector<1x128xf32>
    %224 = arith.mulf %222, %222 : vector<16x128xf32>
    %cst_84 = arith.constant dense<0.000000e+00> : vector<16xf32>
    %225 = vector.multi_reduction <add>, %224, %cst_84 [1] : vector<16x128xf32> to vector<16xf32>
    %226 = vector.shape_cast %225 : vector<16xf32> to vector<16x1xf32>
    %cst_85 = arith.constant 1.280000e+02 : f32
    %227 = vector.broadcast %cst_85 : f32 to vector<16x1xf32>
    %228 = arith.divf %226, %227 : vector<16x1xf32>
    %cst_86 = arith.constant 9.99999997E-7 : f32
    %229 = vector.broadcast %cst_86 : f32 to vector<16x1xf32>
    %230 = arith.addf %228, %229 : vector<16x1xf32>
    %231 = math.rsqrt %230 : vector<16x1xf32>
    %232 = vector.broadcast %231 : vector<16x1xf32> to vector<16x128xf32>
    %233 = arith.mulf %222, %232 : vector<16x128xf32>
    %234 = vector.broadcast %223 : vector<1x128xf32> to vector<16x128xf32>
    %235 = arith.mulf %233, %234 : vector<16x128xf32>
    %236 = arith.truncf %235 : vector<16x128xf32> to vector<16x128xbf16>
    %c0_87 = arith.constant 0 : index
    %c0_88 = arith.constant 0 : index
    %237 = vector.load %arg14[%c0_87, %c0_88] : memref<128x512xbf16, #tpu.memory_space<vmem>>, vector<128x512xbf16>
    %cst_89 = arith.constant dense<0.000000e+00> : vector<16x512xf32>
    %238 = tpu.matmul %236, %237, %cst_89 {dimension_numbers = #tpu.dot_dimension_numbers<[1], [0], [0], [1], [0, 0, 1, 1], [], []>} : vector<16x128xbf16>, vector<128x512xbf16>, vector<16x512xf32> -> vector<16x512xf32>
    %239 = vector.extract_strided_slice %238 {offsets = [0, 0], sizes = [16, 256], strides = [1, 1]} : vector<16x512xf32> to vector<16x256xf32>
    %240 = vector.extract_strided_slice %238 {offsets = [0, 256], sizes = [16, 256], strides = [1, 1]} : vector<16x512xf32> to vector<16x256xf32>
    %cst_90 = arith.constant 5.000000e-01 : f32
    %241 = vector.broadcast %cst_90 : f32 to vector<16x256xf32>
    %242 = arith.mulf %241, %239 : vector<16x256xf32>
    %cst_91 = arith.constant 4.471500e-02 : f32
    %243 = vector.broadcast %cst_91 : f32 to vector<16x256xf32>
    %244 = arith.mulf %243, %239 : vector<16x256xf32>
    %245 = arith.mulf %244, %239 : vector<16x256xf32>
    %246 = arith.mulf %245, %239 : vector<16x256xf32>
    %247 = arith.addf %239, %246 : vector<16x256xf32>
    %cst_92 = arith.constant 0.797884583 : f32
    %248 = vector.broadcast %cst_92 : f32 to vector<16x256xf32>
    %249 = arith.mulf %248, %247 : vector<16x256xf32>
    %250 = math.tanh %249 : vector<16x256xf32>
    %cst_93 = arith.constant 1.000000e+00 : f32
    %251 = vector.broadcast %cst_93 : f32 to vector<16x256xf32>
    %252 = arith.addf %251, %250 : vector<16x256xf32>
    %253 = arith.mulf %242, %252 : vector<16x256xf32>
    %254 = arith.mulf %253, %240 : vector<16x256xf32>
    %255 = arith.truncf %254 : vector<16x256xf32> to vector<16x256xbf16>
    %c0_94 = arith.constant 0 : index
    %c0_95 = arith.constant 0 : index
    %256 = vector.load %arg15[%c0_94, %c0_95] : memref<256x128xbf16, #tpu.memory_space<vmem>>, vector<256x128xbf16>
    %cst_96 = arith.constant dense<0.000000e+00> : vector<16x128xf32>
    %257 = tpu.matmul %255, %256, %cst_96 {dimension_numbers = #tpu.dot_dimension_numbers<[1], [0], [0], [1], [0, 0, 1, 1], [], []>} : vector<16x256xbf16>, vector<256x128xbf16>, vector<16x128xf32> -> vector<16x128xf32>
    %258 = arith.addf %222, %257 : vector<16x128xf32>
    %c0_97 = arith.constant 0 : index
    %c0_98 = arith.constant 0 : index
    %c0_99 = arith.constant 0 : index
    %259 = vector.load %arg17[%c0_97, %c0_98, %c0_99] : memref<1x16x128xf32, #tpu.memory_space<vmem>>, vector<1x16x128xf32>
    %260 = vector.shape_cast %259 : vector<1x16x128xf32> to vector<16x128xf32>
    %261 = vector.shape_cast %258 : vector<16x128xf32> to vector<1x16x128xf32>
    tpu.vector_store %arg17[%c0_97, %c0_98, %c0_99], %261 {strides = array<i32>} : memref<1x16x128xf32, #tpu.memory_space<vmem>>, vector<1x16x128xf32>,
    return
  }
  func.func @transform_0(%arg0: i32) -> (i32, i32, i32) {
    %c0_i32 = arith.constant 0 : i32
    %c0_i32_0 = arith.constant 0 : i32
    %c0_i32_1 = arith.constant 0 : i32
    return %arg0, %c0_i32, %c0_i32_0 : i32, i32, i32
  }
  func.func @transform_1(%arg0: i32) -> (i32, i32, i32) {
    %c0_i32 = arith.constant 0 : i32
    %c0_i32_0 = arith.constant 0 : i32
    %c0_i32_1 = arith.constant 0 : i32
    return %arg0, %c0_i32, %c0_i32_0 : i32, i32, i32
  }
  func.func @transform_2(%arg0: i32) -> (i32, i32, i32) {
    %c0_i32 = arith.constant 0 : i32
    %c0_i32_0 = arith.constant 0 : i32
    %c0_i32_1 = arith.constant 0 : i32
    %c0_i32_2 = arith.constant 0 : i32
    return %c0_i32, %c0_i32_0, %c0_i32_1 : i32, i32, i32
  }
  func.func @transform_3(%arg0: i32) -> (i32, i32, i32) {
    %c0_i32 = arith.constant 0 : i32
    %c0_i32_0 = arith.constant 0 : i32
    %c0_i32_1 = arith.constant 0 : i32
    return %arg0, %c0_i32, %c0_i32_0 : i32, i32, i32
  }
  func.func @transform_4(%arg0: i32) -> (i32, i32, i32) {
    %c0_i32 = arith.constant 0 : i32
    %c0_i32_0 = arith.constant 0 : i32
    %c0_i32_1 = arith.constant 0 : i32
    return %arg0, %c0_i32, %c0_i32_0 : i32, i32, i32
  }
  func.func @transform_5(%arg0: i32) -> (i32, i32) {
    %c0_i32 = arith.constant 0 : i32
    %c0_i32_0 = arith.constant 0 : i32
    %c0_i32_1 = arith.constant 0 : i32
    return %c0_i32, %c0_i32_0 : i32, i32
  }
  func.func @transform_6(%arg0: i32) -> (i32, i32) {
    %c0_i32 = arith.constant 0 : i32
    %c0_i32_0 = arith.constant 0 : i32
    %c0_i32_1 = arith.constant 0 : i32
    return %c0_i32, %c0_i32_0 : i32, i32
  }
  func.func @transform_7(%arg0: i32) -> (i32, i32) {
    %c0_i32 = arith.constant 0 : i32
    %c0_i32_0 = arith.constant 0 : i32
    %c0_i32_1 = arith.constant 0 : i32
    return %c0_i32, %c0_i32_0 : i32, i32
  }
  func.func @transform_8(%arg0: i32) -> (i32, i32) {
    %c0_i32 = arith.constant 0 : i32
    %c0_i32_0 = arith.constant 0 : i32
    %c0_i32_1 = arith.constant 0 : i32
    return %c0_i32, %c0_i32_0 : i32, i32
  }
  func.func @transform_9(%arg0: i32) -> (i32, i32) {
    %c0_i32 = arith.constant 0 : i32
    %c0_i32_0 = arith.constant 0 : i32
    %c0_i32_1 = arith.constant 0 : i32
    return %c0_i32, %c0_i32_0 : i32, i32
  }
  func.func @transform_10(%arg0: i32) -> (i32, i32) {
    %c0_i32 = arith.constant 0 : i32
    %c0_i32_0 = arith.constant 0 : i32
    %c0_i32_1 = arith.constant 0 : i32
    return %c0_i32, %c0_i32_0 : i32, i32
  }
  func.func @transform_11(%arg0: i32) -> (i32, i32) {
    %c0_i32 = arith.constant 0 : i32
    %c0_i32_0 = arith.constant 0 : i32
    %c0_i32_1 = arith.constant 0 : i32
    return %c0_i32, %c0_i32_0 : i32, i32
  }
  func.func @transform_12(%arg0: i32) -> (i32, i32) {
    %c0_i32 = arith.constant 0 : i32
    %c0_i32_0 = arith.constant 0 : i32
    %c0_i32_1 = arith.constant 0 : i32
    return %c0_i32, %c0_i32_0 : i32, i32
  }
  func.func @transform_13(%arg0: i32) -> (i32, i32) {
    %c0_i32 = arith.constant 0 : i32
    %c0_i32_0 = arith.constant 0 : i32
    %c0_i32_1 = arith.constant 0 : i32
    return %c0_i32, %c0_i32_0 : i32, i32
  }
  func.func @transform_14(%arg0: i32) -> (i32, i32) {
    %c0_i32 = arith.constant 0 : i32
    %c0_i32_0 = arith.constant 0 : i32
    %c0_i32_1 = arith.constant 0 : i32
    return %c0_i32, %c0_i32_0 : i32, i32
  }
  func.func @transform_15(%arg0: i32) -> (i32, i32) {
    %c0_i32 = arith.constant 0 : i32
    %c0_i32_0 = arith.constant 0 : i32
    %c0_i32_1 = arith.constant 0 : i32
    return %c0_i32, %c0_i32_0 : i32, i32
  }
  func.func @transform_16(%arg0: i32) -> (i32, i32, i32) {
    %c0_i32 = arith.constant 0 : i32
    %c0_i32_0 = arith.constant 0 : i32
    %c0_i32_1 = arith.constant 0 : i32
    return %arg0, %c0_i32, %c0_i32_0 : i32, i32, i32
  }
}

</mosaic_0001>

<bundles_post_ra>
// kernel: parlai_mgen_decoder_forward.3
= control target key start
LH: loop header
LB: loop body
LE: loop exit
PB: predicated region body
PF: predicated region fallthrough
CT: control target
= control target key end

     0   :  { %s4689_s0 = inlined_call_operand.vmem [shape: f32[2,16,128], index: 0, kind: input, shape index: {}]   ;;  %s4690_s1 = inlined_call_operand.vmem [shape: f32[2,16,128], index: 1, kind: input, shape index: {}]   ;;  %s4691_s2 = inlined_call_operand.vmem [shape: f32[4,16,16], index: 2, kind: input, shape index: {}]   ;;  %s4692_s3 = inlined_call_operand.vmem [shape: f32[2,1,16], index: 3, kind: input, shape index: {}]   ;;  %s4693_s4 = inlined_call_operand.vmem [shape: f32[2,1,16], index: 4, kind: input, shape index: {}]   ;;  %s4694_s5 = inlined_call_operand.vmem [shape: f32[1,128], index: 5, kind: input, shape index: {}]   ;;  %s4695_s6 = inlined_call_operand.vmem [shape: bf16[128,384], index: 6, kind: input, shape index: {}]   ;;  %s4696_s7 = inlined_call_operand.vmem [shape: bf16[128,128], index: 7, kind: input, shape index: {}]   ;;  %s4697_s8 = inlined_call_operand.vmem [shape: f32[1,128], index: 8, kind: input, shape index: {}]   ;;  %s4698_s9 = inlined_call_operand.vmem [shape: bf16[128,128], index: 9, kind: input, shape index: {}]   ;;  %s4699_s10 = inlined_call_operand.vmem [shape: bf16[128,256], index: 10, kind: input, shape index: {}]   ;;  %s4700_s11 = inlined_call_operand.vmem [shape: bf16[128,128], index: 11, kind: input, shape index: {}]   ;;  %s4701_s12 = inlined_call_operand.vmem [shape: f32[1,128], index: 12, kind: input, shape index: {}]   ;;  %s4702_s13 = inlined_call_operand.vmem [shape: bf16[128,512], index: 13, kind: input, shape index: {}]   ;;  %s4703_s14 = inlined_call_operand.vmem [shape: bf16[256,128], index: 14, kind: input, shape index: {}]   ;;  %s4704_s15 = inlined_call_operand.vmem [shape: f32[1,128], index: 15, kind: input, shape index: {}]   ;;  %s4705_s16 = inlined_call_operand.hbm [shape: f32[2,16,128], index: 16, kind: output, shape index: {}]  }
   0x1   :  { %4719 = sst [smem:[#allocation11_spill]] %s4689_s0 }
   0x2   :  { %21 = vsyncpa [#allocation3], 0 }
   0x3   :  { %23 = vsyncpa [#allocation3 + $0x1], 0  ;;  %s3940_s21 = smov 0   ;;  %s3942_s22 = smov 0  }
   0x4   :  { %s3944_s23 = smov 0   ;;  %s3946_s24 = smov 0  }
   0x5 LB: > { %4720 = sst [smem:[#allocation5_spill]] %s3831_s21  ;;  %s3961_s25 = sadd.s32 4294967295, %s3843_s24   ;;  %s3843_s24 = sphi %s3946_s24, %s4736_s24   ;;  %s3839_s23 = sphi %s3944_s23, %s4738_s23   ;;  %s3835_s22 = sphi %s3942_s22, %s4740_s22   ;;  %s3831_s21 = sphi %s3940_s21, %s4739_s21  }
   0x6   : > { %4721 = sst [smem:[#allocation6_spill]] %s3839_s23  ;;  %s3050_s26 = sadd.s32 4294967294, %s3843_s24  }
   0x7   : > { %4722 = sst [smem:[#allocation7_spill]] %s3843_s24  ;;  %s3965_s27 = sadd.s32 1, %s3843_s24  }
   0x8   : > { %4723 = sst [smem:[#allocation8_spill]] %s3965_s27  ;;  %s392_s28 = sadd.s32 1, %s3839_s23 }
   0x9   : > { %s389_s29 = ssub.s32 %s3843_s24, %s3965_s27  ;;  %p402_p0 = scmp.ne.s32.totalorder %s3839_s23, %s3835_s22 }
   0xa   : > { %p390_p1 = scmp.eq.s32.totalorder %s389_s29, 0  ;;  %p403_p2 = scmp.eq.s32.totalorder %s3961_s25, 1 }
   0xb   : > { %p408_p3 = scmp.ne.s32.totalorder %s3835_s22, %s3831_s21  ;;  %p409_p4 = scmp.eq.s32.totalorder %s3050_s26, 1 }
   0xc   : > { %s3976_s30 = scalar_select %p390_p1, %s3839_s23, %s392_s28  }
   0xd   : > { %p3978_p5 = por %p403_p2, %p402_p0  ;;  %p3982_p6 = por %p409_p4, %p408_p3 }
   0xe   : > { %4724 = sst [smem:[#allocation9_spill]] %s3976_s30  ;;  %p3053_p7 = scmp.ge.s32.totalorder %s3843_s24, 1 }
   0xf   : > { %s4726_s17 = scalar_select %p3982_p6, 1, 0 }
  0x10   : > { %p491_p8 = scmp.lt.s32.totalorder %s3843_s24, 3 }
  0x11   : > { %4727 = sst [smem:[#allocation10_spill]] %s4726_s17 }
  0x12   : > { %p492_p9 = pnand %p3053_p7, %p491_p8 }
  0x13   : > { %p552_p10 = scmp.lt.s32.totalorder (!%p492_p9), %s3961_s25, 1  ;;  %s4728_s27 = sld [smem:[#allocation11_spill]] (!%p492_p9) }
  0x14   : > { %495 = sbr.rel (%p492_p9) target bundleno = 4335 (0x10ef), region = 84  ;;  %s4717_s18 = smov (!%p492_p9), 96  }
  0x15   : > { %s4713_s19 = smov (!%p492_p9), 32   ;;  %s4732_s26 = smov (!%p492_p9), 32  }
  0x19   : > { %v3549_v0 = vld [vmem:[%s4695_s6 + $0xac] ss:$12 sps:$4 sm:$0xff]   ;;  %v3845_v1 = vmov 0.0   ;;  %v3551_v2 = vld [vmem:[%s4695_s6 + $0xa8] ss:$12 sps:$4 sm:$0xff]   ;;  %s3997_s28 = scalar_select %p552_p10, %s3961_s25, 1  ;;  %v847_v56 = vlaneseq }
  0x1a   : > { %3295 = vmatprep.subr.bf16.mxu1 %v3845_v1  ;;  %759 = vmatprep.subr.bf16.mxu0 %v3549_v0  ;;  %v3552_v3 = vld [vmem:[%s4695_s6 + $0xb0] ss:$12 sps:$4 sm:$0xff]   ;;  %v3553_v8 = vld [vmem:[%s4695_s6 + $0x94] ss:$12 sps:$4 sm:$0xff]   ;;  %v3556_v10 = vld [vmem:[%s4695_s6 + $0x98] ss:$12 sps:$4 sm:$0xff]  }
  0x1b   : > { %760 = vmatpush1.bf16.msra.mxu0 %v3551_v2  ;;  %s4710_s23 = sshll.u32 %s3997_s28, 4  ;;  %3296 = vmatpush3.bf16.msra.mxu1 %v3552_v3  ;;  %v3555_v9 = vld [vmem:[%s4695_s6 + $0x90] ss:$12 sps:$4 sm:$0xff]   ;;  %v3559_v12 = vld [vmem:[%s4695_s6 + $0x78] ss:$12 sps:$4 sm:$0xff]   ;;  %v3846_v26 = vmov 0   ;;  %s567_s20 = scalar_lea.vmem %s4693_s4, %s3997_s28 }
  0x1c   : > { %s4008_s17 = scalar_lea.vmem %s4728_s27, %s4710_s23  ;;  %3297 = vmatprep.subr.bf16.mxu1 %v3845_v1  ;;  %761 = vmatprep.subr.bf16.mxu0 %v3553_v8  ;;  %v3557_v11 = vld [vmem:[%s4695_s6 + $0x7c] ss:$12 sps:$4 sm:$0xff]   ;;  %v3560_v13 = vld [vmem:[%s4695_s6 + $0x80] ss:$12 sps:$4 sm:$0xff]   ;;  %v3561_v14 = vld [vmem:[%s4695_s6 + $0x64] ss:$12 sps:$4 sm:$0xff]   ;;  %s564_s24 = scalar_lea.vmem %s4692_s3, %s3997_s28 }
  0x1d   : > { %v4012_v4 = vld [vmem:[%s4008_s17] sm:$0xff]  ;;  %v4017_v6 = vld [vmem:[%s4008_s17 + $0x8] sm:$0xff]  ;;  %v3568_v19 = vld [vmem:[%s4695_s6 + $0x50] ss:$12 sps:$4 sm:$0xff]   ;;  %791 = vmatprep.mubr.bf16.mxu0 %v3846_v26  ;;  %vm3847_vm0 = vmmov 0   ;;  %vm867_vm1 = vcmask 261120  }
  0x1e   : > { %v575_v5 = vmul.f32 %v4012_v4, %v4012_v4  ;;  %v576_v7 = vmul.f32 %v4017_v6, %v4017_v6  ;;  %v3563_v15 = vld [vmem:[%s4695_s6 + $0x60] ss:$12 sps:$4 sm:$0xff]   ;;  %v3564_v16 = vld [vmem:[%s4695_s6 + $0x68] ss:$12 sps:$4 sm:$0xff]   ;;  %v3571_v21 = vld [vmem:[%s4695_s6 + $0x30] ss:$12 sps:$4 sm:$0xff]   ;;  %3311 = vmatprep.mubr.msk.bf16.mxu1 %vm3847_vm0, %v3845_v1 }
  0x1f   : > { %762 = vmatpush1.bf16.msra.mxu0 %v3555_v9  ;;  %3298 = vmatpush3.bf16.msra.mxu1 %v3556_v10  ;;  %v3565_v17 = vld [vmem:[%s4695_s6 + $0x4c] ss:$12 sps:$4 sm:$0xff]   ;;  %v3567_v18 = vld [vmem:[%s4695_s6 + $0x48] ss:$12 sps:$4 sm:$0xff]   ;;  %v3577_v27 = vld [vmem:[%s4695_s6 + $0x4] ss:$12 sps:$4 sm:$0xff]  }
  0x20   : > { %577 = vadd.xlane.f32.xlu0 %v575_v5  ;;  %3299 = vmatprep.subr.bf16.mxu1 %v3845_v1  ;;  %v3569_v20 = vld [vmem:[%s4695_s6 + $0x34] ss:$12 sps:$4 sm:$0xff]   ;;  %v3572_v22 = vld [vmem:[%s4695_s6 + $0x38] ss:$12 sps:$4 sm:$0xff]   ;;  %v3573_v23 = vld [vmem:[%s4695_s6 + $0x1c] ss:$12 sps:$4 sm:$0xff]  }
  0x21   : > { %763 = vmatprep.subr.bf16.mxu0 %v3557_v11  ;;  %v3575_v24 = vld [vmem:[%s4695_s6 + $0x18] ss:$12 sps:$4 sm:$0xff]   ;;  %v3576_v25 = vld [vmem:[%s4695_s6 + $0x20] ss:$12 sps:$4 sm:$0xff]   ;;  %v3580_v29 = vld [vmem:[%s4695_s6 + $0x8] ss:$12 sps:$4 sm:$0xff]  }
  0x22   : > { %v3579_v28 = vld [vmem:[%s4695_s6] ss:$12 sps:$4 sm:$0xff]   ;;  %s4715_s23 = smov 64   ;;  %v848_v57 = vshrl.u32 %v847_v56, 7  ;;  %v3851_v60 = vmov -1e+09  }
  0x23   : > { %764 = vmatpush1.bf16.msra.mxu0 %v3559_v12  ;;  %3300 = vmatpush3.bf16.msra.mxu1 %v3560_v13  ;;  %v3059_v39 = vld [vmem:[%s4694_s5] ss:$0 sm:$0xff]  ;;  %v851_v11 = vand.u32 127, %v847_v56  ;;  %vm917_vm9 = vcmask 130048   ;;  %vm1392_vm10 = vcmask 523264   ;;  %vm1395_vm11 = vcmask 785408  }
  0x24   : > { %579 = vadd.xlane.f32.xlu0 %v576_v7  ;;  %3301 = vmatprep.subr.bf16.mxu1 %v3845_v1  ;;  %v1777_v58 = vld [vmem:[%s567_s20] sm:$0x1]  ;;  %v858_v59 = vsub.s32 0, %v848_v57  ;;  %v849_v13 = vadd.s32 8, %v848_v57  ;;  %s4729_s20 = sshll.u32 %s3997_s28, 4  ;;  %s4731_s27 = smov 64  }
  0x25   : > { %765 = vmatprep.subr.bf16.mxu0 %v3561_v14  ;;  %vm1778_vm2 = vcmp.gt.f32.partialorder %v1777_v58, 0.5  ;;  %v846_v9 = vld [vmem:[%s564_s24] sm:$0x1]  ;;  %vm852_vm4 = vcmp.ge.s32.totalorder %v848_v57, %v851_v11  ;;  %v3095_v58 = vld [vmem:[%s4691_s2 + $0x38] sm:$0xff]  ;;  %s561_s24 = scalar_lea.vmem %s4690_s1, %s4729_s20  ;;  %s4730_s20 = smov 96  }
  0x26   : > { %v1779_v61 = vsel %vm1778_vm2, 0.0, %v3851_v60  ;;  %vm854_vm3 = vcmp.gt.f32.partialorder %v846_v9, 0.5  ;;  %v865_v14 = vld [vmem:[%s4691_s2] sm:$0xff]  ;;  %vm853_vm7 = vcmp.ge.s32.totalorder %v849_v13, %v851_v11 }
  0x27   : > { %766 = vmatpush1.bf16.msra.mxu0 %v3563_v15  ;;  %3302 = vmatpush3.bf16.msra.mxu1 %v3564_v16  ;;  %v4123_v62 = vrot.slane %v1779_v61, %v858_v59  ;;  %v855_v10 = vsel %vm854_vm3, 1, %v3846_v26 }
  0x28   : > { %767 = vmatprep.subr.bf16.mxu0 %v3565_v17  ;;  %3303 = vmatprep.subr.bf16.mxu1 %v3845_v1  ;;  %v859_v12 = vrot.slane %v855_v10, %v858_v59 }
  0x2a   : > { %vm860_vm5 = vcmp.eq.s32.totalorder %v859_v12, 1 }
  0x2b   : > { %768 = vmatpush1.bf16.msra.mxu0 %v3567_v18  ;;  %3304 = vmatpush3.bf16.msra.mxu1 %v3568_v19  ;;  %vm861_vm6 = vmand %vm852_vm4, %vm860_vm5  ;;  %v866_v19 = vld [vmem:[%s4691_s2 + $0x8] sm:$0xff] }
  0x2c   : > { %769 = vmatprep.subr.bf16.mxu0 %v3569_v20  ;;  %3305 = vmatprep.subr.bf16.mxu1 %v3845_v1  ;;  %v863_v16 = vsel %vm861_vm6, 0.0, %v3851_v60  ;;  %vm862_vm8 = vmand %vm853_vm7, %vm860_vm5 }
  0x2f   : > { %770 = vmatpush1.bf16.msra.mxu0 %v3571_v21  ;;  %3306 = vmatpush3.bf16.msra.mxu1 %v3572_v22  ;;  %v864_v22 = vsel %vm862_vm8, 0.0, %v3851_v60 }
  0x30   : > { %771 = vmatprep.subr.bf16.mxu0 %v3573_v23  ;;  %3307 = vmatprep.subr.bf16.mxu1 %v3845_v1 }
  0x33   : > { %772 = vmatpush1.bf16.msra.mxu0 %v3575_v24  ;;  %3308 = vmatpush3.bf16.msra.mxu1 %v3576_v25 }
  0x34   : > { %773 = vmatprep.subr.bf16.mxu0 %v3577_v27  ;;  %3309 = vmatprep.subr.bf16.mxu1 %v3845_v1 }
  0x37   : > { %774 = vmatpush1.bf16.msra.mxu0 %v3579_v28  ;;  %3310 = vmatpush3.bf16.msra.mxu1 %v3580_v29  ;;  %v3086_v29 = vld [vmem:[%s4691_s2 + $0x10] sm:$0xff] }
  0x38   : > { %3321 = vmatprep.subr.bf16.mxu1 %v3845_v1  ;;  %3315 = vmatprep.subr.bf16.mxu0 %v3845_v1 }
  0xa9   : > { %v578_v30 = vpop.xlane.xlu0 %577 }
  0xaa   : > { %v582_v31 = vmul.f32 0.0078125, %v578_v30 }
  0xac   : > { %v584_v32 = vadd.f32 1e-06, %v582_v31 }
  0xad   : > { %v580_v33 = vpop.xlane.xlu0 %579 }
  0xae   : > { %3693 = vrsqrt.f32 %v584_v32  ;;  %v583_v34 = vmul.f32 0.0078125, %v580_v33  ;;  %v3087_v33 = vld [vmem:[%s4691_s2 + $0x18] sm:$0xff] }
  0xb0   : > { %v585_v35 = vadd.f32 1e-06, %v583_v34 }
  0xb2   : > { %3695 = vrsqrt.f32 %v585_v35 }
  0xbb   : > { %v3694_v36 = vpop.eup %3693 }
  0xbc   : > { %v588_v37 = vmul.f32 %v3694_v36, %v4012_v4 }
  0xbe   : > { %v596_v41 = vmul.f32 %v3059_v39, %v588_v37 }
  0xbf   : > { %v3696_v38 = vpop.eup %3695 }
  0xc0   : > { %v589_v40 = vmul.f32 %v3696_v38, %v4017_v6 }
  0xc2   : > { %v597_v42 = vmul.f32 %v3059_v39, %v589_v40  ;;  %v3090_v39 = vld [vmem:[%s4691_s2 + $0x20] sm:$0xff] }
  0xc4   : > { %v598_v43 = vpack.c.bf16 %v597_v42, %v596_v41 }
  0xc6   : > { %792 = vmatmul.mubr.bf16.vlgmr.msra.gmra.mxu0 %v598_v43  ;;  %3312 = vmatmul.mubr.bf16.vlgmr.msra.gmra.mxu1 %v598_v43 }
  0xc7   : > { %3317 = vmatprep.mubr.msk.bf16.mxu0 %vm3847_vm0, %v3845_v1  ;;  %3323 = vmatprep.mubr.msk.bf16.mxu1 %vm3847_vm0, %v3845_v1 }
 0x186   : > { %v793_v44 = vpop.f32.mrf.mxu0  ;;  %v836_v45 = vpop.f32.mrf.mxu1 }
 0x188   : > { %v795_v46 = vpop.f32.mrf.mxu0  ;;  %v3313_v47 = vpop.f32.mrf.mxu1 }
 0x18a   : > { %v797_v48 = vpop.f32.mrf.mxu0  ;;  %v839_v49 = vpop.f32.mrf.mxu1 }
 0x18b   : > { %v4104_v50 = vpack.c.bf16 %v839_v49, %v836_v45  ;;  %v843_v55 = vpack.c.bf16 %v797_v48, %v793_v44  ;;  %v3091_v45 = vld [vmem:[%s4691_s2 + $0x28] sm:$0xff] }
 0x18c   : > { %v799_v51 = vpop.f32.mrf.mxu0  ;;  %v3314_v52 = vpop.f32.mrf.mxu1 }
 0x18d   : > { %v844_v53 = vpack.c.bf16 %v799_v51, %v795_v46  ;;  %3322 = vmatpush3.bf16.msra.mxu1 %v4104_v50  ;;  %v3094_v52 = vld [vmem:[%s4691_s2 + $0x30] sm:$0xff] }
 0x18e   : > { %3333 = vmatprep.subr.bf16.mxu1 %v3845_v1 }
 0x18f   : > { %1119 = vrot.lane.b32.xlu0 %v844_v53, %s4715_s23  ;;  %992 = vrot.lane.b32.xlu1 %v844_v53, %s4717_s18  ;;  %v872_v54 = vsel %vm867_vm1, %v844_v53, 0 }
 0x190   : > { %3316 = vmatpush3.bf16.xpose.msra.mxu0 %v872_v54 }
 0x191   : > { %3327 = vmatprep.subr.bf16.mxu0 %v3845_v1 }
 0x193   : > { %989 = vrot.lane.b32.xlu1 %v843_v55, %s4717_s18 }
 0x197   : > { %1117 = vrot.lane.b32.xlu1 %v843_v55, %s4715_s23  ;;  %3318 = vmatmul.mubr.msk.bf16.vlgmr.msra.gmra.mxu0 %vm867_vm1, %v843_v55 }
 0x198   : > { %3329 = vmatprep.mubr.msk.bf16.mxu0 %vm3847_vm0, %v3845_v1 }
 0x19b   : > { %1245 = vrot.lane.b32.xlu1 %v844_v53, %s4713_s19 }
 0x19f   : > { %1243 = vrot.lane.b32.xlu1 %v843_v55, %s4713_s19 }
 0x201   : > { %v993_v63 = vpop.permute.xlu1 %992  ;;  %v1120_v3 = vpop.permute.xlu0 %1119 }
 0x202   : > { %v998_v0 = vsel %vm867_vm1, %v993_v63, 0  ;;  %v1125_v5 = vsel %vm867_vm1, %v1120_v3, 0 }
 0x203   : > { %3328 = vmatpush3.bf16.xpose.msra.mxu0 %v998_v0 }
 0x204   : > { %3339 = vmatprep.subr.bf16.mxu0 %v3845_v1 }
 0x205   : > { %v990_v2 = vpop.permute.xlu1 %989 }
 0x209   : > { %v1118_v4 = vpop.permute.xlu1 %1117 }
 0x20a   : > { %3330 = vmatmul.mubr.msk.bf16.vlgmr.msra.gmra.mxu0 %vm867_vm1, %v990_v2 }
 0x20b   : > { %3340 = vmatpush3.bf16.xpose.msra.mxu0 %v1125_v5  ;;  %3341 = vmatprep.mubr.msk.bf16.mxu0 %vm3847_vm0, %v3845_v1 }
 0x20c   : > { %3351 = vmatprep.subr.bf16.mxu0 %v3845_v1 }
 0x20d   : > { %v1246_v6 = vpop.permute.xlu1 %1245 }
 0x20e   : > { %v1251_v7 = vsel %vm867_vm1, %v1246_v6, 0 }
 0x211   : > { %v1244_v8 = vpop.permute.xlu1 %1243 }
 0x212   : > { %3342 = vmatmul.mubr.msk.bf16.vlgmr.msra.gmra.mxu0 %vm867_vm1, %v1118_v4 }
 0x213   : > { %3352 = vmatpush3.bf16.xpose.msra.mxu0 %v1251_v7  ;;  %3353 = vmatprep.mubr.msk.bf16.mxu0 %vm3847_vm0, %v3845_v1 }
 0x214   : > { %3363 = vmatprep.subr.bf16.mxu0 %v3845_v1 }
 0x21a   : > { %3354 = vmatmul.mubr.msk.bf16.vlgmr.msra.gmra.mxu0 %vm867_vm1, %v1244_v8 }
 0x21b   : > { %3379 = vmatprep.mubr.msk.bf16.mxu0 %vm3847_vm0, %v3845_v1 }
 0x257   : > { %v908_v15 = vpop.f32.mrf.mxu0 }
 0x258   : > { %v909_v17 = vadd.f32 %v908_v15, %v865_v14 }
 0x259   : > { %v3319_v18 = vpop.f32.mrf.mxu0 }
 0x25a   : > { %v915_v20 = vadd.f32 %v909_v17, %v863_v16 }
 0x25b   : > { %v911_v21 = vpop.f32.mrf.mxu0 }
 0x25c   : > { %v912_v23 = vadd.f32 %v911_v21, %v866_v19  ;;  %v918_v24 = vsel %vm917_vm9, %v915_v20, -inf }
 0x25d   : > { %919 = vmax.xlane.f32.xlu1 %v918_v24  ;;  %v3320_v25 = vpop.f32.mrf.mxu0 }
 0x25e   : > { %v916_v27 = vadd.f32 %v912_v23, %v864_v22 }
 0x260   : > { %v921_v28 = vsel %vm917_vm9, %v916_v27, -inf }
 0x261   : > { %922 = vmax.xlane.f32.xlu0 %v921_v28 }
 0x2ca   : > { %v1034_v30 = vpop.f32.mrf.mxu0 }
 0x2cb   : > { %v1035_v31 = vadd.f32 %v3086_v29, %v1034_v30 }
 0x2cc   : > { %v3331_v32 = vpop.f32.mrf.mxu0 }
 0x2cd   : > { %v1041_v34 = vadd.f32 %v1035_v31, %v863_v16 }
 0x2ce   : > { %v1037_v35 = vpop.f32.mrf.mxu0 }
 0x2cf   : > { %v1038_v36 = vadd.f32 %v3087_v33, %v1037_v35  ;;  %v1043_v37 = vsel %vm917_vm9, %v1041_v34, -inf }
 0x2d0   : > { %1044 = vmax.xlane.f32.xlu1 %v1043_v37  ;;  %v3332_v38 = vpop.f32.mrf.mxu0 }
 0x2d1   : > { %v1042_v40 = vadd.f32 %v1038_v36, %v864_v22 }
 0x2d2   : > { %v1161_v41 = vpop.f32.mrf.mxu0 }
 0x2d3   : > { %v1162_v42 = vadd.f32 %v3090_v39, %v1161_v41  ;;  %v1046_v43 = vsel %vm917_vm9, %v1042_v40, -inf }
 0x2d4   : > { %1047 = vmax.xlane.f32.xlu1 %v1046_v43  ;;  %v3343_v44 = vpop.f32.mrf.mxu0 }
 0x2d5   : > { %v1168_v46 = vadd.f32 %v1162_v42, %v863_v16 }
 0x2d6   : > { %v1164_v47 = vpop.f32.mrf.mxu0 }
 0x2d7   : > { %v1165_v48 = vadd.f32 %v3091_v45, %v1164_v47  ;;  %v1170_v49 = vsel %vm917_vm9, %v1168_v46, -inf }
 0x2d8   : > { %1171 = vmax.xlane.f32.xlu0 %v1170_v49  ;;  %v3344_v51 = vpop.f32.mrf.mxu0 }
 0x2d9   : > { %v1169_v53 = vadd.f32 %v1165_v48, %v864_v22 }
 0x2da   : > { %v1287_v54 = vpop.f32.mrf.mxu0 }
 0x2db   : > { %v1288_v55 = vadd.f32 %v3094_v52, %v1287_v54  ;;  %v1173_v56 = vsel %vm917_vm9, %v1169_v53, -inf }
 0x2dc   : > { %1174 = vmax.xlane.f32.xlu1 %v1173_v56  ;;  %v3355_v57 = vpop.f32.mrf.mxu0 }
 0x2dd   : > { %v1294_v59 = vadd.f32 %v1288_v55, %v863_v16 }
 0x2de   : > { %v1290_v60 = vpop.f32.mrf.mxu0 }
 0x2df   : > { %v1291_v61 = vadd.f32 %v3095_v58, %v1290_v60  ;;  %v1296_v63 = vsel %vm917_vm9, %v1294_v59, -inf }
 0x2e0   : > { %1297 = vmax.xlane.f32.xlu0 %v1296_v63  ;;  %v3356_v0 = vpop.f32.mrf.mxu0 }
 0x2e1   : > { %v4176_v2 = vadd.f32 %v1291_v61, %v864_v22 }
 0x2e3   : > { %v1299_v3 = vsel %vm917_vm9, %v4176_v2, -inf }
 0x2e4   : > { %1300 = vmax.xlane.f32.xlu1 %v1299_v3 }
 0x2e6   : > { %v920_v4 = vpop.xlane.xlu1 %919 }
 0x2e7   : > { %v924_v5 = vsub.f32 %v915_v20, %v920_v4 }
 0x2e9   : > { %v926_v6 = vmul.f32 1.442695, %v924_v5 }
 0x2ea   : > { %v923_v7 = vpop.xlane.xlu0 %922 }
 0x2eb   : > { %3697 = vpow2.f32 %v926_v6  ;;  %v925_v8 = vsub.f32 %v916_v27, %v923_v7 }
 0x2ed   : > { %v928_v9 = vmul.f32 1.442695, %v925_v8 }
 0x2ef   : > { %3699 = vpow2.f32 %v928_v9 }
 0x2f8   : > { %v3698_v10 = vpop.eup %3697 }
 0x2f9   : > { %v930_v11 = vsel %vm917_vm9, %v3698_v10, 0.0 }
 0x2fa   : > { %931 = vadd.xlane.f32.xlu0 %v930_v11 }
 0x2fc   : > { %v3700_v12 = vpop.eup %3699 }
 0x2fd   : > { %v933_v13 = vsel %vm917_vm9, %v3700_v12, 0.0 }
 0x2fe   : > { %934 = vadd.xlane.f32.xlu1 %v933_v13 }
 0x359   : > { %v1045_v14 = vpop.xlane.xlu1 %1044 }
 0x35a   : > { %v1049_v15 = vsub.f32 %v1041_v34, %v1045_v14 }
 0x35c   : > { %v1051_v16 = vmul.f32 1.442695, %v1049_v15 }
 0x35d   : > { %v1048_v17 = vpop.xlane.xlu1 %1047 }
 0x35e   : > { %3701 = vpow2.f32 %v1051_v16  ;;  %v1050_v18 = vsub.f32 %v1042_v40, %v1048_v17 }
 0x360   : > { %v1053_v19 = vmul.f32 1.442695, %v1050_v18 }
 0x361   : > { %v1172_v20 = vpop.xlane.xlu0 %1171 }
 0x362   : > { %3703 = vpow2.f32 %v1053_v19  ;;  %v1176_v21 = vsub.f32 %v1168_v46, %v1172_v20 }
 0x364   : > { %v1178_v22 = vmul.f32 1.442695, %v1176_v21  ;;  %v3581_v21 = vld [vmem:[%s4696_s7 + $0x38] sm:$0xff]  }
 0x365   : > { %v1175_v23 = vpop.xlane.xlu1 %1174  ;;  %3364 = vmatpush3.bf16.msra.mxu0 %v3581_v21  ;;  %v3612_v21 = vld [vmem:[%s4699_s10 + $0x14] ss:$8 sps:$4 sm:$0xff]  }
 0x366   : > { %3705 = vpow2.f32 %v1178_v22  ;;  %v1177_v24 = vsub.f32 %v1169_v53, %v1175_v23  ;;  %3365 = vmatprep.subr.bf16.mxu0 %v3845_v1 }
 0x368   : > { %v1180_v25 = vmul.f32 1.442695, %v1177_v24  ;;  %v3582_v24 = vld [vmem:[%s4696_s7 + $0x30] sm:$0xff]  }
 0x369   : > { %v1298_v27 = vpop.xlane.xlu0 %1297  ;;  %3366 = vmatpush3.bf16.msra.mxu0 %v3582_v24  ;;  %v572_v24 = vld [vmem:[%s561_s24 + $0x8] sm:$0xff] }
 0x36a   : > { %3707 = vpow2.f32 %v1180_v25  ;;  %v1302_v28 = vsub.f32 %v1294_v59, %v1298_v27  ;;  %3367 = vmatprep.subr.bf16.mxu0 %v3845_v1 }
 0x36b   : > { %v3702_v29 = vpop.eup %3701 }
 0x36c   : > { %v1304_v30 = vmul.f32 1.442695, %v1302_v28  ;;  %v1055_v31 = vsel %vm917_vm9, %v3702_v29, 0.0  ;;  %v3583_v28 = vld [vmem:[%s4696_s7 + $0x28] sm:$0xff]  }
 0x36d   : > { %1056 = vadd.xlane.f32.xlu0 %v1055_v31  ;;  %v1301_v40 = vpop.xlane.xlu1 %1300  ;;  %3368 = vmatpush3.bf16.msra.mxu0 %v3583_v28  ;;  %v3616_v28 = vld [vmem:[%s4699_s10 + $0x4] ss:$8 sps:$4 sm:$0xff]  }
 0x36e   : > { %3709 = vpow2.f32 %v1304_v30  ;;  %v1303_v45 = vsub.f32 %v4176_v2, %v1301_v40  ;;  %3369 = vmatprep.subr.bf16.mxu0 %v3845_v1 }
 0x36f   : > { %v3704_v32 = vpop.eup %3703 }
 0x370   : > { %v1058_v33 = vsel %vm917_vm9, %v3704_v32, 0.0  ;;  %v1306_v49 = vmul.f32 1.442695, %v1303_v45 }
 0x371   : > { %1059 = vadd.xlane.f32.xlu1 %v1058_v33  ;;  %v3585_v33 = vld [vmem:[%s4696_s7 + $0x18] sm:$0xff]  }
 0x373   : > { %v3706_v34 = vpop.eup %3705 }
 0x374   : > { %v1182_v35 = vsel %vm917_vm9, %v3706_v34, 0.0 }
 0x375   : > { %1183 = vadd.xlane.f32.xlu0 %v1182_v35  ;;  %v3587_v35 = vld [vmem:[%s4696_s7 + $0x8] sm:$0xff]  }
 0x377   : > { %v3708_v36 = vpop.eup %3707 }
 0x378   : > { %v1185_v37 = vsel %vm917_vm9, %v3708_v36, 0.0 }
 0x379   : > { %1186 = vadd.xlane.f32.xlu1 %v1185_v37 }
 0x37b   : > { %v3710_v38 = vpop.eup %3709 }
 0x37c   : > { %v1308_v39 = vsel %vm917_vm9, %v3710_v38, 0.0 }
 0x37d   : > { %1309 = vadd.xlane.f32.xlu0 %v1308_v39 }
 0x383   : > { %v932_v41 = vpop.xlane.xlu0 %931 }
 0x384   : > { %3711 = vrcp.f32 %v932_v41 }
 0x387   : > { %v935_v42 = vpop.xlane.xlu1 %934 }
 0x388   : > { %3713 = vrcp.f32 %v935_v42 }
 0x389   : > { %3715 = vpow2.f32 %v1306_v49 }
 0x38a   : > { %1193 = vrot.lane.b32.xlu1 %v4104_v50, %s4715_s23 }
 0x391   : > { %v3712_v43 = vpop.eup %3711 }
 0x392   : > { %v938_v46 = vmul.f32 %v3712_v43, %v3698_v10 }
 0x393   : > { %1067 = vrot.lane.b32.xlu0 %v4104_v50, %s4717_s18 }
 0x395   : > { %v3714_v44 = vpop.eup %3713 }
 0x396   : > { %v939_v47 = vmul.f32 %v3714_v44, %v3700_v12  ;;  %v3716_v51 = vpop.eup %3715 }
 0x397   : > { %v1311_v52 = vsel %vm917_vm9, %v3716_v51, 0.0 }
 0x398   : > { %v940_v48 = vpack.c.bf16 %v939_v47, %v938_v46 }
 0x39a   : > { %3324 = vmatmul.mubr.msk.bf16.vlgmr.msra.gmra.mxu1 %vm917_vm9, %v940_v48 }
 0x39b   : > { %3335 = vmatprep.mubr.msk.bf16.mxu1 %vm3847_vm0, %v3845_v1 }
 0x3ae   : > { %1312 = vadd.xlane.f32.xlu1 %v1311_v52 }
 0x3bf   : > { %1319 = vrot.lane.b32.xlu1 %v4104_v50, %s4713_s19 }
 0x3f6   : > { %v1057_v53 = vpop.xlane.xlu0 %1056 }
 0x3f7   : > { %3717 = vrcp.f32 %v1057_v53 }
 0x3fa   : > { %v1060_v54 = vpop.xlane.xlu1 %1059 }
 0x3fb   : > { %3719 = vrcp.f32 %v1060_v54 }
 0x3fe   : > { %v1184_v55 = vpop.xlane.xlu0 %1183 }
 0x3ff   : > { %3721 = vrcp.f32 %v1184_v55 }
 0x402   : > { %v1187_v56 = vpop.xlane.xlu1 %1186 }
 0x403   : > { %3723 = vrcp.f32 %v1187_v56 }
 0x404   : > { %v3718_v57 = vpop.eup %3717 }
 0x405   : > { %v1063_v60 = vmul.f32 %v3718_v57, %v3702_v29 }
 0x406   : > { %v1310_v58 = vpop.xlane.xlu0 %1309  ;;  %v1194_v50 = vpop.permute.xlu1 %1193 }
 0x407   : > { %3725 = vrcp.f32 %v1310_v58 }
 0x408   : > { %v3720_v59 = vpop.eup %3719 }
 0x409   : > { %v1064_v61 = vmul.f32 %v3720_v59, %v3704_v32  ;;  %v3584_v32 = vld [vmem:[%s4696_s7 + $0x20] sm:$0xff]   ;;  %v3589_v59 = vld [vmem:[%s4699_s10 + $0x70] ss:$8 sps:$4 sm:$0xff]  }
 0x40a   : > { %v1068_v63 = vpop.permute.xlu0 %1067  ;;  %3370 = vmatpush3.bf16.msra.mxu0 %v3584_v32  ;;  %v3619_v32 = vld [vmem:[%s4698_s9 + $0x8] sm:$0xff]  }
 0x40b   : > { %3334 = vmatpush3.bf16.msra.mxu1 %v1068_v63  ;;  %v1065_v0 = vpack.c.bf16 %v1064_v61, %v1063_v60  ;;  %3371 = vmatprep.subr.bf16.mxu0 %v3845_v1  ;;  %v3591_v60 = vld [vmem:[%s4699_s10 + $0x74] ss:$8 sps:$4 sm:$0xff]   ;;  %v3594_v61 = vld [vmem:[%s4699_s10 + $0x64] ss:$8 sps:$4 sm:$0xff]  }
 0x40c   : > { %3345 = vmatprep.subr.bf16.mxu1 %v3845_v1  ;;  %v3722_v2 = vpop.eup %3721  ;;  %v3601_v63 = vld [vmem:[%s4698_s9 + $0x38] sm:$0xff]  }
 0x40d   : > { %v1190_v4 = vmul.f32 %v3722_v2, %v3706_v34  ;;  %v3586_v34 = vld [vmem:[%s4696_s7 + $0x10] sm:$0xff]  }
 0x40e   : > { %3336 = vmatmul.mubr.msk.bf16.vlgmr.msra.gmra.mxu1 %vm917_vm9, %v1065_v0  ;;  %3372 = vmatpush3.bf16.msra.mxu0 %v3585_v33  ;;  %v3592_v0 = vld [vmem:[%s4699_s10 + $0x60] ss:$8 sps:$4 sm:$0xff]   ;;  %v3597_v2 = vld [vmem:[%s4699_s10 + $0x54] ss:$8 sps:$4 sm:$0xff]  }
 0x40f   : > { %3346 = vmatpush3.bf16.msra.mxu1 %v1194_v50  ;;  %3347 = vmatprep.mubr.msk.bf16.mxu1 %vm3847_vm0, %v3845_v1  ;;  %v3595_v50 = vld [vmem:[%s4699_s10 + $0x50] ss:$8 sps:$4 sm:$0xff]   ;;  %v3620_v33 = vld [vmem:[%s4698_s9] sm:$0xff]  }
 0x410   : > { %v3724_v3 = vpop.eup %3723  ;;  %3357 = vmatprep.subr.bf16.mxu1 %v3845_v1  ;;  %3373 = vmatprep.subr.bf16.mxu0 %v3845_v1 }
 0x411   : > { %v1191_v5 = vmul.f32 %v3724_v3, %v3708_v36  ;;  %v3588_v36 = vld [vmem:[%s4696_s7] sm:$0xff]  }
 0x412   : > { %3374 = vmatpush3.bf16.msra.mxu0 %v3586_v34  ;;  %v3600_v3 = vld [vmem:[%s4699_s10 + $0x44] ss:$8 sps:$4 sm:$0xff]  }
 0x413   : > { %v1192_v6 = vpack.c.bf16 %v1191_v5, %v1190_v4  ;;  %3375 = vmatprep.subr.bf16.mxu0 %v3845_v1  ;;  %v3598_v4 = vld [vmem:[%s4699_s10 + $0x40] ss:$8 sps:$4 sm:$0xff]   ;;  %v3604_v5 = vld [vmem:[%s4699_s10 + $0x34] ss:$8 sps:$4 sm:$0xff]  }
 0x414   : > { %v3726_v9 = vpop.eup %3725 }
 0x415   : > { %v1316_v11 = vmul.f32 %v3726_v9, %v3710_v38 }
 0x416   : > { %3348 = vmatmul.mubr.msk.bf16.vlgmr.msra.gmra.mxu1 %vm917_vm9, %v1192_v6  ;;  %3376 = vmatpush3.bf16.msra.mxu0 %v3587_v35  ;;  %v3602_v6 = vld [vmem:[%s4699_s10 + $0x30] ss:$8 sps:$4 sm:$0xff]  }
 0x417   : > { %3359 = vmatprep.mubr.msk.bf16.mxu1 %vm3847_vm0, %v3845_v1  ;;  %3377 = vmatprep.subr.bf16.mxu0 %v3845_v1 }
 0x41a   : > { %3378 = vmatpush3.bf16.msra.mxu0 %v3588_v36 }
 0x41b   : > { %1732 = vmatprep.subr.bf16.mxu0 %v3591_v60 }
 0x437   : > { %v1313_v7 = vpop.xlane.xlu1 %1312 }
 0x438   : > { %3727 = vrcp.f32 %v1313_v7 }
 0x43b   : > { %v1320_v8 = vpop.permute.xlu1 %1319 }
 0x43c   : > { %3358 = vmatpush3.bf16.msra.mxu1 %v1320_v8  ;;  %v3781_v8 = vld [vmem:[%s4008_s17] sm:$0xff] }
 0x43d   : > { %3383 = vmatprep.subr.bf16.mxu1 %v3845_v1 }
 0x445   : > { %v3728_v10 = vpop.eup %3727 }
 0x446   : > { %v1317_v12 = vmul.f32 %v3728_v10, %v3716_v51 }
 0x448   : > { %v1318_v13 = vpack.c.bf16 %v1317_v12, %v1316_v11 }
 0x44a   : > { %3360 = vmatmul.mubr.msk.bf16.vlgmr.msra.gmra.mxu1 %vm917_vm9, %v1318_v13  ;;  %v3782_v13 = vld [vmem:[%s4008_s17 + $0x8] sm:$0xff] }
 0x44b   : > { %3399 = vmatprep.mubr.msk.bf16.mxu1 %vm3847_vm0, %v3845_v1  ;;  %3384 = vmatpush3.bf16.msra.mxu1 %v3601_v63 }
 0x44c   : > { %3385 = vmatprep.subr.bf16.mxu1 %v3845_v1 }
 0x45a   : > { %v978_v14 = vpop.f32.mrf.mxu1 }
 0x45c   : > { %v3325_v15 = vpop.f32.mrf.mxu1 }
 0x45e   : > { %v981_v16 = vpop.f32.mrf.mxu1 }
 0x460   : > { %v3326_v17 = vpop.f32.mrf.mxu1 }
 0x461   : > { %v3605_v17 = vld [vmem:[%s4698_s9 + $0x30] sm:$0xff]  }
 0x462   : > { %3386 = vmatpush3.bf16.msra.mxu1 %v3605_v17 }
 0x463   : > { %3387 = vmatprep.subr.bf16.mxu1 %v3845_v1 }
 0x4ce   : > { %v1107_v18 = vpop.f32.mrf.mxu1 }
 0x4d0   : > { %v3337_v19 = vpop.f32.mrf.mxu1 }
 0x4d1   : > { %v3606_v19 = vld [vmem:[%s4699_s10 + $0x20] ss:$8 sps:$4 sm:$0xff]  }
 0x4d2   : > { %v1110_v20 = vpop.f32.mrf.mxu1 }
 0x4d3   : > { %v3519_v22 = vpack.i.bf16 %v1110_v20, %v1107_v18  ;;  %v3608_v18 = vld [vmem:[%s4699_s10 + $0x24] ss:$8 sps:$4 sm:$0xff]  }
 0x4d4   : > { %v3338_v23 = vpop.f32.mrf.mxu1  ;;  %v3609_v20 = vld [vmem:[%s4698_s9 + $0x28] sm:$0xff]  }
 0x4d5   : > { %3520 = vrot.lane.b32.xlu0 %v3519_v22, %s4713_s19  ;;  %3388 = vmatpush3.bf16.msra.mxu1 %v3609_v20  ;;  %v3610_v22 = vld [vmem:[%s4699_s10 + $0x10] ss:$8 sps:$4 sm:$0xff]   ;;  %v571_v23 = vld [vmem:[%s561_s24] sm:$0xff]  ;;  %s3204_s24 = sshll.u32 %s3961_s25, 8 }
 0x4d6   : > { %v1233_v25 = vpop.f32.mrf.mxu1  ;;  %3389 = vmatprep.subr.bf16.mxu1 %v3845_v1 }
 0x4d8   : > { %v3349_v27 = vpop.f32.mrf.mxu1 }
 0x4d9   : > { %v3614_v27 = vld [vmem:[%s4699_s10] ss:$8 sps:$4 sm:$0xff]  }
 0x4da   : > { %v1236_v29 = vpop.f32.mrf.mxu1 }
 0x4db   : > { %v3524_v30 = vpack.i.bf16 %v1236_v29, %v1233_v25  ;;  %v3613_v25 = vld [vmem:[%s4698_s9 + $0x20] sm:$0xff]   ;;  %v3617_v29 = vld [vmem:[%s4698_s9 + $0x18] sm:$0xff]  }
 0x4dc   : > { %v3350_v31 = vpop.f32.mrf.mxu1  ;;  %3390 = vmatpush3.bf16.msra.mxu1 %v3613_v25 }
 0x4dd   : > { %3525 = vrot.lane.b32.xlu1 %v3524_v30, %s4715_s23  ;;  %v573_v30 = vpack.c.bf16 %v572_v24, %v571_v23  ;;  %3391 = vmatprep.subr.bf16.mxu1 %v3845_v1  ;;  %v3618_v31 = vld [vmem:[%s4698_s9 + $0x10] sm:$0xff]  }
 0x4e0   : > { %3392 = vmatpush3.bf16.msra.mxu1 %v3617_v29 }
 0x4e1   : > { %3393 = vmatprep.subr.bf16.mxu1 %v3845_v1 }
 0x4e4   : > { %3394 = vmatpush3.bf16.msra.mxu1 %v3618_v31 }
 0x4e5   : > { %3395 = vmatprep.subr.bf16.mxu1 %v3845_v1 }
 0x4e8   : > { %3396 = vmatpush3.bf16.msra.mxu1 %v3619_v32 }
 0x4e9   : > { %3397 = vmatprep.subr.bf16.mxu1 %v3845_v1 }
 0x4ec   : > { %3398 = vmatpush3.bf16.msra.mxu1 %v3620_v33 }
 0x4ed   : > { %3403 = vmatprep.subr.bf16.mxu1 %v3845_v1 }
 0x50a   : > { %v1359_v37 = vpop.f32.mrf.mxu1 }
 0x50c   : > { %v3361_v38 = vpop.f32.mrf.mxu1 }
 0x50e   : > { %v1362_v39 = vpop.f32.mrf.mxu1 }
 0x50f   : > { %v3529_v40 = vpack.i.bf16 %v1362_v39, %v1359_v37 }
 0x510   : > { %v3362_v41 = vpop.f32.mrf.mxu1 }
 0x511   : > { %3530 = vrot.lane.b32.xlu0 %v3529_v40, %s4717_s18  ;;  %s4645_s18 = scalar_lea.hbm %s4705_s16, %s3204_s24 }
 0x547   : > { %v3521_v42 = vpop.permute.xlu0 %3520 }
 0x548   : > { %v3523_v44 = vunpack.i.h.bf16 %v3521_v42  ;;  %v3522_v45 = vunpack.i.l.bf16 %v3521_v42 }
 0x54a   : > { %v1391_v49 = vsel %vm867_vm1, %v981_v16, %v3523_v44  ;;  %v1390_v51 = vsel %vm867_vm1, %v978_v14, %v3522_v45 }
 0x54f   : > { %v3526_v43 = vpop.permute.xlu1 %3525 }
 0x550   : > { %v3528_v46 = vunpack.i.h.bf16 %v3526_v43  ;;  %v3527_v47 = vunpack.i.l.bf16 %v3526_v43  ;;  %v3106_v43 = vld [vmem:[%s4697_s8] ss:$0 sm:$0xff] }
 0x552   : > { %v1394_v54 = vsel %vm1392_vm10, %v1391_v49, %v3528_v46  ;;  %v1393_v55 = vsel %vm1392_vm10, %v1390_v51, %v3527_v47 }
 0x583   : > { %v3531_v48 = vpop.permute.xlu0 %3530 }
 0x584   : > { %v3533_v52 = vunpack.i.h.bf16 %v3531_v48  ;;  %v3532_v53 = vunpack.i.l.bf16 %v3531_v48 }
 0x586   : > { %v1396_v56 = vsel %vm1395_vm11, %v1393_v55, %v3532_v53  ;;  %v1397_v57 = vsel %vm1395_vm11, %v1394_v54, %v3533_v52 }
 0x587   : > { %v1398_v58 = vpack.c.bf16 %v1397_v57, %v1396_v56 }
 0x589   : > { %3380 = vmatmul.mubr.bf16.vlgmr.msra.gmra.mxu0 %v1398_v58 }
 0x58a   : > { %1764 = vmatprep.mubr.bf16.mxu0 %v3846_v26  ;;  %1733 = vmatpush1.bf16.msra.mxu0 %v3589_v59 }
 0x58b   : > { %1734 = vmatprep.subr.bf16.mxu0 %v3594_v61 }
 0x58e   : > { %1735 = vmatpush1.bf16.msra.mxu0 %v3592_v0 }
 0x58f   : > { %1736 = vmatprep.subr.bf16.mxu0 %v3597_v2 }
 0x592   : > { %1737 = vmatpush1.bf16.msra.mxu0 %v3595_v50 }
 0x593   : > { %1738 = vmatprep.subr.bf16.mxu0 %v3600_v3 }
 0x596   : > { %1739 = vmatpush1.bf16.msra.mxu0 %v3598_v4 }
 0x597   : > { %1740 = vmatprep.subr.bf16.mxu0 %v3604_v5 }
 0x59a   : > { %1741 = vmatpush1.bf16.msra.mxu0 %v3602_v6 }
 0x59b   : > { %1742 = vmatprep.subr.bf16.mxu0 %v3608_v18 }
 0x59e   : > { %1743 = vmatpush1.bf16.msra.mxu0 %v3606_v19 }
 0x59f   : > { %1744 = vmatprep.subr.bf16.mxu0 %v3612_v21 }
 0x5a2   : > { %1745 = vmatpush1.bf16.msra.mxu0 %v3610_v22 }
 0x5a3   : > { %1746 = vmatprep.subr.bf16.mxu0 %v3616_v28 }
 0x5a6   : > { %1747 = vmatpush1.bf16.msra.mxu0 %v3614_v27 }
 0x5a7   : > { %3427 = vmatprep.subr.bf16.mxu0 %v3845_v1 }
 0x5a9   : > { %1765 = vmatmul.mubr.bf16.vlgmr.msra.gmra.mxu0 %v573_v30 }
 0x5aa   : > { %3429 = vmatprep.mubr.msk.bf16.mxu0 %vm3847_vm0, %v3845_v1 }
 0x649   : > { %v1497_v7 = vpop.f32.mrf.mxu0 }
 0x64a   : > { %v4286_v9 = vadd.f32 %v3781_v8, %v1497_v7 }
 0x64b   : > { %v3381_v10 = vpop.f32.mrf.mxu0 }
 0x64c   : > { %v1507_v11 = vmul.f32 %v4286_v9, %v4286_v9 }
 0x64d   : > { %v1500_v12 = vpop.f32.mrf.mxu0 }
 0x64e   : > { %v4291_v14 = vadd.f32 %v3782_v13, %v1500_v12  ;;  %1509 = vadd.xlane.f32.xlu1 %v1507_v11 }
 0x64f   : > { %v3382_v15 = vpop.f32.mrf.mxu0 }
 0x650   : > { %v1508_v16 = vmul.f32 %v4291_v14, %v4291_v14 }
 0x652   : > { %1511 = vadd.xlane.f32.xlu0 %v1508_v16 }
 0x669   : > { %v1766_v48 = vpop.f32.mrf.mxu0 }
 0x66b   : > { %v1768_v49 = vpop.f32.mrf.mxu0 }
 0x66d   : > { %v1770_v51 = vpop.f32.mrf.mxu0 }
 0x66e   : > { %v1775_v52 = vpack.c.bf16 %v1770_v51, %v1766_v48 }
 0x66f   : > { %v1772_v56 = vpop.f32.mrf.mxu0 }
 0x670   : > { %v1790_v53 = vsel %vm867_vm1, %v1775_v52, 0  ;;  %v4358_v59 = vpack.c.bf16 %v1772_v56, %v1768_v49 }
 0x6d7   : > { %v1510_v34 = vpop.xlane.xlu1 %1509 }
 0x6d8   : > { %v1513_v35 = vmul.f32 0.0078125, %v1510_v34 }
 0x6da   : > { %v1515_v36 = vadd.f32 1e-06, %v1513_v35 }
 0x6db   : > { %v1512_v37 = vpop.xlane.xlu0 %1511 }
 0x6dc   : > { %3729 = vrsqrt.f32 %v1515_v36  ;;  %v1514_v38 = vmul.f32 0.0078125, %v1512_v37 }
 0x6de   : > { %v1516_v39 = vadd.f32 1e-06, %v1514_v38 }
 0x6e0   : > { %3731 = vrsqrt.f32 %v1516_v39 }
 0x6e9   : > { %v3730_v40 = vpop.eup %3729 }
 0x6ea   : > { %v1519_v41 = vmul.f32 %v3730_v40, %v4286_v9 }
 0x6ec   : > { %v1527_v45 = vmul.f32 %v3106_v43, %v1519_v41 }
 0x6ed   : > { %v3732_v42 = vpop.eup %3731 }
 0x6ee   : > { %v1520_v44 = vmul.f32 %v3732_v42, %v4291_v14 }
 0x6f0   : > { %v1528_v46 = vmul.f32 %v3106_v43, %v1520_v44 }
 0x6f2   : > { %v1529_v47 = vpack.c.bf16 %v1528_v46, %v1527_v45 }
 0x6f4   : > { %3400 = vmatmul.mubr.bf16.vlgmr.msra.gmra.mxu1 %v1529_v47 }
 0x6f5   : > { %3405 = vmatprep.mubr.msk.bf16.mxu1 %vm3847_vm0, %v3845_v1  ;;  %3404 = vmatpush3.bf16.xpose.msra.mxu1 %v1790_v53 }
 0x6f6   : > { %3409 = vmatprep.subr.bf16.mxu1 %v3845_v1 }
 0x7b4   : > { %v1628_v54 = vpop.f32.mrf.mxu1 }
 0x7b6   : > { %v3401_v55 = vpop.f32.mrf.mxu1 }
 0x7b8   : > { %v1631_v57 = vpop.f32.mrf.mxu1 }
 0x7b9   : > { %v1635_v58 = vpack.c.bf16 %v1631_v57, %v1628_v54 }
 0x7ba   : > { %v3402_v60 = vpop.f32.mrf.mxu1 }
 0x7bb   : > { %3406 = vmatmul.mubr.msk.bf16.vlgmr.msra.gmra.mxu1 %vm867_vm1, %v1635_v58 }
 0x7bc   : > { %3410 = vmatpush3.bf16.msra.mxu1 %v4358_v59  ;;  %3411 = vmatprep.mubr.msk.bf16.mxu1 %vm3847_vm0, %v3845_v1 }
 0x7bd   : > { %3415 = vmatprep.subr.bf16.mxu1 %v3845_v1 }
 0x87b   : > { %v1826_v61 = vpop.f32.mrf.mxu1 }
 0x87c   : > { %v1827_v63 = vadd.f32 %v1826_v61, %v4123_v62 }
 0x87d   : > { %v3407_v0 = vpop.f32.mrf.mxu1 }
 0x87e   : > { %v1833_v2 = vsel %vm917_vm9, %v1827_v63, -inf }
 0x87f   : > { %1834 = vmax.xlane.f32.xlu0 %v1833_v2  ;;  %v1829_v50 = vpop.f32.mrf.mxu1 }
 0x880   : > { %v1830_v3 = vadd.f32 %v1829_v50, %v4123_v62 }
 0x881   : > { %v3408_v4 = vpop.f32.mrf.mxu1 }
 0x882   : > { %v1836_v5 = vsel %vm917_vm9, %v1830_v3, -inf }
 0x883   : > { %1837 = vmax.xlane.f32.xlu1 %v1836_v5 }
 0x908   : > { %v1835_v6 = vpop.xlane.xlu0 %1834 }
 0x909   : > { %v1839_v7 = vsub.f32 %v1827_v63, %v1835_v6 }
 0x90b   : > { %v1841_v8 = vmul.f32 1.442695, %v1839_v7 }
 0x90c   : > { %v1838_v10 = vpop.xlane.xlu1 %1837 }
 0x90d   : > { %3733 = vpow2.f32 %v1841_v8  ;;  %v1840_v11 = vsub.f32 %v1830_v3, %v1838_v10 }
 0x90f   : > { %v1843_v12 = vmul.f32 1.442695, %v1840_v11 }
 0x911   : > { %3735 = vpow2.f32 %v1843_v12 }
 0x91a   : > { %v3734_v13 = vpop.eup %3733 }
 0x91b   : > { %v1845_v15 = vsel %vm917_vm9, %v3734_v13, 0.0 }
 0x91c   : > { %1846 = vadd.xlane.f32.xlu0 %v1845_v15 }
 0x91e   : > { %v3736_v16 = vpop.eup %3735 }
 0x91f   : > { %v1848_v17 = vsel %vm917_vm9, %v3736_v16, 0.0 }
 0x920   : > { %1849 = vadd.xlane.f32.xlu1 %v1848_v17 }
 0x931   : > { %1901 = vrot.lane.b32.xlu1 %v1635_v58, %s4730_s20 }
 0x932   : > { %1904 = vrot.lane.b32.xlu0 %v1775_v52, %s4730_s20 }
 0x935   : > { %2026 = vrot.lane.b32.xlu1 %v1775_v52, %s4731_s27 }
 0x936   : > { %2024 = vrot.lane.b32.xlu0 %v1635_v58, %s4731_s27 }
 0x939   : > { %2147 = vrot.lane.b32.xlu1 %v1775_v52, %s4732_s26 }
 0x93a   : > { %2145 = vrot.lane.b32.xlu0 %v1635_v58, %s4732_s26 }
 0x9a5   : > { %v1847_v18 = vpop.xlane.xlu0 %1846 }
 0x9a6   : > { %3737 = vrcp.f32 %v1847_v18 }
 0x9a9   : > { %v1850_v19 = vpop.xlane.xlu1 %1849  ;;  %v1905_v23 = vpop.permute.xlu0 %1904 }
 0x9aa   : > { %3739 = vrcp.f32 %v1850_v19  ;;  %v1910_v33 = vsel %vm867_vm1, %v1905_v23, 0 }
 0x9ad   : > { %v1902_v20 = vpop.permute.xlu1 %1901  ;;  %v2025_v30 = vpop.permute.xlu0 %2024 }
 0x9b1   : > { %v2027_v21 = vpop.permute.xlu1 %2026  ;;  %v2146_v34 = vpop.permute.xlu0 %2145 }
 0x9b2   : > { %v2032_v22 = vsel %vm867_vm1, %v2027_v21, 0 }
 0x9b3   : > { %3428 = vmatpush3.bf16.xpose.msra.mxu0 %v2032_v22  ;;  %v3738_v24 = vpop.eup %3737 }
 0x9b4   : > { %3439 = vmatprep.subr.bf16.mxu0 %v3845_v1  ;;  %v1853_v28 = vmul.f32 %v3738_v24, %v3734_v13 }
 0x9b5   : > { %v2148_v27 = vpop.permute.xlu1 %2147 }
 0x9b6   : > { %v2153_v31 = vsel %vm867_vm1, %v2148_v27, 0 }
 0x9b7   : > { %v3740_v25 = vpop.eup %3739 }
 0x9b8   : > { %v1854_v29 = vmul.f32 %v3740_v25, %v3736_v16 }
 0x9ba   : > { %3430 = vmatmul.mubr.msk.bf16.vlgmr.msra.gmra.mxu0 %vm867_vm1, %v2025_v30  ;;  %v1855_v32 = vpack.c.bf16 %v1854_v29, %v1853_v28 }
 0x9bb   : > { %3440 = vmatpush3.bf16.xpose.msra.mxu0 %v2153_v31  ;;  %3441 = vmatprep.mubr.msk.bf16.mxu0 %vm3847_vm0, %v3845_v1 }
 0x9bc   : > { %3412 = vmatmul.mubr.msk.bf16.vlgmr.msra.gmra.mxu1 %vm917_vm9, %v1855_v32  ;;  %3451 = vmatprep.subr.bf16.mxu0 %v3845_v1 }
 0x9bd   : > { %3416 = vmatpush3.bf16.xpose.msra.mxu1 %v1910_v33  ;;  %3417 = vmatprep.mubr.msk.bf16.mxu1 %vm3847_vm0, %v3845_v1 }
 0x9be   : > { %3421 = vmatprep.subr.bf16.mxu1 %v3845_v1 }
 0x9c2   : > { %3442 = vmatmul.mubr.msk.bf16.vlgmr.msra.gmra.mxu0 %vm867_vm1, %v2146_v34 }
 0x9c3   : > { %3467 = vmatprep.mubr.msk.bf16.mxu0 %vm3847_vm0, %v3845_v1 }
 0x9c4   : > { %3418 = vmatmul.mubr.msk.bf16.vlgmr.msra.gmra.mxu1 %vm867_vm1, %v1902_v20 }
 0x9c5   : > { %3423 = vmatprep.mubr.msk.bf16.mxu1 %vm3847_vm0, %v3845_v1 }
 0xa7a   : > { %v2068_v35 = vpop.f32.mrf.mxu0 }
 0xa7b   : > { %v2069_v56 = vadd.f32 %v2068_v35, %v4123_v62 }
 0xa7c   : > { %v4395_v36 = vpop.f32.mrf.mxu1  ;;  %v3431_v37 = vpop.f32.mrf.mxu0 }
 0xa7d   : > { %v2075_v0 = vsel %vm917_vm9, %v2069_v56, -inf }
 0xa7e   : > { %v3413_v38 = vpop.f32.mrf.mxu1  ;;  %v2071_v39 = vpop.f32.mrf.mxu0 }
 0xa7f   : > { %v2072_v49 = vadd.f32 %v2071_v39, %v4123_v62 }
 0xa80   : > { %v4397_v40 = vpop.f32.mrf.mxu1  ;;  %v3432_v41 = vpop.f32.mrf.mxu0 }
 0xa81   : > { %v2078_v58 = vsel %vm917_vm9, %v2072_v49, -inf }
 0xa82   : > { %v3414_v42 = vpop.f32.mrf.mxu1  ;;  %v2189_v43 = vpop.f32.mrf.mxu0 }
 0xa83   : > { %v2190_v61 = vadd.f32 %v2189_v43, %v4123_v62 }
 0xa84   : > { %v1946_v44 = vpop.f32.mrf.mxu1  ;;  %v3443_v45 = vpop.f32.mrf.mxu0 }
 0xa85   : > { %v1947_v46 = vadd.f32 %v1946_v44, %v4123_v62  ;;  %v2196_v2 = vsel %vm917_vm9, %v2190_v61, -inf }
 0xa86   : > { %v3419_v47 = vpop.f32.mrf.mxu1  ;;  %v2192_v48 = vpop.f32.mrf.mxu0 }
 0xa87   : > { %v1953_v51 = vsel %vm917_vm9, %v1947_v46, -inf  ;;  %v2193_v57 = vadd.f32 %v2192_v48, %v4123_v62 }
 0xa88   : > { %v3444_v52 = vpop.f32.mrf.mxu0  ;;  %1954 = vmax.xlane.f32.xlu1 %v1953_v51  ;;  %v1949_v53 = vpop.f32.mrf.mxu1 }
 0xa89   : > { %v1950_v54 = vadd.f32 %v1949_v53, %v4123_v62  ;;  %v2199_v63 = vsel %vm917_vm9, %v2193_v57, -inf }
 0xa8a   : > { %v3420_v55 = vpop.f32.mrf.mxu1 }
 0xa8b   : > { %v1956_v60 = vsel %vm917_vm9, %v1950_v54, -inf }
 0xa8c   : > { %2079 = vmax.xlane.f32.xlu1 %v2078_v58  ;;  %1957 = vmax.xlane.f32.xlu0 %v1956_v60 }
 0xa90   : > { %2200 = vmax.xlane.f32.xlu1 %v2199_v63  ;;  %2076 = vmax.xlane.f32.xlu0 %v2075_v0  ;;  %v3622_v63 = vld [vmem:[%s4700_s11 + $0x30] sm:$0xff]   ;;  %v3623_v0 = vld [vmem:[%s4700_s11 + $0x28] sm:$0xff]  }
 0xa94   : > { %2197 = vmax.xlane.f32.xlu0 %v2196_v2  ;;  %v3624_v2 = vld [vmem:[%s4700_s11 + $0x20] sm:$0xff]  }
 0xb11   : > { %v1955_v50 = vpop.xlane.xlu1 %1954 }
 0xb12   : > { %v1959_v16 = vsub.f32 %v1947_v46, %v1955_v50  ;;  %v3625_v50 = vld [vmem:[%s4700_s11 + $0x18] sm:$0xff]  }
 0xb14   : > { %v1961_v20 = vmul.f32 1.442695, %v1959_v16 }
 0xb15   : > { %v2080_v3 = vpop.xlane.xlu1 %2079  ;;  %v1958_v4 = vpop.xlane.xlu0 %1957 }
 0xb16   : > { %v2082_v5 = vsub.f32 %v2072_v49, %v2080_v3  ;;  %v1960_v7 = vsub.f32 %v1950_v54, %v1958_v4 }
 0xb18   : > { %v2085_v6 = vmul.f32 1.442695, %v2082_v5  ;;  %v1963_v12 = vmul.f32 1.442695, %v1960_v7  ;;  %v3626_v5 = vld [vmem:[%s4700_s11 + $0x10] sm:$0xff]  }
 0xb19   : > { %v2201_v8 = vpop.xlane.xlu1 %2200  ;;  %v2077_v10 = vpop.xlane.xlu0 %2076 }
 0xb1a   : > { %3741 = vpow2.f32 %v2085_v6  ;;  %v2203_v11 = vsub.f32 %v2193_v57, %v2201_v8  ;;  %v2081_v62 = vsub.f32 %v2069_v56, %v2077_v10  ;;  %v3627_v8 = vld [vmem:[%s4700_s11 + $0x8] sm:$0xff]  }
 0xb1c   : > { %v2206_v13 = vmul.f32 1.442695, %v2203_v11  ;;  %v2083_v15 = vmul.f32 1.442695, %v2081_v62 }
 0xb1d   : > { %v2198_v17 = vpop.xlane.xlu0 %2197 }
 0xb1e   : > { %3743 = vpow2.f32 %v2206_v13  ;;  %v2202_v18 = vsub.f32 %v2190_v61, %v2198_v17  ;;  %v3621_v61 = vld [vmem:[%s4700_s11 + $0x38] sm:$0xff]  }
 0xb1f   : > { %3745 = vpow2.f32 %v2083_v15  ;;  %3452 = vmatpush3.bf16.msra.mxu0 %v3621_v61  ;;  %v3658_v61 = vld [vmem:[%s4702_s13 + $0x6c] ss:$16 sps:$4 sm:$0xff]  }
 0xb20   : > { %3747 = vpow2.f32 %v1963_v12  ;;  %v2204_v19 = vmul.f32 1.442695, %v2202_v18  ;;  %3453 = vmatprep.subr.bf16.mxu0 %v3845_v1  ;;  %v3628_v12 = vld [vmem:[%s4700_s11] sm:$0xff]  }
 0xb22   : > { %3749 = vpow2.f32 %v2204_v19 }
 0xb23   : > { %3751 = vpow2.f32 %v1961_v20  ;;  %3454 = vmatpush3.bf16.msra.mxu0 %v3622_v63  ;;  %v3653_v63 = vld [vmem:[%s4702_s13 + $0x60] ss:$16 sps:$4 sm:$0xff]  }
 0xb24   : > { %3455 = vmatprep.subr.bf16.mxu0 %v3845_v1 }
 0xb27   : > { %v3742_v21 = vpop.eup %3741  ;;  %3456 = vmatpush3.bf16.msra.mxu0 %v3623_v0  ;;  %v3656_v0 = vld [vmem:[%s4702_s13 + $0x68] ss:$16 sps:$4 sm:$0xff]  }
 0xb28   : > { %v2090_v22 = vsel %vm917_vm9, %v3742_v21, 0.0  ;;  %3457 = vmatprep.subr.bf16.mxu0 %v3845_v1 }
 0xb29   : > { %2091 = vadd.xlane.f32.xlu1 %v2090_v22 }
 0xb2b   : > { %v3744_v23 = vpop.eup %3743  ;;  %3458 = vmatpush3.bf16.msra.mxu0 %v3624_v2  ;;  %v3661_v2 = vld [vmem:[%s4702_s13 + $0x44] ss:$16 sps:$4 sm:$0xff]  }
 0xb2c   : > { %v3746_v24 = vpop.eup %3745  ;;  %v2211_v25 = vsel %vm917_vm9, %v3744_v23, 0.0  ;;  %3459 = vmatprep.subr.bf16.mxu0 %v3845_v1 }
 0xb2d   : > { %v3748_v27 = vpop.eup %3747  ;;  %2212 = vadd.xlane.f32.xlu1 %v2211_v25  ;;  %v2087_v28 = vsel %vm917_vm9, %v3746_v24, 0.0 }
 0xb2e   : > { %2088 = vadd.xlane.f32.xlu0 %v2087_v28  ;;  %v1968_v30 = vsel %vm917_vm9, %v3748_v27, 0.0 }
 0xb2f   : > { %v3750_v29 = vpop.eup %3749  ;;  %3460 = vmatpush3.bf16.msra.mxu0 %v3625_v50  ;;  %v3664_v50 = vld [vmem:[%s4702_s13 + $0x4c] ss:$16 sps:$4 sm:$0xff]  }
 0xb30   : > { %v2208_v31 = vsel %vm917_vm9, %v3750_v29, 0.0  ;;  %v3752_v32 = vpop.eup %3751  ;;  %3461 = vmatprep.subr.bf16.mxu0 %v3845_v1 }
 0xb31   : > { %1969 = vadd.xlane.f32.xlu1 %v1968_v30  ;;  %v1965_v33 = vsel %vm917_vm9, %v3752_v32, 0.0 }
 0xb32   : > { %2209 = vadd.xlane.f32.xlu0 %v2208_v31 }
 0xb33   : > { %3462 = vmatpush3.bf16.msra.mxu0 %v3626_v5  ;;  %v3667_v5 = vld [vmem:[%s4702_s13 + $0x24] ss:$16 sps:$4 sm:$0xff]  }
 0xb34   : > { %3463 = vmatprep.subr.bf16.mxu0 %v3845_v1 }
 0xb36   : > { %1966 = vadd.xlane.f32.xlu0 %v1965_v33 }
 0xb37   : > { %3464 = vmatpush3.bf16.msra.mxu0 %v3627_v8  ;;  %v3668_v8 = vld [vmem:[%s4702_s13 + $0x28] ss:$16 sps:$4 sm:$0xff]  }
 0xb38   : > { %3465 = vmatprep.subr.bf16.mxu0 %v3845_v1 }
 0xb3b   : > { %3466 = vmatpush3.bf16.msra.mxu0 %v3628_v12  ;;  %v3674_v12 = vld [vmem:[%s4702_s13 + $0x8] ss:$16 sps:$4 sm:$0xff]  }
 0xb42   : > { %2098 = vrot.lane.b32.xlu1 %v4358_v59, %s4731_s27 }
 0xb46   : > { %2219 = vrot.lane.b32.xlu1 %v4358_v59, %s4732_s26 }
 0xb4c   : > { %1977 = vrot.lane.b32.xlu0 %v4358_v59, %s4730_s20 }
 0xbb2   : > { %v2092_v34 = vpop.xlane.xlu1 %2091 }
 0xbb6   : > { %v2213_v35 = vpop.xlane.xlu1 %2212 }
 0xbb7   : > { %v2089_v37 = vpop.xlane.xlu0 %2088 }
 0xbba   : > { %v1970_v38 = vpop.xlane.xlu1 %1969 }
 0xbbb   : > { %v2210_v39 = vpop.xlane.xlu0 %2209  ;;  %3753 = vrcp.f32 %v1970_v38 }
 0xbbe   : > { %v2099_v48 = vpop.permute.xlu1 %2098 }
 0xbbf   : > { %v1967_v41 = vpop.xlane.xlu0 %1966 }
 0xbc0   : > { %3755 = vrcp.f32 %v1967_v41  ;;  %v3634_v41 = vld [vmem:[%s4702_s13 + $0xec] ss:$16 sps:$4 sm:$0xff]  }
 0xbc1   : > { %3757 = vrcp.f32 %v2089_v37  ;;  %2663 = vmatprep.subr.bf16.mxu0 %v3634_v41  ;;  %v3690_v41 = vld [vmem:[%s4703_s14 + $0x8] sm:$0xff]  }
 0xbc2   : > { %3759 = vrcp.f32 %v2092_v34  ;;  %v2220_v55 = vpop.permute.xlu1 %2219 }
 0xbc3   : > { %v1978_v42 = vpop.permute.xlu0 %1977  ;;  %3761 = vrcp.f32 %v2210_v39  ;;  %v3632_v39 = vld [vmem:[%s4702_s13 + $0xe8] ss:$16 sps:$4 sm:$0xff]  }
 0xbc4   : > { %3422 = vmatpush3.bf16.msra.mxu1 %v1978_v42  ;;  %3763 = vrcp.f32 %v2213_v35 }
 0xbc5   : > { %3433 = vmatprep.subr.bf16.mxu1 %v3845_v1 }
 0xbc8   : > { %v3754_v43 = vpop.eup %3753 }
 0xbc9   : > { %v1974_v59 = vmul.f32 %v3754_v43, %v3748_v27 }
 0xbcd   : > { %v3756_v44 = vpop.eup %3755 }
 0xbce   : > { %v1973_v45 = vmul.f32 %v3756_v44, %v3752_v32  ;;  %v3758_v47 = vpop.eup %3757 }
 0xbcf   : > { %v3760_v49 = vpop.eup %3759  ;;  %v2095_v51 = vmul.f32 %v3758_v47, %v3746_v24 }
 0xbd0   : > { %v1975_v46 = vpack.c.bf16 %v1974_v59, %v1973_v45  ;;  %v2096_v52 = vmul.f32 %v3760_v49, %v3742_v21  ;;  %v3762_v54 = vpop.eup %3761  ;;  %v3635_v49 = vld [vmem:[%s4702_s13 + $0xc0] ss:$16 sps:$4 sm:$0xff]  }
 0xbd1   : > { %v3764_v56 = vpop.eup %3763  ;;  %v2216_v57 = vmul.f32 %v3762_v54, %v3750_v29  ;;  %v3644_v54 = vld [vmem:[%s4702_s13 + $0xa8] ss:$16 sps:$4 sm:$0xff]  }
 0xbd2   : > { %3424 = vmatmul.mubr.msk.bf16.vlgmr.msra.gmra.mxu1 %vm917_vm9, %v1975_v46  ;;  %v2097_v53 = vpack.c.bf16 %v2096_v52, %v2095_v51  ;;  %v2217_v58 = vmul.f32 %v3764_v56, %v3744_v23  ;;  %v3643_v51 = vld [vmem:[%s4702_s13 + $0xa4] ss:$16 sps:$4 sm:$0xff]   ;;  %v3646_v52 = vld [vmem:[%s4702_s13 + $0xac] ss:$16 sps:$4 sm:$0xff]  }
 0xbd3   : > { %3434 = vmatpush3.bf16.msra.mxu1 %v2099_v48  ;;  %3435 = vmatprep.mubr.msk.bf16.mxu1 %vm3847_vm0, %v3845_v1  ;;  %v3637_v48 = vld [vmem:[%s4702_s13 + $0xc4] ss:$16 sps:$4 sm:$0xff]   ;;  %v3652_v56 = vld [vmem:[%s4702_s13 + $0x8c] ss:$16 sps:$4 sm:$0xff]  }
 0xbd4   : > { %3445 = vmatprep.subr.bf16.mxu1 %v3845_v1  ;;  %v2218_v60 = vpack.c.bf16 %v2217_v58, %v2216_v57  ;;  %v3647_v57 = vld [vmem:[%s4702_s13 + $0x80] ss:$16 sps:$4 sm:$0xff]   ;;  %v3650_v58 = vld [vmem:[%s4702_s13 + $0x88] ss:$16 sps:$4 sm:$0xff]  }
 0xbda   : > { %3436 = vmatmul.mubr.msk.bf16.vlgmr.msra.gmra.mxu1 %vm917_vm9, %v2097_v53  ;;  %v3641_v53 = vld [vmem:[%s4702_s13 + $0xa0] ss:$16 sps:$4 sm:$0xff]  }
 0xbdb   : > { %3446 = vmatpush3.bf16.msra.mxu1 %v2220_v55  ;;  %3447 = vmatprep.mubr.msk.bf16.mxu1 %vm3847_vm0, %v3845_v1  ;;  %v3649_v55 = vld [vmem:[%s4702_s13 + $0x84] ss:$16 sps:$4 sm:$0xff]  }
 0xbe2   : > { %3448 = vmatmul.mubr.msk.bf16.vlgmr.msra.gmra.mxu1 %vm917_vm9, %v2218_v60  ;;  %v3655_v60 = vld [vmem:[%s4702_s13 + $0x64] ss:$16 sps:$4 sm:$0xff]  }
 0xbe3   : > { %2652 = vmatprep.mubr.bf16.mxu1 %v3846_v26 }
 0xc92   : > { %v2017_v3 = vpop.f32.mrf.mxu1 }
 0xc94   : > { %v3425_v4 = vpop.f32.mrf.mxu1 }
 0xc95   : > { %v3662_v4 = vld [vmem:[%s4702_s13 + $0x48] ss:$16 sps:$4 sm:$0xff]  }
 0xc96   : > { %v2020_v6 = vpop.f32.mrf.mxu1 }
 0xc97   : > { %v3534_v7 = vpack.i.bf16 %v2020_v6, %v2017_v3  ;;  %v3659_v3 = vld [vmem:[%s4702_s13 + $0x40] ss:$16 sps:$4 sm:$0xff]   ;;  %v3670_v6 = vld [vmem:[%s4702_s13 + $0x2c] ss:$16 sps:$4 sm:$0xff]  }
 0xc98   : > { %v3426_v10 = vpop.f32.mrf.mxu1 }
 0xc99   : > { %3535 = vrot.lane.b32.xlu0 %v3534_v7, %s4732_s26  ;;  %v3665_v7 = vld [vmem:[%s4702_s13 + $0x20] ss:$16 sps:$4 sm:$0xff]   ;;  %v3673_v10 = vld [vmem:[%s4702_s13 + $0x4] ss:$16 sps:$4 sm:$0xff]   ;;  %s549_s26 = sand.u32 1, %s3835_s22  }
 0xc9a   : > { %v2138_v11 = vpop.f32.mrf.mxu1  ;;  %s3054_s17 = sshll.u32 %s549_s26, 4 }
 0xc9b   : > { %s551_s19 = scalar_lea.vmem [#allocation2], %s3054_s17 }
 0xc9c   : > { %v3437_v62 = vpop.f32.mrf.mxu1  ;;  %s2958_s21 = sshll.u32 %s551_s19, 4  ;;  %s4647_s21 = int_to_ptr.vmem [resolvable:$true] %s2958_s21 }
 0xc9d   : > { %v3671_v62 = vld [vmem:[%s4702_s13] ss:$16 sps:$4 sm:$0xff]   ;;  %s3783_s25 = scalar_lea.vmem %s4647_s21, 256 }
 0xc9e   : > { %v2141_v13 = vpop.f32.mrf.mxu1  ;;  %p3784_p11 = scmp.ne.s32.totalorder %s4647_s21, %s3783_s25 }
 0xc9f   : > { %v3539_v15 = vpack.i.bf16 %v2141_v13, %v2138_v11  ;;  %v3676_v11 = vld [vmem:[%s4702_s13 + $0xc] ss:$16 sps:$4 sm:$0xff]  }
 0xca0   : > { %v3438_v16 = vpop.f32.mrf.mxu1  ;;  %p3785_p12 = pnand %p3784_p11, %p3978_p5 }
 0xca1   : > { %3540 = vrot.lane.b32.xlu1 %v3539_v15, %s4731_s27  ;;  %s3852_s27 = smov [#allocation2]  }
 0xca2   : > { %v2259_v17 = vpop.f32.mrf.mxu1  ;;  %p3786_p13 = pneg %p3785_p12  ;;  %s3787_s17 = sshll.u32 %s3852_s27, 4  ;;  %s3788_s17 = int_to_ptr.vmem [resolvable:$false] %s3787_s17 }
 0xca3   : > { %s3789_s30 = scalar_lea.vmem %s3788_s17, 512  ;;  %p3790_p0 = scmp.lt.s32.totalorder %s4647_s21, %s3788_s17 }
 0xca4   : > { %v3449_v18 = vpop.f32.mrf.mxu1  ;;  %p3791_p1 = scmp.lt.s32.totalorder %s3789_s30, %s3783_s25 }
 0xca6   : > { %v2262_v19 = vpop.f32.mrf.mxu1  ;;  %p3792_p2 = por %p3791_p1, %p3790_p0 }
 0xca7   : > { %v3544_v20 = vpack.i.bf16 %v2262_v19, %v2259_v17 }
 0xca8   : > { %v3450_v21 = vpop.f32.mrf.mxu1  ;;  %p3793_p3 = pnand %p3792_p2, %p3786_p13 }
 0xca9   : > { %3545 = vrot.lane.b32.xlu0 %v3544_v20, %s4730_s20  ;;  %s4649_s20 = scalar_lea.sflag [#allocation3], %s549_s26 }
 0xd0b   : > { %v3536_v22 = vpop.permute.xlu0 %3535 }
 0xd0c   : > { %v3538_v1 = vunpack.i.h.bf16 %v3536_v22  ;;  %v3537_v24 = vunpack.i.l.bf16 %v3536_v22 }
 0xd0e   : > { %v2291_v29 = vsel %vm867_vm1, %v4397_v40, %v3538_v1  ;;  %v2290_v30 = vsel %vm867_vm1, %v4395_v36, %v3537_v24  ;;  %v3629_v40 = vld [vmem:[%s4702_s13 + $0xe0] ss:$16 sps:$4 sm:$0xff]   ;;  %v3631_v36 = vld [vmem:[%s4702_s13 + $0xe4] ss:$16 sps:$4 sm:$0xff]  }
 0xd0f   : > { %2620 = vmatprep.subr.bf16.mxu1 %v3631_v36  ;;  %v3688_v36 = vld [vmem:[%s4703_s14 + $0x10] sm:$0xff]  }
 0xd10   : > { %2621 = vmatpush1.bf16.msra.mxu1 %v3629_v40  ;;  %v3687_v40 = vld [vmem:[%s4703_s14 + $0x50] sm:$0xff]  }
 0xd11   : > { %2622 = vmatprep.subr.bf16.mxu1 %v3637_v48 }
 0xd13   : > { %v3541_v23 = vpop.permute.xlu1 %3540 }
 0xd14   : > { %v3543_v25 = vunpack.i.h.bf16 %v3541_v23  ;;  %v3542_v27 = vunpack.i.l.bf16 %v3541_v23  ;;  %2623 = vmatpush1.bf16.msra.mxu1 %v3635_v49  ;;  %v3147_v23 = vld [vmem:[%s4701_s12] ss:$0 sm:$0xff] }
 0xd15   : > { %2624 = vmatprep.subr.bf16.mxu1 %v3643_v51 }
 0xd16   : > { %v2293_v33 = vsel %vm1392_vm10, %v2291_v29, %v3543_v25  ;;  %v2292_v34 = vsel %vm1392_vm10, %v2290_v30, %v3542_v27  ;;  %v3678_v29 = vld [vmem:[%s4703_s14 + $0x38] sm:$0xff]   ;;  %v3679_v30 = vld [vmem:[%s4703_s14 + $0x70] sm:$0xff]  }
 0xd18   : > { %2625 = vmatpush1.bf16.msra.mxu1 %v3641_v53 }
 0xd19   : > { %2626 = vmatprep.subr.bf16.mxu1 %v3649_v55 }
 0xd1b   : > { %v3546_v28 = vpop.permute.xlu0 %3545 }
 0xd1c   : > { %v3548_v31 = vunpack.i.h.bf16 %v3546_v28  ;;  %v3547_v32 = vunpack.i.l.bf16 %v3546_v28  ;;  %2627 = vmatpush1.bf16.msra.mxu1 %v3647_v57  ;;  %v3677_v28 = vld [vmem:[%s4703_s14 + $0x78] sm:$0xff]  }
 0xd1d   : > { %2628 = vmatprep.subr.bf16.mxu1 %v3655_v60 }
 0xd1e   : > { %v2295_v35 = vsel %vm1395_vm11, %v2293_v33, %v3548_v31  ;;  %v2294_v37 = vsel %vm1395_vm11, %v2292_v34, %v3547_v32  ;;  %v3680_v31 = vld [vmem:[%s4703_s14 + $0x30] sm:$0xff]   ;;  %v3681_v32 = vld [vmem:[%s4703_s14 + $0x68] sm:$0xff]   ;;  %v3683_v34 = vld [vmem:[%s4703_s14 + $0x60] sm:$0xff]  }
 0xd1f   : > { %v2296_v38 = vpack.c.bf16 %v2295_v35, %v2294_v37  ;;  %v3682_v33 = vld [vmem:[%s4703_s14 + $0x28] sm:$0xff]   ;;  %v3684_v35 = vld [vmem:[%s4703_s14 + $0x20] sm:$0xff]   ;;  %v3685_v37 = vld [vmem:[%s4703_s14 + $0x58] sm:$0xff]  }
 0xd20   : > { %2629 = vmatpush1.bf16.msra.mxu1 %v3653_v63 }
 0xd21   : > { %3468 = vmatmul.mubr.bf16.vlgmr.msra.gmra.mxu0 %v2296_v38  ;;  %2630 = vmatprep.subr.bf16.mxu1 %v3661_v2  ;;  %v3686_v38 = vld [vmem:[%s4703_s14 + $0x18] sm:$0xff]  }
 0xd22   : > { %2695 = vmatprep.mubr.bf16.mxu0 %v3846_v26  ;;  %2664 = vmatpush1.bf16.msra.mxu0 %v3632_v39  ;;  %v3689_v39 = vld [vmem:[%s4703_s14 + $0x48] sm:$0xff]  }
 0xd24   : > { %2631 = vmatpush1.bf16.msra.mxu1 %v3659_v3 }
 0xd25   : > { %2632 = vmatprep.subr.bf16.mxu1 %v3667_v5 }
 0xd28   : > { %2633 = vmatpush1.bf16.msra.mxu1 %v3665_v7 }
 0xd29   : > { %2634 = vmatprep.subr.bf16.mxu1 %v3673_v10 }
 0xd2c   : > { %2635 = vmatpush1.bf16.msra.mxu1 %v3671_v62 }
 0xd2d   : > { %3273 = vmatprep.subr.bf16.mxu1 %v3677_v28 }
 0xde1   : > { %v2395_v26 = vpop.f32.mrf.mxu0 }
 0xde2   : > { %v4489_v42 = vadd.f32 %v2395_v26, %v4286_v9  ;;  %v3640_v9 = vld [vmem:[%s4702_s13 + $0xcc] ss:$16 sps:$4 sm:$0xff]   ;;  %v3691_v26 = vld [vmem:[%s4703_s14 + $0x40] sm:$0xff]  }
 0xde3   : > { %v3469_v43 = vpop.f32.mrf.mxu0  ;;  %2665 = vmatprep.subr.bf16.mxu0 %v3640_v9 }
 0xde4   : > { %v2405_v44 = vmul.f32 %v4489_v42, %v4489_v42  ;;  %v3692_v43 = vld [vmem:[%s4703_s14] sm:$0xff]  }
 0xde5   : > { %v2398_v45 = vpop.f32.mrf.mxu0 }
 0xde6   : > { %v4494_v59 = vadd.f32 %v2398_v45, %v4291_v14  ;;  %2407 = vadd.xlane.f32.xlu1 %v2405_v44  ;;  %v3638_v14 = vld [vmem:[%s4702_s13 + $0xc8] ss:$16 sps:$4 sm:$0xff]  }
 0xde7   : > { %v3470_v46 = vpop.f32.mrf.mxu0  ;;  %2666 = vmatpush1.bf16.msra.mxu0 %v3638_v14 }
 0xde8   : > { %v2406_v47 = vmul.f32 %v4494_v59, %v4494_v59  ;;  %2667 = vmatprep.subr.bf16.mxu0 %v3646_v52 }
 0xdea   : > { %2409 = vadd.xlane.f32.xlu0 %v2406_v47 }
 0xdeb   : > { %2668 = vmatpush1.bf16.msra.mxu0 %v3644_v54 }
 0xdec   : > { %2669 = vmatprep.subr.bf16.mxu0 %v3652_v56 }
 0xdef   : > { %2670 = vmatpush1.bf16.msra.mxu0 %v3650_v58 }
 0xdf0   : > { %2671 = vmatprep.subr.bf16.mxu0 %v3658_v61 }
 0xdf3   : > { %2672 = vmatpush1.bf16.msra.mxu0 %v3656_v0 }
 0xdf4   : > { %2673 = vmatprep.subr.bf16.mxu0 %v3664_v50 }
 0xdf7   : > { %2674 = vmatpush1.bf16.msra.mxu0 %v3662_v4 }
 0xdf8   : > { %2675 = vmatprep.subr.bf16.mxu0 %v3670_v6 }
 0xdfb   : > { %2676 = vmatpush1.bf16.msra.mxu0 %v3668_v8 }
 0xdfc   : > { %2677 = vmatprep.subr.bf16.mxu0 %v3676_v11 }
 0xdff   : > { %2678 = vmatpush1.bf16.msra.mxu0 %v3674_v12 }
 0xe6f   : > { %v2408_v13 = vpop.xlane.xlu1 %2407 }
 0xe70   : > { %v2411_v15 = vmul.f32 0.0078125, %v2408_v13 }
 0xe72   : > { %v2413_v16 = vadd.f32 1e-06, %v2411_v15 }
 0xe73   : > { %v2410_v17 = vpop.xlane.xlu0 %2409 }
 0xe74   : > { %3765 = vrsqrt.f32 %v2413_v16  ;;  %v2412_v18 = vmul.f32 0.0078125, %v2410_v17 }
 0xe76   : > { %v2414_v19 = vadd.f32 1e-06, %v2412_v18 }
 0xe78   : > { %3767 = vrsqrt.f32 %v2414_v19 }
 0xe81   : > { %v3766_v20 = vpop.eup %3765 }
 0xe82   : > { %v2417_v21 = vmul.f32 %v3766_v20, %v4489_v42 }
 0xe84   : > { %v2425_v24 = vmul.f32 %v3147_v23, %v2417_v21 }
 0xe85   : > { %v3768_v22 = vpop.eup %3767 }
 0xe86   : > { %v2418_v1 = vmul.f32 %v3768_v22, %v4494_v59 }
 0xe88   : > { %v2426_v25 = vmul.f32 %v3147_v23, %v2418_v1 }
 0xe8a   : > { %v2427_v27 = vpack.c.bf16 %v2426_v25, %v2425_v24 }
 0xe8c   : > { %2653 = vmatmul.mubr.bf16.vlgmr.msra.gmra.mxu1 %v2427_v27  ;;  %2696 = vmatmul.mubr.bf16.vlgmr.msra.gmra.mxu0 %v2427_v27 }
 0xe8d   : > { %3274 = vmatpush3.bf16.msra.mxu1 %v3678_v29 }
 0xe8e   : > { %3275 = vmatprep.subr.bf16.mxu1 %v3679_v30 }
 0xe91   : > { %3276 = vmatpush3.bf16.msra.mxu1 %v3680_v31 }
 0xe92   : > { %3277 = vmatprep.subr.bf16.mxu1 %v3681_v32 }
 0xe95   : > { %3278 = vmatpush3.bf16.msra.mxu1 %v3682_v33 }
 0xe96   : > { %3279 = vmatprep.subr.bf16.mxu1 %v3683_v34 }
 0xe99   : > { %3280 = vmatpush3.bf16.msra.mxu1 %v3684_v35 }
 0xe9a   : > { %3281 = vmatprep.subr.bf16.mxu1 %v3685_v37 }
 0xe9d   : > { %3282 = vmatpush3.bf16.msra.mxu1 %v3686_v38 }
 0xe9e   : > { %3283 = vmatprep.subr.bf16.mxu1 %v3687_v40 }
 0xea1   : > { %3284 = vmatpush3.bf16.msra.mxu1 %v3688_v36 }
 0xea2   : > { %3285 = vmatprep.subr.bf16.mxu1 %v3689_v39 }
 0xea5   : > { %3286 = vmatpush3.bf16.msra.mxu1 %v3690_v41 }
 0xea6   : > { %3287 = vmatprep.subr.bf16.mxu1 %v3691_v26 }
 0xea9   : > { %3288 = vmatpush3.bf16.msra.mxu1 %v3692_v43 }
 0xf4c   : > { %v2654_v44 = vpop.f32.mrf.mxu1  ;;  %v2697_v5 = vpop.f32.mrf.mxu0 }
 0xf4d   : > { %v2710_v45 = vmul.f32 0.044715, %v2654_v44  ;;  %v2706_v17 = vmul.f32 0.5, %v2654_v44 }
 0xf4e   : > { %v2656_v46 = vpop.f32.mrf.mxu1  ;;  %v2699_v8 = vpop.f32.mrf.mxu0 }
 0xf4f   : > { %v2714_v47 = vmul.f32 %v2710_v45, %v2654_v44  ;;  %v2711_v48 = vmul.f32 0.044715, %v2656_v46  ;;  %v2707_v12 = vmul.f32 0.5, %v2656_v46 }
 0xf50   : > { %v2658_v9 = vpop.f32.mrf.mxu1  ;;  %v2701_v18 = vpop.f32.mrf.mxu0 }
 0xf51   : > { %v2718_v49 = vmul.f32 %v2714_v47, %v2654_v44  ;;  %v2715_v14 = vmul.f32 %v2711_v48, %v2656_v46  ;;  %v2712_v51 = vmul.f32 0.044715, %v2658_v9  ;;  %v2708_v13 = vmul.f32 0.5, %v2658_v9  ;;  %v3196_v48 = vld [vmem:[%s4704_s15] ss:$0 sm:$0xff] }
 0xf52   : > { %v2660_v52 = vpop.f32.mrf.mxu1  ;;  %v2703_v25 = vpop.f32.mrf.mxu0 }
 0xf53   : > { %v2722_v53 = vadd.f32 %v2718_v49, %v2654_v44  ;;  %v2719_v54 = vmul.f32 %v2715_v14, %v2656_v46  ;;  %v2716_v55 = vmul.f32 %v2712_v51, %v2658_v9  ;;  %v2713_v56 = vmul.f32 0.044715, %v2660_v52 }
 0xf54   : > { %v2709_v21 = vmul.f32 0.5, %v2660_v52 }
 0xf55   : > { %v2726_v57 = vmul.f32 0.7978846, %v2722_v53  ;;  %v2723_v58 = vadd.f32 %v2719_v54, %v2656_v46  ;;  %v2720_v60 = vmul.f32 %v2716_v55, %v2658_v9  ;;  %v2717_v61 = vmul.f32 %v2713_v56, %v2660_v52 }
 0xf57   : > { %v2727_v63 = vmul.f32 0.7978846, %v2723_v58  ;;  %v2724_v0 = vadd.f32 %v2720_v60, %v2658_v9  ;;  %v2721_v2 = vmul.f32 %v2717_v61, %v2660_v52  ;;  %3769 = vtanh.f32 %v2726_v57 }
 0xf59   : > { %3771 = vtanh.f32 %v2727_v63  ;;  %v2728_v50 = vmul.f32 0.7978846, %v2724_v0  ;;  %v2725_v3 = vadd.f32 %v2721_v2, %v2660_v52 }
 0xf5b   : > { %3773 = vtanh.f32 %v2728_v50  ;;  %v2729_v4 = vmul.f32 0.7978846, %v2725_v3 }
 0xf5d   : > { %3775 = vtanh.f32 %v2729_v4 }
 0xf64   : > { %v3770_v6 = vpop.eup %3769 }
 0xf65   : > { %v2734_v62 = vadd.f32 1.0, %v3770_v6 }
 0xf66   : > { %v3772_v7 = vpop.eup %3771 }
 0xf67   : > { %v2735_v10 = vadd.f32 1.0, %v3772_v7  ;;  %v2738_v23 = vmul.f32 %v2734_v62, %v2706_v17 }
 0xf68   : > { %v3774_v11 = vpop.eup %3773 }
 0xf69   : > { %v2736_v15 = vadd.f32 1.0, %v3774_v11  ;;  %v2739_v19 = vmul.f32 %v2735_v10, %v2707_v12  ;;  %v2742_v29 = vmul.f32 %v2738_v23, %v2697_v5 }
 0xf6a   : > { %v3776_v16 = vpop.eup %3775 }
 0xf6b   : > { %v2740_v20 = vmul.f32 %v2736_v15, %v2708_v13  ;;  %v2737_v22 = vadd.f32 1.0, %v3776_v16  ;;  %v2743_v27 = vmul.f32 %v2739_v19, %v2699_v8 }
 0xf6d   : > { %v2741_v1 = vmul.f32 %v2737_v22, %v2709_v21  ;;  %v2744_v24 = vmul.f32 %v2740_v20, %v2701_v18 }
 0xf6f   : > { %v2745_v28 = vmul.f32 %v2741_v1, %v2703_v25  ;;  %v2746_v31 = vpack.c.bf16 %v2744_v24, %v2742_v29 }
 0xf71   : > { %v2747_v30 = vpack.c.bf16 %v2745_v28, %v2743_v27 }
 0xf73   : > { %2908 = vmatprep.mubr.bf16.mxu1 %v2747_v30 }
 0xf74   : > { %2909 = vmatmul.mubr.bf16.vlgmr.msra.gmra.mxu1 %v2746_v31 }
0x1034   : > { %v3289_v32 = vpop.f32.mrf.mxu1 }
0x1036   : > { %v3290_v33 = vpop.f32.mrf.mxu1 }
0x1037   : > { %v3291_v34 = vadd.f32 %v3290_v33, %v3289_v32 }
0x1038   : > { %v3292_v35 = vpop.f32.mrf.mxu1 }
0x1039   : > { %v2917_v37 = vadd.f32 %v3291_v34, %v4489_v42 }
0x103a   : > { %v3293_v38 = vpop.f32.mrf.mxu1 }
0x103b   : > { %v3294_v40 = vadd.f32 %v3293_v38, %v3292_v35  ;;  %v2920_v36 = vmul.f32 %v2917_v37, %v2917_v37 }
0x103d   : > { %v2918_v39 = vadd.f32 %v3294_v40, %v4494_v59  ;;  %2922 = vadd.xlane.f32.xlu0 %v2920_v36 }
0x103f   : > { %v2921_v41 = vmul.f32 %v2918_v39, %v2918_v39 }
0x1041   : > { %2924 = vadd.xlane.f32.xlu1 %v2921_v41 }
0x10c6   : > { %v2923_v26 = vpop.xlane.xlu0 %2922 }
0x10c7   : > { %v2926_v43 = vmul.f32 0.0078125, %v2923_v26 }
0x10c9   : > { %v2928_v44 = vadd.f32 1e-06, %v2926_v43 }
0x10ca   : > { %v2925_v45 = vpop.xlane.xlu1 %2924 }
0x10cb   : > { %3777 = vrsqrt.f32 %v2928_v44  ;;  %v2927_v46 = vmul.f32 0.0078125, %v2925_v45 }
0x10cd   : > { %v2929_v47 = vadd.f32 1e-06, %v2927_v46 }
0x10cf   : > { %3779 = vrsqrt.f32 %v2929_v47 }
0x10d8   : > { %v3778_v42 = vpop.eup %3777 }
0x10d9   : > { %v2932_v59 = vmul.f32 %v3778_v42, %v2917_v37 }
0x10db   : > { %v2940_v9 = vmul.f32 %v3196_v48, %v2932_v59 }
0x10dc   : > { %v3780_v49 = vpop.eup %3779 }
0x10dd   : > { %v2933_v14 = vmul.f32 %v3780_v49, %v2918_v39  ;;  %2942 = vst [vmem:[%s551_s19] sm:$0xff] %v2940_v9 }
0x10df   : > { %v2941_v51 = vmul.f32 %v3196_v48, %v2933_v14 }
0x10e1   : > { %2943 = vst [vmem:[%s551_s19 + $0x8] sm:$0xff] %v2941_v51 }
0x10e2   : > { %3796 = shalt.err (!%p3793_p3)
}
0x10e3   : > { %s3797_s26 = scalar_lea.hbm %s4645_s18, 256  ;;  %s3801_s19 = scalar_lea.hbm %s4705_s16, 512 }
0x10e4   : > { %p3798_p4 = scmp.ne.s32.totalorder %s4645_s18, %s3797_s26  ;;  %p3802_p9 = scmp.lt.s32.totalorder %s4645_s18, %s4705_s16 }
0x10e5   : > { %p3803_p10 = scmp.lt.s32.totalorder %s3801_s19, %s3797_s26 }
0x10e6   : > { %p3799_p7 = pnand %p3798_p4, %p3978_p5 }
0x10e7   : > { %p3804_p11 = por %p3803_p10, %p3802_p9 }
0x10e8   : > { %p3800_p8 = pneg %p3799_p7 }
0x10ea   : > { %p3805_p12 = pnand %p3804_p11, %p3800_p8 }
0x10ec   : > { %3808 = shalt.err (!%p3805_p12)
}
0x10ed   : > { %s3853_s25 = smov 128   ;;  %s3854_s27 = smov 8  }
0x10ee   : > { %3471 = dma.vmem_to_hbm [thread:$0]  (%p3978_p5), %s4647_s21, 256, %s4645_s18, %s4649_s20, %s3853_s25, %s3853_s25, %s3854_s27  }
0x10ef PF: > { %s4733_s17 = sld [smem:[#allocation7_spill]] }
0x10f0   : > { %s4734_s30 = sld [smem:[#allocation5_spill]] }
0x10f5   : > { %p3477_p13 = scmp.ge.s32.totalorder %s4733_s17, 2 }
0x10f6   : > { %s2973_s24 = sand.u32 1, %s4734_s30  }
0x10f7   : > { %p3474_p0 = pnand %p3477_p13, %p3982_p6  ;;  %s2974_s26 = scalar_lea.sflag [#allocation3], %s2973_s24 }
0x10f9   : > { %p3475_p1 = pneg %p3474_p0 }
0x10fb   : > { %3826 = dma.done.wait (%p3475_p1), %s2974_s26, 256  }
0x10fc   : > { %3828 = vsyncadd (%p3475_p1), %s2974_s26, 4294967040  ;;  %s4736_s24 = sld [smem:[#allocation8_spill]]  ;;  %s4739_s21 = smov %s3835_s22 }
0x10fd   : > { %s4737_s19 = sld [smem:[#allocation6_spill]] }
0x10fe   : > { %s4738_s23 = sld [smem:[#allocation9_spill]] }
0x1102   : > { %p26_p2 = scmp.ge.s32.totalorder %s4736_s24, 4  }
0x1103   : > { %s4740_s22 = smov %s4737_s19 }
0x1104   :  { %28 = sbr.rel (!%p26_p2) target bundleno = 5 (0x5), region = 131 }
0x1109   :  { %2979 = vsyncpa [#allocation3], 1 }
0x110a   :  { %2981 = vsyncpa [#allocation3 + $0x1], 1 }

// kernel: parlai_mgen_decoder_forward.2
= control target key start
LH: loop header
LB: loop body
LE: loop exit
PB: predicated region body
PF: predicated region fallthrough
CT: control target
= control target key end

     0   :  { %s3802_s21 = smov 0   ;;  %s4464_s0 = inlined_call_operand.vmem [shape: f32[2,16,128], index: 0, kind: input, shape index: {}]   ;;  %s4465_s1 = inlined_call_operand.vmem [shape: f32[2,16,128], index: 1, kind: input, shape index: {}]   ;;  %s4466_s2 = inlined_call_operand.vmem [shape: f32[4,16,16], index: 2, kind: input, shape index: {}]   ;;  %s4467_s3 = inlined_call_operand.vmem [shape: f32[2,1,16], index: 3, kind: input, shape index: {}]   ;;  %s4468_s4 = inlined_call_operand.vmem [shape: f32[2,1,16], index: 4, kind: input, shape index: {}]   ;;  %s4469_s5 = inlined_call_operand.vmem [shape: f32[1,128], index: 5, kind: input, shape index: {}]   ;;  %s4470_s6 = inlined_call_operand.vmem [shape: bf16[128,384], index: 6, kind: input, shape index: {}]   ;;  %s4471_s7 = inlined_call_operand.vmem [shape: bf16[128,128], index: 7, kind: input, shape index: {}]   ;;  %s4472_s8 = inlined_call_operand.vmem [shape: f32[1,128], index: 8, kind: input, shape index: {}]   ;;  %s4473_s9 = inlined_call_operand.vmem [shape: bf16[128,128], index: 9, kind: input, shape index: {}]   ;;  %s4474_s10 = inlined_call_operand.vmem [shape: bf16[128,256], index: 10, kind: input, shape index: {}]   ;;  %s4475_s11 = inlined_call_operand.vmem [shape: bf16[128,128], index: 11, kind: input, shape index: {}]   ;;  %s4476_s12 = inlined_call_operand.vmem [shape: f32[1,128], index: 12, kind: input, shape index: {}]   ;;  %s4477_s13 = inlined_call_operand.vmem [shape: bf16[128,512], index: 13, kind: input, shape index: {}]   ;;  %s4478_s14 = inlined_call_operand.vmem [shape: bf16[256,128], index: 14, kind: input, shape index: {}]   ;;  %s4479_s15 = inlined_call_operand.vmem [shape: f32[1,128], index: 15, kind: input, shape index: {}]   ;;  %s4480_s16 = inlined_call_operand.vmem [shape: f32[2,16,128], index: 16, kind: output, shape index: {}]  }
   0x1   :  { %4481 = sst [smem:[#allocation2_spill]] %s4464_s0 }
   0x2 LB: > { %s3008_s22 = sadd.s32 4294967295, %s3708_s21   ;;  %p3012_p0 = scmp.ge.s32.totalorder %s3708_s21, 1  ;;  %s3708_s21 = sphi %s3802_s21, %s26_s21  }
   0x3   : > { %p488_p1 = scmp.lt.s32.totalorder %s3708_s21, 3 }
   0x5   : > { %p489_p2 = pnand %p3012_p0, %p488_p1 }
   0x6   : > { %p549_p3 = scmp.lt.s32.totalorder (!%p489_p2), %s3008_s22, 1  ;;  %s4482_s0 = sld [smem:[#allocation2_spill]] (!%p489_p2) }
   0x7   : > { %492 = sbr.rel (%p489_p2) target bundleno = 4146 (0x1032), region = 84  ;;  %s3713_s27 = smov (!%p489_p2), 64  }
   0x8   : > { %s3714_s29 = smov (!%p489_p2), 96   ;;  %s3715_s30 = smov (!%p489_p2), 32  }
   0xc   : > { %v3472_v0 = vld [vmem:[%s4470_s6 + $0xac] ss:$12 sps:$4 sm:$0xff]   ;;  %v3710_v1 = vmov 0.0   ;;  %v3474_v2 = vld [vmem:[%s4470_s6 + $0xa8] ss:$12 sps:$4 sm:$0xff]   ;;  %s4484_s22 = smov (!%p549_p3, %s3008_s22), 1  ;;  %v849_v56 = vlaneseq }
   0xd   : > { %3251 = vmatprep.subr.bf16.mxu1 %v3710_v1  ;;  %761 = vmatprep.subr.bf16.mxu0 %v3472_v0  ;;  %v3475_v3 = vld [vmem:[%s4470_s6 + $0xb0] ss:$12 sps:$4 sm:$0xff]   ;;  %s3823_s28 = sshll.u32 %s4484_s22, 4  ;;  %v3476_v8 = vld [vmem:[%s4470_s6 + $0x94] ss:$12 sps:$4 sm:$0xff]   ;;  %v3711_v26 = vmov 0   ;;  %s564_s19 = scalar_lea.vmem %s4468_s4, %s4484_s22 }
   0xe   : > { %762 = vmatpush1.bf16.msra.mxu0 %v3474_v2  ;;  %3252 = vmatpush3.bf16.msra.mxu1 %v3475_v3  ;;  %s3829_s17 = scalar_lea.vmem %s4482_s0, %s3823_s28  ;;  %v3478_v9 = vld [vmem:[%s4470_s6 + $0x90] ss:$12 sps:$4 sm:$0xff]   ;;  %v3479_v10 = vld [vmem:[%s4470_s6 + $0x98] ss:$12 sps:$4 sm:$0xff]   ;;  %v3483_v13 = vld [vmem:[%s4470_s6 + $0x80] ss:$12 sps:$4 sm:$0xff]   ;;  %s561_s23 = scalar_lea.vmem %s4467_s3, %s4484_s22 }
   0xf   : > { %3253 = vmatprep.subr.bf16.mxu1 %v3710_v1  ;;  %v3833_v4 = vld [vmem:[%s3829_s17] sm:$0xff]  ;;  %v3836_v5 = vld [vmem:[%s3829_s17 + $0x8] sm:$0xff]  ;;  %763 = vmatprep.subr.bf16.mxu0 %v3476_v8  ;;  %v3491_v19 = vld [vmem:[%s4470_s6 + $0x50] ss:$12 sps:$4 sm:$0xff]   ;;  %vm3712_vm0 = vmmov 0   ;;  %vm869_vm1 = vcmask 261120   ;;  %s558_s20 = scalar_lea.vmem %s4465_s1, %s3823_s28 }
  0x10   : > { %v577_v6 = vmul.f32 %v3833_v4, %v3833_v4  ;;  %v578_v7 = vmul.f32 %v3836_v5, %v3836_v5  ;;  %v3480_v11 = vld [vmem:[%s4470_s6 + $0x7c] ss:$12 sps:$4 sm:$0xff]   ;;  %v3482_v12 = vld [vmem:[%s4470_s6 + $0x78] ss:$12 sps:$4 sm:$0xff]   ;;  %v3486_v15 = vld [vmem:[%s4470_s6 + $0x60] ss:$12 sps:$4 sm:$0xff]   ;;  %793 = vmatprep.mubr.bf16.mxu0 %v3711_v26  ;;  %3267 = vmatprep.mubr.msk.bf16.mxu1 %vm3712_vm0, %v3710_v1 }
  0x11   : > { %v3484_v14 = vld [vmem:[%s4470_s6 + $0x64] ss:$12 sps:$4 sm:$0xff]   ;;  %v3487_v16 = vld [vmem:[%s4470_s6 + $0x68] ss:$12 sps:$4 sm:$0xff]   ;;  %v3488_v17 = vld [vmem:[%s4470_s6 + $0x4c] ss:$12 sps:$4 sm:$0xff]  }
  0x12   : > { %579 = vadd.xlane.f32.xlu0 %v577_v6  ;;  %764 = vmatpush1.bf16.msra.mxu0 %v3478_v9  ;;  %v3490_v18 = vld [vmem:[%s4470_s6 + $0x48] ss:$12 sps:$4 sm:$0xff]   ;;  %v3494_v21 = vld [vmem:[%s4470_s6 + $0x30] ss:$12 sps:$4 sm:$0xff]   ;;  %v3495_v22 = vld [vmem:[%s4470_s6 + $0x38] ss:$12 sps:$4 sm:$0xff]  }
  0x13   : > { %3254 = vmatpush3.bf16.msra.mxu1 %v3479_v10  ;;  %765 = vmatprep.subr.bf16.mxu0 %v3480_v11  ;;  %v3492_v20 = vld [vmem:[%s4470_s6 + $0x34] ss:$12 sps:$4 sm:$0xff]   ;;  %v3496_v23 = vld [vmem:[%s4470_s6 + $0x1c] ss:$12 sps:$4 sm:$0xff]   ;;  %v3498_v24 = vld [vmem:[%s4470_s6 + $0x18] ss:$12 sps:$4 sm:$0xff]  }
  0x14   : > { %3255 = vmatprep.subr.bf16.mxu1 %v3710_v1  ;;  %v3499_v25 = vld [vmem:[%s4470_s6 + $0x20] ss:$12 sps:$4 sm:$0xff]   ;;  %v3500_v27 = vld [vmem:[%s4470_s6 + $0x4] ss:$12 sps:$4 sm:$0xff]   ;;  %v3503_v29 = vld [vmem:[%s4470_s6 + $0x8] ss:$12 sps:$4 sm:$0xff]  }
  0x15   : > { %v3502_v28 = vld [vmem:[%s4470_s6] ss:$12 sps:$4 sm:$0xff]   ;;  %v850_v57 = vshrl.u32 %v849_v56, 7  ;;  %v3716_v60 = vmov -1e+09   ;;  %v853_v11 = vand.u32 127, %v849_v56 }
  0x16   : > { %581 = vadd.xlane.f32.xlu0 %v578_v7  ;;  %766 = vmatpush1.bf16.msra.mxu0 %v3482_v12  ;;  %v3019_v39 = vld [vmem:[%s4469_s5] ss:$0 sm:$0xff]  ;;  %vm919_vm9 = vcmask 130048   ;;  %vm1394_vm10 = vcmask 523264   ;;  %vm1397_vm11 = vcmask 785408  }
  0x17   : > { %3256 = vmatpush3.bf16.msra.mxu1 %v3483_v13  ;;  %767 = vmatprep.subr.bf16.mxu0 %v3484_v14  ;;  %v1779_v58 = vld [vmem:[%s564_s19] sm:$0x1]  ;;  %v860_v59 = vsub.s32 0, %v850_v57  ;;  %vm854_vm4 = vcmp.ge.s32.totalorder %v850_v57, %v853_v11  ;;  %v851_v13 = vadd.s32 8, %v850_v57 }
  0x18   : > { %3257 = vmatprep.subr.bf16.mxu1 %v3710_v1  ;;  %vm1780_vm2 = vcmp.gt.f32.partialorder %v1779_v58, 0.5  ;;  %v848_v9 = vld [vmem:[%s561_s23] sm:$0x1]  ;;  %v3055_v58 = vld [vmem:[%s4466_s2 + $0x38] sm:$0xff] }
  0x19   : > { %v1781_v61 = vsel %vm1780_vm2, 0.0, %v3716_v60  ;;  %vm856_vm3 = vcmp.gt.f32.partialorder %v848_v9, 0.5  ;;  %v867_v14 = vld [vmem:[%s4466_s2] sm:$0xff]  ;;  %vm855_vm7 = vcmp.ge.s32.totalorder %v851_v13, %v853_v11 }
  0x1a   : > { %768 = vmatpush1.bf16.msra.mxu0 %v3486_v15  ;;  %v3944_v62 = vrot.slane %v1781_v61, %v860_v59  ;;  %v857_v10 = vsel %vm856_vm3, 1, %v3711_v26 }
  0x1b   : > { %3258 = vmatpush3.bf16.msra.mxu1 %v3487_v16  ;;  %769 = vmatprep.subr.bf16.mxu0 %v3488_v17  ;;  %v861_v12 = vrot.slane %v857_v10, %v860_v59 }
  0x1c   : > { %3259 = vmatprep.subr.bf16.mxu1 %v3710_v1 }
  0x1d   : > { %vm862_vm5 = vcmp.eq.s32.totalorder %v861_v12, 1 }
  0x1e   : > { %770 = vmatpush1.bf16.msra.mxu0 %v3490_v18  ;;  %vm863_vm6 = vmand %vm854_vm4, %vm862_vm5 }
  0x1f   : > { %3260 = vmatpush3.bf16.msra.mxu1 %v3491_v19  ;;  %771 = vmatprep.subr.bf16.mxu0 %v3492_v20  ;;  %v865_v16 = vsel %vm863_vm6, 0.0, %v3716_v60  ;;  %vm864_vm8 = vmand %vm855_vm7, %vm862_vm5  ;;  %v868_v19 = vld [vmem:[%s4466_s2 + $0x8] sm:$0xff] }
  0x20   : > { %3261 = vmatprep.subr.bf16.mxu1 %v3710_v1 }
  0x22   : > { %772 = vmatpush1.bf16.msra.mxu0 %v3494_v21 }
  0x23   : > { %3262 = vmatpush3.bf16.msra.mxu1 %v3495_v22  ;;  %773 = vmatprep.subr.bf16.mxu0 %v3496_v23  ;;  %v866_v22 = vsel %vm864_vm8, 0.0, %v3716_v60 }
  0x24   : > { %3263 = vmatprep.subr.bf16.mxu1 %v3710_v1 }
  0x26   : > { %774 = vmatpush1.bf16.msra.mxu0 %v3498_v24 }
  0x27   : > { %3264 = vmatpush3.bf16.msra.mxu1 %v3499_v25  ;;  %775 = vmatprep.subr.bf16.mxu0 %v3500_v27 }
  0x28   : > { %3265 = vmatprep.subr.bf16.mxu1 %v3710_v1 }
  0x2a   : > { %776 = vmatpush1.bf16.msra.mxu0 %v3502_v28 }
  0x2b   : > { %3266 = vmatpush3.bf16.msra.mxu1 %v3503_v29  ;;  %3271 = vmatprep.subr.bf16.mxu0 %v3710_v1  ;;  %v3046_v29 = vld [vmem:[%s4466_s2 + $0x10] sm:$0xff] }
  0x2c   : > { %3277 = vmatprep.subr.bf16.mxu1 %v3710_v1 }
  0x9b   : > { %v580_v30 = vpop.xlane.xlu0 %579 }
  0x9c   : > { %v584_v31 = vmul.f32 0.0078125, %v580_v30 }
  0x9e   : > { %v586_v32 = vadd.f32 1e-06, %v584_v31 }
  0x9f   : > { %v582_v33 = vpop.xlane.xlu0 %581 }
  0xa0   : > { %3616 = vrsqrt.f32 %v586_v32  ;;  %v585_v34 = vmul.f32 0.0078125, %v582_v33  ;;  %v3047_v33 = vld [vmem:[%s4466_s2 + $0x18] sm:$0xff] }
  0xa2   : > { %v587_v35 = vadd.f32 1e-06, %v585_v34 }
  0xa4   : > { %3618 = vrsqrt.f32 %v587_v35 }
  0xad   : > { %v3617_v36 = vpop.eup %3616 }
  0xae   : > { %v590_v37 = vmul.f32 %v3617_v36, %v3833_v4 }
  0xb0   : > { %v598_v41 = vmul.f32 %v3019_v39, %v590_v37 }
  0xb1   : > { %v3619_v38 = vpop.eup %3618 }
  0xb2   : > { %v591_v40 = vmul.f32 %v3619_v38, %v3836_v5 }
  0xb4   : > { %v599_v42 = vmul.f32 %v3019_v39, %v591_v40  ;;  %v3050_v39 = vld [vmem:[%s4466_s2 + $0x20] sm:$0xff] }
  0xb6   : > { %v600_v43 = vpack.c.bf16 %v599_v42, %v598_v41 }
  0xb8   : > { %794 = vmatmul.mubr.bf16.vlgmr.msra.gmra.mxu0 %v600_v43  ;;  %3268 = vmatmul.mubr.bf16.vlgmr.msra.gmra.mxu1 %v600_v43 }
  0xb9   : > { %3273 = vmatprep.mubr.msk.bf16.mxu0 %vm3712_vm0, %v3710_v1  ;;  %3279 = vmatprep.mubr.msk.bf16.mxu1 %vm3712_vm0, %v3710_v1 }
 0x178   : > { %v795_v44 = vpop.f32.mrf.mxu0  ;;  %v838_v45 = vpop.f32.mrf.mxu1 }
 0x17a   : > { %v797_v46 = vpop.f32.mrf.mxu0  ;;  %v3269_v47 = vpop.f32.mrf.mxu1 }
 0x17c   : > { %v799_v48 = vpop.f32.mrf.mxu0  ;;  %v841_v49 = vpop.f32.mrf.mxu1 }
 0x17d   : > { %v3925_v50 = vpack.c.bf16 %v841_v49, %v838_v45  ;;  %v845_v55 = vpack.c.bf16 %v799_v48, %v795_v44  ;;  %v3051_v45 = vld [vmem:[%s4466_s2 + $0x28] sm:$0xff] }
 0x17e   : > { %v801_v51 = vpop.f32.mrf.mxu0  ;;  %v3270_v52 = vpop.f32.mrf.mxu1 }
 0x17f   : > { %v846_v53 = vpack.c.bf16 %v801_v51, %v797_v46  ;;  %3278 = vmatpush3.bf16.msra.mxu1 %v3925_v50  ;;  %v3054_v52 = vld [vmem:[%s4466_s2 + $0x30] sm:$0xff] }
 0x180   : > { %3289 = vmatprep.subr.bf16.mxu1 %v3710_v1 }
 0x181   : > { %1121 = vrot.lane.b32.xlu0 %v846_v53, %s3713_s27  ;;  %994 = vrot.lane.b32.xlu1 %v846_v53, %s3714_s29  ;;  %v874_v54 = vsel %vm869_vm1, %v846_v53, 0 }
 0x182   : > { %3272 = vmatpush3.bf16.xpose.msra.mxu0 %v874_v54 }
 0x183   : > { %3283 = vmatprep.subr.bf16.mxu0 %v3710_v1 }
 0x185   : > { %991 = vrot.lane.b32.xlu1 %v845_v55, %s3714_s29 }
 0x189   : > { %1119 = vrot.lane.b32.xlu1 %v845_v55, %s3713_s27  ;;  %3274 = vmatmul.mubr.msk.bf16.vlgmr.msra.gmra.mxu0 %vm869_vm1, %v845_v55 }
 0x18a   : > { %3285 = vmatprep.mubr.msk.bf16.mxu0 %vm3712_vm0, %v3710_v1 }
 0x18d   : > { %1247 = vrot.lane.b32.xlu1 %v846_v53, %s3715_s30 }
 0x191   : > { %1245 = vrot.lane.b32.xlu1 %v845_v55, %s3715_s30 }
 0x1f3   : > { %v995_v63 = vpop.permute.xlu1 %994  ;;  %v1122_v3 = vpop.permute.xlu0 %1121 }
 0x1f4   : > { %v1000_v0 = vsel %vm869_vm1, %v995_v63, 0  ;;  %v1127_v5 = vsel %vm869_vm1, %v1122_v3, 0 }
 0x1f5   : > { %3284 = vmatpush3.bf16.xpose.msra.mxu0 %v1000_v0 }
 0x1f6   : > { %3295 = vmatprep.subr.bf16.mxu0 %v3710_v1 }
 0x1f7   : > { %v992_v2 = vpop.permute.xlu1 %991 }
 0x1fb   : > { %v1120_v4 = vpop.permute.xlu1 %1119 }
 0x1fc   : > { %3286 = vmatmul.mubr.msk.bf16.vlgmr.msra.gmra.mxu0 %vm869_vm1, %v992_v2 }
 0x1fd   : > { %3296 = vmatpush3.bf16.xpose.msra.mxu0 %v1127_v5  ;;  %3297 = vmatprep.mubr.msk.bf16.mxu0 %vm3712_vm0, %v3710_v1 }
 0x1fe   : > { %3307 = vmatprep.subr.bf16.mxu0 %v3710_v1 }
 0x1ff   : > { %v1248_v6 = vpop.permute.xlu1 %1247 }
 0x200   : > { %v1253_v7 = vsel %vm869_vm1, %v1248_v6, 0 }
 0x203   : > { %v1246_v8 = vpop.permute.xlu1 %1245 }
 0x204   : > { %3298 = vmatmul.mubr.msk.bf16.vlgmr.msra.gmra.mxu0 %vm869_vm1, %v1120_v4 }
 0x205   : > { %3308 = vmatpush3.bf16.xpose.msra.mxu0 %v1253_v7  ;;  %3309 = vmatprep.mubr.msk.bf16.mxu0 %vm3712_vm0, %v3710_v1 }
 0x206   : > { %3319 = vmatprep.subr.bf16.mxu0 %v3710_v1 }
 0x20c   : > { %3310 = vmatmul.mubr.msk.bf16.vlgmr.msra.gmra.mxu0 %vm869_vm1, %v1246_v8 }
 0x20d   : > { %3335 = vmatprep.mubr.msk.bf16.mxu0 %vm3712_vm0, %v3710_v1 }
 0x249   : > { %v910_v15 = vpop.f32.mrf.mxu0 }
 0x24a   : > { %v911_v17 = vadd.f32 %v910_v15, %v867_v14 }
 0x24b   : > { %v3275_v18 = vpop.f32.mrf.mxu0 }
 0x24c   : > { %v917_v20 = vadd.f32 %v911_v17, %v865_v16 }
 0x24d   : > { %v913_v21 = vpop.f32.mrf.mxu0 }
 0x24e   : > { %v914_v23 = vadd.f32 %v913_v21, %v868_v19  ;;  %v920_v24 = vsel %vm919_vm9, %v917_v20, -inf }
 0x24f   : > { %921 = vmax.xlane.f32.xlu1 %v920_v24  ;;  %v3276_v25 = vpop.f32.mrf.mxu0 }
 0x250   : > { %v918_v27 = vadd.f32 %v914_v23, %v866_v22 }
 0x252   : > { %v923_v28 = vsel %vm919_vm9, %v918_v27, -inf }
 0x253   : > { %924 = vmax.xlane.f32.xlu0 %v923_v28 }
 0x2bc   : > { %v1036_v30 = vpop.f32.mrf.mxu0 }
 0x2bd   : > { %v1037_v31 = vadd.f32 %v3046_v29, %v1036_v30 }
 0x2be   : > { %v3287_v32 = vpop.f32.mrf.mxu0 }
 0x2bf   : > { %v1043_v34 = vadd.f32 %v1037_v31, %v865_v16 }
 0x2c0   : > { %v1039_v35 = vpop.f32.mrf.mxu0 }
 0x2c1   : > { %v1040_v36 = vadd.f32 %v3047_v33, %v1039_v35  ;;  %v1045_v37 = vsel %vm919_vm9, %v1043_v34, -inf }
 0x2c2   : > { %1046 = vmax.xlane.f32.xlu1 %v1045_v37  ;;  %v3288_v38 = vpop.f32.mrf.mxu0 }
 0x2c3   : > { %v1044_v40 = vadd.f32 %v1040_v36, %v866_v22 }
 0x2c4   : > { %v1163_v41 = vpop.f32.mrf.mxu0 }
 0x2c5   : > { %v1164_v42 = vadd.f32 %v3050_v39, %v1163_v41  ;;  %v1048_v43 = vsel %vm919_vm9, %v1044_v40, -inf }
 0x2c6   : > { %1049 = vmax.xlane.f32.xlu1 %v1048_v43  ;;  %v3299_v44 = vpop.f32.mrf.mxu0 }
 0x2c7   : > { %v1170_v46 = vadd.f32 %v1164_v42, %v865_v16 }
 0x2c8   : > { %v1166_v47 = vpop.f32.mrf.mxu0 }
 0x2c9   : > { %v1167_v48 = vadd.f32 %v3051_v45, %v1166_v47  ;;  %v1172_v49 = vsel %vm919_vm9, %v1170_v46, -inf }
 0x2ca   : > { %1173 = vmax.xlane.f32.xlu0 %v1172_v49  ;;  %v3300_v51 = vpop.f32.mrf.mxu0 }
 0x2cb   : > { %v1171_v53 = vadd.f32 %v1167_v48, %v866_v22 }
 0x2cc   : > { %v1289_v54 = vpop.f32.mrf.mxu0 }
 0x2cd   : > { %v1290_v55 = vadd.f32 %v3054_v52, %v1289_v54  ;;  %v1175_v56 = vsel %vm919_vm9, %v1171_v53, -inf }
 0x2ce   : > { %1176 = vmax.xlane.f32.xlu1 %v1175_v56  ;;  %v3311_v57 = vpop.f32.mrf.mxu0 }
 0x2cf   : > { %v1296_v59 = vadd.f32 %v1290_v55, %v865_v16 }
 0x2d0   : > { %v1292_v60 = vpop.f32.mrf.mxu0 }
 0x2d1   : > { %v1293_v61 = vadd.f32 %v3055_v58, %v1292_v60  ;;  %v1298_v63 = vsel %vm919_vm9, %v1296_v59, -inf }
 0x2d2   : > { %1299 = vmax.xlane.f32.xlu0 %v1298_v63  ;;  %v3312_v0 = vpop.f32.mrf.mxu0 }
 0x2d3   : > { %v3997_v2 = vadd.f32 %v1293_v61, %v866_v22 }
 0x2d5   : > { %v1301_v3 = vsel %vm919_vm9, %v3997_v2, -inf }
 0x2d6   : > { %1302 = vmax.xlane.f32.xlu1 %v1301_v3 }
 0x2d8   : > { %v922_v4 = vpop.xlane.xlu1 %921 }
 0x2d9   : > { %v926_v5 = vsub.f32 %v917_v20, %v922_v4 }
 0x2db   : > { %v928_v6 = vmul.f32 1.442695, %v926_v5 }
 0x2dc   : > { %v925_v7 = vpop.xlane.xlu0 %924 }
 0x2dd   : > { %3620 = vpow2.f32 %v928_v6  ;;  %v927_v8 = vsub.f32 %v918_v27, %v925_v7 }
 0x2df   : > { %v930_v9 = vmul.f32 1.442695, %v927_v8 }
 0x2e1   : > { %3622 = vpow2.f32 %v930_v9 }
 0x2ea   : > { %v3621_v10 = vpop.eup %3620 }
 0x2eb   : > { %v932_v11 = vsel %vm919_vm9, %v3621_v10, 0.0 }
 0x2ec   : > { %933 = vadd.xlane.f32.xlu0 %v932_v11 }
 0x2ee   : > { %v3623_v12 = vpop.eup %3622 }
 0x2ef   : > { %v935_v13 = vsel %vm919_vm9, %v3623_v12, 0.0 }
 0x2f0   : > { %936 = vadd.xlane.f32.xlu1 %v935_v13 }
 0x34b   : > { %v1047_v14 = vpop.xlane.xlu1 %1046 }
 0x34c   : > { %v1051_v15 = vsub.f32 %v1043_v34, %v1047_v14 }
 0x34e   : > { %v1053_v16 = vmul.f32 1.442695, %v1051_v15 }
 0x34f   : > { %v1050_v17 = vpop.xlane.xlu1 %1049 }
 0x350   : > { %3624 = vpow2.f32 %v1053_v16  ;;  %v1052_v18 = vsub.f32 %v1044_v40, %v1050_v17 }
 0x352   : > { %v1055_v19 = vmul.f32 1.442695, %v1052_v18 }
 0x353   : > { %v1174_v20 = vpop.xlane.xlu0 %1173 }
 0x354   : > { %3626 = vpow2.f32 %v1055_v19  ;;  %v1178_v21 = vsub.f32 %v1170_v46, %v1174_v20 }
 0x356   : > { %v1180_v22 = vmul.f32 1.442695, %v1178_v21  ;;  %v3504_v21 = vld [vmem:[%s4471_s7 + $0x38] sm:$0xff]  }
 0x357   : > { %v1177_v23 = vpop.xlane.xlu1 %1176  ;;  %3320 = vmatpush3.bf16.msra.mxu0 %v3504_v21  ;;  %v3535_v21 = vld [vmem:[%s4474_s10 + $0x14] ss:$8 sps:$4 sm:$0xff]  }
 0x358   : > { %3628 = vpow2.f32 %v1180_v22  ;;  %v1179_v24 = vsub.f32 %v1171_v53, %v1177_v23  ;;  %3321 = vmatprep.subr.bf16.mxu0 %v3710_v1 }
 0x35a   : > { %v1182_v25 = vmul.f32 1.442695, %v1179_v24  ;;  %v3505_v24 = vld [vmem:[%s4471_s7 + $0x30] sm:$0xff]  }
 0x35b   : > { %v1300_v27 = vpop.xlane.xlu0 %1299  ;;  %3322 = vmatpush3.bf16.msra.mxu0 %v3505_v24  ;;  %v3537_v24 = vld [vmem:[%s4474_s10] ss:$8 sps:$4 sm:$0xff]  }
 0x35c   : > { %3630 = vpow2.f32 %v1182_v25  ;;  %v1304_v28 = vsub.f32 %v1296_v59, %v1300_v27  ;;  %3323 = vmatprep.subr.bf16.mxu0 %v3710_v1 }
 0x35d   : > { %v3625_v29 = vpop.eup %3624 }
 0x35e   : > { %v1306_v30 = vmul.f32 1.442695, %v1304_v28  ;;  %v1057_v31 = vsel %vm919_vm9, %v3625_v29, 0.0  ;;  %v3506_v28 = vld [vmem:[%s4471_s7 + $0x28] sm:$0xff]  }
 0x35f   : > { %1058 = vadd.xlane.f32.xlu0 %v1057_v31  ;;  %v1303_v40 = vpop.xlane.xlu1 %1302  ;;  %3324 = vmatpush3.bf16.msra.mxu0 %v3506_v28  ;;  %v573_v28 = vld [vmem:[%s558_s20] sm:$0xff] }
 0x360   : > { %3632 = vpow2.f32 %v1306_v30  ;;  %v1305_v45 = vsub.f32 %v3997_v2, %v1303_v40  ;;  %3325 = vmatprep.subr.bf16.mxu0 %v3710_v1 }
 0x361   : > { %v3627_v32 = vpop.eup %3626 }
 0x362   : > { %v1060_v33 = vsel %vm919_vm9, %v3627_v32, 0.0  ;;  %v1308_v49 = vmul.f32 1.442695, %v1305_v45 }
 0x363   : > { %1061 = vadd.xlane.f32.xlu1 %v1060_v33  ;;  %v3508_v33 = vld [vmem:[%s4471_s7 + $0x18] sm:$0xff]  }
 0x365   : > { %v3629_v34 = vpop.eup %3628 }
 0x366   : > { %v1184_v35 = vsel %vm919_vm9, %v3629_v34, 0.0 }
 0x367   : > { %1185 = vadd.xlane.f32.xlu0 %v1184_v35  ;;  %v3510_v35 = vld [vmem:[%s4471_s7 + $0x8] sm:$0xff]  }
 0x369   : > { %v3631_v36 = vpop.eup %3630 }
 0x36a   : > { %v1187_v37 = vsel %vm919_vm9, %v3631_v36, 0.0 }
 0x36b   : > { %1188 = vadd.xlane.f32.xlu1 %v1187_v37 }
 0x36d   : > { %v3633_v38 = vpop.eup %3632 }
 0x36e   : > { %v1310_v39 = vsel %vm919_vm9, %v3633_v38, 0.0 }
 0x36f   : > { %1311 = vadd.xlane.f32.xlu0 %v1310_v39 }
 0x375   : > { %v934_v41 = vpop.xlane.xlu0 %933 }
 0x376   : > { %3634 = vrcp.f32 %v934_v41 }
 0x379   : > { %v937_v42 = vpop.xlane.xlu1 %936 }
 0x37a   : > { %3636 = vrcp.f32 %v937_v42 }
 0x37b   : > { %3638 = vpow2.f32 %v1308_v49 }
 0x37c   : > { %1195 = vrot.lane.b32.xlu1 %v3925_v50, %s3713_s27 }
 0x383   : > { %v3635_v43 = vpop.eup %3634 }
 0x384   : > { %v940_v46 = vmul.f32 %v3635_v43, %v3621_v10 }
 0x385   : > { %1069 = vrot.lane.b32.xlu0 %v3925_v50, %s3714_s29 }
 0x387   : > { %v3637_v44 = vpop.eup %3636 }
 0x388   : > { %v941_v47 = vmul.f32 %v3637_v44, %v3623_v12  ;;  %v3639_v51 = vpop.eup %3638 }
 0x389   : > { %v1313_v52 = vsel %vm919_vm9, %v3639_v51, 0.0 }
 0x38a   : > { %v942_v48 = vpack.c.bf16 %v941_v47, %v940_v46 }
 0x38c   : > { %3280 = vmatmul.mubr.msk.bf16.vlgmr.msra.gmra.mxu1 %vm919_vm9, %v942_v48 }
 0x38d   : > { %3291 = vmatprep.mubr.msk.bf16.mxu1 %vm3712_vm0, %v3710_v1 }
 0x3a0   : > { %1314 = vadd.xlane.f32.xlu1 %v1313_v52 }
 0x3b1   : > { %1321 = vrot.lane.b32.xlu1 %v3925_v50, %s3715_s30 }
 0x3e8   : > { %v1059_v53 = vpop.xlane.xlu0 %1058 }
 0x3e9   : > { %3640 = vrcp.f32 %v1059_v53 }
 0x3ec   : > { %v1062_v54 = vpop.xlane.xlu1 %1061 }
 0x3ed   : > { %3642 = vrcp.f32 %v1062_v54 }
 0x3f0   : > { %v1186_v55 = vpop.xlane.xlu0 %1185 }
 0x3f1   : > { %3644 = vrcp.f32 %v1186_v55 }
 0x3f4   : > { %v1189_v56 = vpop.xlane.xlu1 %1188 }
 0x3f5   : > { %3646 = vrcp.f32 %v1189_v56 }
 0x3f6   : > { %v3641_v57 = vpop.eup %3640 }
 0x3f7   : > { %v1065_v60 = vmul.f32 %v3641_v57, %v3625_v29 }
 0x3f8   : > { %v1312_v58 = vpop.xlane.xlu0 %1311  ;;  %v1196_v50 = vpop.permute.xlu1 %1195 }
 0x3f9   : > { %3648 = vrcp.f32 %v1312_v58 }
 0x3fa   : > { %v3643_v59 = vpop.eup %3642 }
 0x3fb   : > { %v1066_v61 = vmul.f32 %v3643_v59, %v3627_v32  ;;  %v3507_v32 = vld [vmem:[%s4471_s7 + $0x20] sm:$0xff]   ;;  %v3512_v59 = vld [vmem:[%s4474_s10 + $0x70] ss:$8 sps:$4 sm:$0xff]  }
 0x3fc   : > { %v1070_v63 = vpop.permute.xlu0 %1069  ;;  %3326 = vmatpush3.bf16.msra.mxu0 %v3507_v32  ;;  %v3542_v32 = vld [vmem:[%s4473_s9 + $0x8] sm:$0xff]  }
 0x3fd   : > { %3290 = vmatpush3.bf16.msra.mxu1 %v1070_v63  ;;  %v1067_v0 = vpack.c.bf16 %v1066_v61, %v1065_v60  ;;  %3327 = vmatprep.subr.bf16.mxu0 %v3710_v1  ;;  %v3514_v60 = vld [vmem:[%s4474_s10 + $0x74] ss:$8 sps:$4 sm:$0xff]   ;;  %v3517_v61 = vld [vmem:[%s4474_s10 + $0x64] ss:$8 sps:$4 sm:$0xff]  }
 0x3fe   : > { %3301 = vmatprep.subr.bf16.mxu1 %v3710_v1  ;;  %v3645_v2 = vpop.eup %3644  ;;  %v3524_v63 = vld [vmem:[%s4473_s9 + $0x38] sm:$0xff]  }
 0x3ff   : > { %v1192_v4 = vmul.f32 %v3645_v2, %v3629_v34  ;;  %v3509_v34 = vld [vmem:[%s4471_s7 + $0x10] sm:$0xff]  }
 0x400   : > { %3292 = vmatmul.mubr.msk.bf16.vlgmr.msra.gmra.mxu1 %vm919_vm9, %v1067_v0  ;;  %3328 = vmatpush3.bf16.msra.mxu0 %v3508_v33  ;;  %v3515_v0 = vld [vmem:[%s4474_s10 + $0x60] ss:$8 sps:$4 sm:$0xff]   ;;  %v3520_v2 = vld [vmem:[%s4474_s10 + $0x54] ss:$8 sps:$4 sm:$0xff]  }
 0x401   : > { %3302 = vmatpush3.bf16.msra.mxu1 %v1196_v50  ;;  %3303 = vmatprep.mubr.msk.bf16.mxu1 %vm3712_vm0, %v3710_v1  ;;  %v3518_v50 = vld [vmem:[%s4474_s10 + $0x50] ss:$8 sps:$4 sm:$0xff]   ;;  %v3543_v33 = vld [vmem:[%s4473_s9] sm:$0xff]  }
 0x402   : > { %v3647_v3 = vpop.eup %3646  ;;  %3313 = vmatprep.subr.bf16.mxu1 %v3710_v1  ;;  %3329 = vmatprep.subr.bf16.mxu0 %v3710_v1 }
 0x403   : > { %v1193_v5 = vmul.f32 %v3647_v3, %v3631_v36  ;;  %v3511_v36 = vld [vmem:[%s4471_s7] sm:$0xff]  }
 0x404   : > { %3330 = vmatpush3.bf16.msra.mxu0 %v3509_v34  ;;  %v3523_v3 = vld [vmem:[%s4474_s10 + $0x44] ss:$8 sps:$4 sm:$0xff]  }
 0x405   : > { %v1194_v6 = vpack.c.bf16 %v1193_v5, %v1192_v4  ;;  %3331 = vmatprep.subr.bf16.mxu0 %v3710_v1  ;;  %v3521_v4 = vld [vmem:[%s4474_s10 + $0x40] ss:$8 sps:$4 sm:$0xff]   ;;  %v3527_v5 = vld [vmem:[%s4474_s10 + $0x34] ss:$8 sps:$4 sm:$0xff]  }
 0x406   : > { %v3649_v9 = vpop.eup %3648 }
 0x407   : > { %v1318_v11 = vmul.f32 %v3649_v9, %v3633_v38 }
 0x408   : > { %3304 = vmatmul.mubr.msk.bf16.vlgmr.msra.gmra.mxu1 %vm919_vm9, %v1194_v6  ;;  %3332 = vmatpush3.bf16.msra.mxu0 %v3510_v35  ;;  %v3525_v6 = vld [vmem:[%s4474_s10 + $0x30] ss:$8 sps:$4 sm:$0xff]  }
 0x409   : > { %3315 = vmatprep.mubr.msk.bf16.mxu1 %vm3712_vm0, %v3710_v1  ;;  %3333 = vmatprep.subr.bf16.mxu0 %v3710_v1 }
 0x40c   : > { %3334 = vmatpush3.bf16.msra.mxu0 %v3511_v36 }
 0x40d   : > { %1734 = vmatprep.subr.bf16.mxu0 %v3514_v60 }
 0x429   : > { %v1315_v7 = vpop.xlane.xlu1 %1314 }
 0x42a   : > { %3650 = vrcp.f32 %v1315_v7 }
 0x42d   : > { %v1322_v8 = vpop.permute.xlu1 %1321 }
 0x42e   : > { %3314 = vmatpush3.bf16.msra.mxu1 %v1322_v8  ;;  %v3700_v8 = vld [vmem:[%s3829_s17] sm:$0xff] }
 0x42f   : > { %3339 = vmatprep.subr.bf16.mxu1 %v3710_v1 }
 0x437   : > { %v3651_v10 = vpop.eup %3650 }
 0x438   : > { %v1319_v12 = vmul.f32 %v3651_v10, %v3639_v51 }
 0x43a   : > { %v1320_v13 = vpack.c.bf16 %v1319_v12, %v1318_v11 }
 0x43c   : > { %3316 = vmatmul.mubr.msk.bf16.vlgmr.msra.gmra.mxu1 %vm919_vm9, %v1320_v13  ;;  %v3701_v13 = vld [vmem:[%s3829_s17 + $0x8] sm:$0xff] }
 0x43d   : > { %3355 = vmatprep.mubr.msk.bf16.mxu1 %vm3712_vm0, %v3710_v1  ;;  %3340 = vmatpush3.bf16.msra.mxu1 %v3524_v63 }
 0x43e   : > { %3341 = vmatprep.subr.bf16.mxu1 %v3710_v1 }
 0x44c   : > { %v980_v14 = vpop.f32.mrf.mxu1 }
 0x44e   : > { %v3281_v15 = vpop.f32.mrf.mxu1 }
 0x450   : > { %v983_v16 = vpop.f32.mrf.mxu1 }
 0x452   : > { %v3282_v17 = vpop.f32.mrf.mxu1 }
 0x453   : > { %v3528_v17 = vld [vmem:[%s4473_s9 + $0x30] sm:$0xff]  }
 0x454   : > { %3342 = vmatpush3.bf16.msra.mxu1 %v3528_v17 }
 0x455   : > { %3343 = vmatprep.subr.bf16.mxu1 %v3710_v1 }
 0x4c0   : > { %v1109_v18 = vpop.f32.mrf.mxu1 }
 0x4c2   : > { %v3293_v19 = vpop.f32.mrf.mxu1 }
 0x4c3   : > { %v3529_v19 = vld [vmem:[%s4474_s10 + $0x20] ss:$8 sps:$4 sm:$0xff]  }
 0x4c4   : > { %v1112_v20 = vpop.f32.mrf.mxu1 }
 0x4c5   : > { %v3442_v22 = vpack.i.bf16 %v1112_v20, %v1109_v18  ;;  %v3531_v18 = vld [vmem:[%s4474_s10 + $0x24] ss:$8 sps:$4 sm:$0xff]  }
 0x4c6   : > { %v3294_v23 = vpop.f32.mrf.mxu1  ;;  %v3532_v20 = vld [vmem:[%s4473_s9 + $0x28] sm:$0xff]  }
 0x4c7   : > { %3443 = vrot.lane.b32.xlu0 %v3442_v22, %s3715_s30  ;;  %3344 = vmatpush3.bf16.msra.mxu1 %v3532_v20  ;;  %v3533_v22 = vld [vmem:[%s4474_s10 + $0x10] ss:$8 sps:$4 sm:$0xff]   ;;  %v3536_v23 = vld [vmem:[%s4473_s9 + $0x20] sm:$0xff]  }
 0x4c8   : > { %v1235_v25 = vpop.f32.mrf.mxu1  ;;  %3345 = vmatprep.subr.bf16.mxu1 %v3710_v1 }
 0x4ca   : > { %v3305_v27 = vpop.f32.mrf.mxu1 }
 0x4cb   : > { %3346 = vmatpush3.bf16.msra.mxu1 %v3536_v23  ;;  %v3540_v27 = vld [vmem:[%s4473_s9 + $0x18] sm:$0xff]  }
 0x4cc   : > { %v1238_v29 = vpop.f32.mrf.mxu1  ;;  %3347 = vmatprep.subr.bf16.mxu1 %v3710_v1 }
 0x4cd   : > { %v3447_v30 = vpack.i.bf16 %v1238_v29, %v1235_v25  ;;  %v3539_v25 = vld [vmem:[%s4474_s10 + $0x4] ss:$8 sps:$4 sm:$0xff]  }
 0x4ce   : > { %v3306_v31 = vpop.f32.mrf.mxu1  ;;  %v574_v29 = vld [vmem:[%s558_s20 + $0x8] sm:$0xff] }
 0x4cf   : > { %3448 = vrot.lane.b32.xlu1 %v3447_v30, %s3713_s27  ;;  %v575_v30 = vpack.c.bf16 %v574_v29, %v573_v28  ;;  %3348 = vmatpush3.bf16.msra.mxu1 %v3540_v27  ;;  %v3541_v31 = vld [vmem:[%s4473_s9 + $0x10] sm:$0xff]  }
 0x4d0   : > { %3349 = vmatprep.subr.bf16.mxu1 %v3710_v1 }
 0x4d3   : > { %3350 = vmatpush3.bf16.msra.mxu1 %v3541_v31 }
 0x4d4   : > { %3351 = vmatprep.subr.bf16.mxu1 %v3710_v1 }
 0x4d7   : > { %3352 = vmatpush3.bf16.msra.mxu1 %v3542_v32 }
 0x4d8   : > { %3353 = vmatprep.subr.bf16.mxu1 %v3710_v1 }
 0x4db   : > { %3354 = vmatpush3.bf16.msra.mxu1 %v3543_v33 }
 0x4dc   : > { %3359 = vmatprep.subr.bf16.mxu1 %v3710_v1 }
 0x4fc   : > { %v1361_v37 = vpop.f32.mrf.mxu1 }
 0x4fe   : > { %v3317_v38 = vpop.f32.mrf.mxu1 }
 0x500   : > { %v1364_v39 = vpop.f32.mrf.mxu1 }
 0x501   : > { %v3452_v40 = vpack.i.bf16 %v1364_v39, %v1361_v37 }
 0x502   : > { %v3318_v41 = vpop.f32.mrf.mxu1 }
 0x503   : > { %3453 = vrot.lane.b32.xlu0 %v3452_v40, %s3714_s29 }
 0x539   : > { %v3444_v42 = vpop.permute.xlu0 %3443 }
 0x53a   : > { %v3446_v44 = vunpack.i.h.bf16 %v3444_v42  ;;  %v3445_v45 = vunpack.i.l.bf16 %v3444_v42 }
 0x53c   : > { %v1393_v49 = vsel %vm869_vm1, %v983_v16, %v3446_v44  ;;  %v1392_v51 = vsel %vm869_vm1, %v980_v14, %v3445_v45 }
 0x541   : > { %v3449_v43 = vpop.permute.xlu1 %3448 }
 0x542   : > { %v3451_v46 = vunpack.i.h.bf16 %v3449_v43  ;;  %v3450_v47 = vunpack.i.l.bf16 %v3449_v43  ;;  %v3066_v43 = vld [vmem:[%s4472_s8] ss:$0 sm:$0xff] }
 0x544   : > { %v1396_v54 = vsel %vm1394_vm10, %v1393_v49, %v3451_v46  ;;  %v1395_v55 = vsel %vm1394_vm10, %v1392_v51, %v3450_v47 }
 0x575   : > { %v3454_v48 = vpop.permute.xlu0 %3453 }
 0x576   : > { %v3456_v52 = vunpack.i.h.bf16 %v3454_v48  ;;  %v3455_v53 = vunpack.i.l.bf16 %v3454_v48 }
 0x578   : > { %v1398_v56 = vsel %vm1397_vm11, %v1395_v55, %v3455_v53  ;;  %v1399_v57 = vsel %vm1397_vm11, %v1396_v54, %v3456_v52 }
 0x579   : > { %v1400_v58 = vpack.c.bf16 %v1399_v57, %v1398_v56 }
 0x57b   : > { %3336 = vmatmul.mubr.bf16.vlgmr.msra.gmra.mxu0 %v1400_v58 }
 0x57c   : > { %1766 = vmatprep.mubr.bf16.mxu0 %v3711_v26  ;;  %1735 = vmatpush1.bf16.msra.mxu0 %v3512_v59 }
 0x57d   : > { %1736 = vmatprep.subr.bf16.mxu0 %v3517_v61 }
 0x580   : > { %1737 = vmatpush1.bf16.msra.mxu0 %v3515_v0 }
 0x581   : > { %1738 = vmatprep.subr.bf16.mxu0 %v3520_v2 }
 0x584   : > { %1739 = vmatpush1.bf16.msra.mxu0 %v3518_v50 }
 0x585   : > { %1740 = vmatprep.subr.bf16.mxu0 %v3523_v3 }
 0x588   : > { %1741 = vmatpush1.bf16.msra.mxu0 %v3521_v4 }
 0x589   : > { %1742 = vmatprep.subr.bf16.mxu0 %v3527_v5 }
 0x58c   : > { %1743 = vmatpush1.bf16.msra.mxu0 %v3525_v6 }
 0x58d   : > { %1744 = vmatprep.subr.bf16.mxu0 %v3531_v18 }
 0x590   : > { %1745 = vmatpush1.bf16.msra.mxu0 %v3529_v19 }
 0x591   : > { %1746 = vmatprep.subr.bf16.mxu0 %v3535_v21 }
 0x594   : > { %1747 = vmatpush1.bf16.msra.mxu0 %v3533_v22 }
 0x595   : > { %1748 = vmatprep.subr.bf16.mxu0 %v3539_v25 }
 0x598   : > { %1749 = vmatpush1.bf16.msra.mxu0 %v3537_v24 }
 0x599   : > { %3383 = vmatprep.subr.bf16.mxu0 %v3710_v1 }
 0x59b   : > { %1767 = vmatmul.mubr.bf16.vlgmr.msra.gmra.mxu0 %v575_v30 }
 0x59c   : > { %3385 = vmatprep.mubr.msk.bf16.mxu0 %vm3712_vm0, %v3710_v1 }
 0x63b   : > { %v1499_v7 = vpop.f32.mrf.mxu0 }
 0x63c   : > { %v4107_v9 = vadd.f32 %v3700_v8, %v1499_v7 }
 0x63d   : > { %v3337_v10 = vpop.f32.mrf.mxu0 }
 0x63e   : > { %v1509_v11 = vmul.f32 %v4107_v9, %v4107_v9 }
 0x63f   : > { %v1502_v12 = vpop.f32.mrf.mxu0 }
 0x640   : > { %v4112_v14 = vadd.f32 %v3701_v13, %v1502_v12  ;;  %1511 = vadd.xlane.f32.xlu1 %v1509_v11 }
 0x641   : > { %v3338_v15 = vpop.f32.mrf.mxu0 }
 0x642   : > { %v1510_v16 = vmul.f32 %v4112_v14, %v4112_v14 }
 0x644   : > { %1513 = vadd.xlane.f32.xlu0 %v1510_v16 }
 0x65b   : > { %v1768_v48 = vpop.f32.mrf.mxu0 }
 0x65d   : > { %v1770_v49 = vpop.f32.mrf.mxu0 }
 0x65f   : > { %v1772_v51 = vpop.f32.mrf.mxu0 }
 0x660   : > { %v1777_v52 = vpack.c.bf16 %v1772_v51, %v1768_v48 }
 0x661   : > { %v1774_v56 = vpop.f32.mrf.mxu0 }
 0x662   : > { %v1792_v53 = vsel %vm869_vm1, %v1777_v52, 0  ;;  %v4178_v59 = vpack.c.bf16 %v1774_v56, %v1770_v49 }
 0x6c9   : > { %v1512_v34 = vpop.xlane.xlu1 %1511 }
 0x6ca   : > { %v1515_v35 = vmul.f32 0.0078125, %v1512_v34 }
 0x6cc   : > { %v1517_v36 = vadd.f32 1e-06, %v1515_v35 }
 0x6cd   : > { %v1514_v37 = vpop.xlane.xlu0 %1513 }
 0x6ce   : > { %3652 = vrsqrt.f32 %v1517_v36  ;;  %v1516_v38 = vmul.f32 0.0078125, %v1514_v37 }
 0x6d0   : > { %v1518_v39 = vadd.f32 1e-06, %v1516_v38 }
 0x6d2   : > { %3654 = vrsqrt.f32 %v1518_v39 }
 0x6db   : > { %v3653_v40 = vpop.eup %3652 }
 0x6dc   : > { %v1521_v41 = vmul.f32 %v3653_v40, %v4107_v9 }
 0x6de   : > { %v1529_v45 = vmul.f32 %v3066_v43, %v1521_v41 }
 0x6df   : > { %v3655_v42 = vpop.eup %3654 }
 0x6e0   : > { %v1522_v44 = vmul.f32 %v3655_v42, %v4112_v14 }
 0x6e2   : > { %v1530_v46 = vmul.f32 %v3066_v43, %v1522_v44 }
 0x6e4   : > { %v1531_v47 = vpack.c.bf16 %v1530_v46, %v1529_v45 }
 0x6e6   : > { %3356 = vmatmul.mubr.bf16.vlgmr.msra.gmra.mxu1 %v1531_v47 }
 0x6e7   : > { %3361 = vmatprep.mubr.msk.bf16.mxu1 %vm3712_vm0, %v3710_v1  ;;  %3360 = vmatpush3.bf16.xpose.msra.mxu1 %v1792_v53 }
 0x6e8   : > { %3365 = vmatprep.subr.bf16.mxu1 %v3710_v1 }
 0x7a6   : > { %v1630_v54 = vpop.f32.mrf.mxu1 }
 0x7a8   : > { %v3357_v55 = vpop.f32.mrf.mxu1 }
 0x7aa   : > { %v1633_v57 = vpop.f32.mrf.mxu1 }
 0x7ab   : > { %v1637_v58 = vpack.c.bf16 %v1633_v57, %v1630_v54 }
 0x7ac   : > { %v3358_v60 = vpop.f32.mrf.mxu1 }
 0x7ad   : > { %3362 = vmatmul.mubr.msk.bf16.vlgmr.msra.gmra.mxu1 %vm869_vm1, %v1637_v58 }
 0x7ae   : > { %3366 = vmatpush3.bf16.msra.mxu1 %v4178_v59  ;;  %3367 = vmatprep.mubr.msk.bf16.mxu1 %vm3712_vm0, %v3710_v1 }
 0x7af   : > { %3371 = vmatprep.subr.bf16.mxu1 %v3710_v1 }
 0x86d   : > { %v1828_v61 = vpop.f32.mrf.mxu1 }
 0x86e   : > { %v1829_v63 = vadd.f32 %v1828_v61, %v3944_v62 }
 0x86f   : > { %v3363_v0 = vpop.f32.mrf.mxu1 }
 0x870   : > { %v1835_v2 = vsel %vm919_vm9, %v1829_v63, -inf }
 0x871   : > { %1836 = vmax.xlane.f32.xlu0 %v1835_v2  ;;  %v1831_v50 = vpop.f32.mrf.mxu1 }
 0x872   : > { %v1832_v3 = vadd.f32 %v1831_v50, %v3944_v62 }
 0x873   : > { %v3364_v4 = vpop.f32.mrf.mxu1 }
 0x874   : > { %v1838_v5 = vsel %vm919_vm9, %v1832_v3, -inf }
 0x875   : > { %1839 = vmax.xlane.f32.xlu1 %v1838_v5 }
 0x8fa   : > { %v1837_v6 = vpop.xlane.xlu0 %1836 }
 0x8fb   : > { %v1841_v7 = vsub.f32 %v1829_v63, %v1837_v6 }
 0x8fd   : > { %v1843_v8 = vmul.f32 1.442695, %v1841_v7 }
 0x8fe   : > { %v1840_v10 = vpop.xlane.xlu1 %1839 }
 0x8ff   : > { %3656 = vpow2.f32 %v1843_v8  ;;  %v1842_v11 = vsub.f32 %v1832_v3, %v1840_v10 }
 0x901   : > { %v1845_v12 = vmul.f32 1.442695, %v1842_v11 }
 0x903   : > { %3658 = vpow2.f32 %v1845_v12 }
 0x90c   : > { %v3657_v13 = vpop.eup %3656 }
 0x90d   : > { %v1847_v15 = vsel %vm919_vm9, %v3657_v13, 0.0 }
 0x90e   : > { %1848 = vadd.xlane.f32.xlu0 %v1847_v15 }
 0x910   : > { %v3659_v16 = vpop.eup %3658 }
 0x911   : > { %v1850_v17 = vsel %vm919_vm9, %v3659_v16, 0.0 }
 0x912   : > { %1851 = vadd.xlane.f32.xlu1 %v1850_v17 }
 0x923   : > { %1903 = vrot.lane.b32.xlu1 %v1637_v58, %s3714_s29 }
 0x924   : > { %1906 = vrot.lane.b32.xlu0 %v1777_v52, %s3714_s29 }
 0x927   : > { %2028 = vrot.lane.b32.xlu1 %v1777_v52, %s3713_s27 }
 0x928   : > { %2026 = vrot.lane.b32.xlu0 %v1637_v58, %s3713_s27 }
 0x92b   : > { %2149 = vrot.lane.b32.xlu1 %v1777_v52, %s3715_s30 }
 0x92c   : > { %2147 = vrot.lane.b32.xlu0 %v1637_v58, %s3715_s30 }
 0x997   : > { %v1849_v18 = vpop.xlane.xlu0 %1848 }
 0x998   : > { %3660 = vrcp.f32 %v1849_v18 }
 0x99b   : > { %v1852_v19 = vpop.xlane.xlu1 %1851  ;;  %v1907_v23 = vpop.permute.xlu0 %1906 }
 0x99c   : > { %3662 = vrcp.f32 %v1852_v19  ;;  %v1912_v33 = vsel %vm869_vm1, %v1907_v23, 0 }
 0x99f   : > { %v1904_v20 = vpop.permute.xlu1 %1903  ;;  %v2027_v30 = vpop.permute.xlu0 %2026 }
 0x9a3   : > { %v2029_v21 = vpop.permute.xlu1 %2028  ;;  %v2148_v34 = vpop.permute.xlu0 %2147 }
 0x9a4   : > { %v2034_v22 = vsel %vm869_vm1, %v2029_v21, 0 }
 0x9a5   : > { %3384 = vmatpush3.bf16.xpose.msra.mxu0 %v2034_v22  ;;  %v3661_v24 = vpop.eup %3660 }
 0x9a6   : > { %3395 = vmatprep.subr.bf16.mxu0 %v3710_v1  ;;  %v1855_v28 = vmul.f32 %v3661_v24, %v3657_v13 }
 0x9a7   : > { %v2150_v27 = vpop.permute.xlu1 %2149 }
 0x9a8   : > { %v2155_v31 = vsel %vm869_vm1, %v2150_v27, 0 }
 0x9a9   : > { %v3663_v25 = vpop.eup %3662 }
 0x9aa   : > { %v1856_v29 = vmul.f32 %v3663_v25, %v3659_v16 }
 0x9ac   : > { %3386 = vmatmul.mubr.msk.bf16.vlgmr.msra.gmra.mxu0 %vm869_vm1, %v2027_v30  ;;  %v1857_v32 = vpack.c.bf16 %v1856_v29, %v1855_v28 }
 0x9ad   : > { %3396 = vmatpush3.bf16.xpose.msra.mxu0 %v2155_v31  ;;  %3397 = vmatprep.mubr.msk.bf16.mxu0 %vm3712_vm0, %v3710_v1 }
 0x9ae   : > { %3368 = vmatmul.mubr.msk.bf16.vlgmr.msra.gmra.mxu1 %vm919_vm9, %v1857_v32  ;;  %3407 = vmatprep.subr.bf16.mxu0 %v3710_v1 }
 0x9af   : > { %3372 = vmatpush3.bf16.xpose.msra.mxu1 %v1912_v33  ;;  %3373 = vmatprep.mubr.msk.bf16.mxu1 %vm3712_vm0, %v3710_v1 }
 0x9b0   : > { %3377 = vmatprep.subr.bf16.mxu1 %v3710_v1 }
 0x9b4   : > { %3398 = vmatmul.mubr.msk.bf16.vlgmr.msra.gmra.mxu0 %vm869_vm1, %v2148_v34 }
 0x9b5   : > { %3423 = vmatprep.mubr.msk.bf16.mxu0 %vm3712_vm0, %v3710_v1 }
 0x9b6   : > { %3374 = vmatmul.mubr.msk.bf16.vlgmr.msra.gmra.mxu1 %vm869_vm1, %v1904_v20 }
 0x9b7   : > { %3379 = vmatprep.mubr.msk.bf16.mxu1 %vm3712_vm0, %v3710_v1 }
 0xa6c   : > { %v2070_v35 = vpop.f32.mrf.mxu0 }
 0xa6d   : > { %v2071_v56 = vadd.f32 %v2070_v35, %v3944_v62 }
 0xa6e   : > { %v4215_v36 = vpop.f32.mrf.mxu1  ;;  %v3387_v37 = vpop.f32.mrf.mxu0 }
 0xa6f   : > { %v2077_v0 = vsel %vm919_vm9, %v2071_v56, -inf }
 0xa70   : > { %v3369_v38 = vpop.f32.mrf.mxu1  ;;  %v2073_v39 = vpop.f32.mrf.mxu0 }
 0xa71   : > { %v2074_v49 = vadd.f32 %v2073_v39, %v3944_v62 }
 0xa72   : > { %v4217_v40 = vpop.f32.mrf.mxu1  ;;  %v3388_v41 = vpop.f32.mrf.mxu0 }
 0xa73   : > { %v2080_v58 = vsel %vm919_vm9, %v2074_v49, -inf }
 0xa74   : > { %v3370_v42 = vpop.f32.mrf.mxu1  ;;  %v2191_v43 = vpop.f32.mrf.mxu0 }
 0xa75   : > { %v2192_v61 = vadd.f32 %v2191_v43, %v3944_v62 }
 0xa76   : > { %v1948_v44 = vpop.f32.mrf.mxu1  ;;  %v3399_v45 = vpop.f32.mrf.mxu0 }
 0xa77   : > { %v1949_v46 = vadd.f32 %v1948_v44, %v3944_v62  ;;  %v2198_v2 = vsel %vm919_vm9, %v2192_v61, -inf }
 0xa78   : > { %v3375_v47 = vpop.f32.mrf.mxu1  ;;  %v2194_v48 = vpop.f32.mrf.mxu0 }
 0xa79   : > { %v1955_v51 = vsel %vm919_vm9, %v1949_v46, -inf  ;;  %v2195_v57 = vadd.f32 %v2194_v48, %v3944_v62 }
 0xa7a   : > { %v3400_v52 = vpop.f32.mrf.mxu0  ;;  %1956 = vmax.xlane.f32.xlu1 %v1955_v51  ;;  %v1951_v53 = vpop.f32.mrf.mxu1 }
 0xa7b   : > { %v1952_v54 = vadd.f32 %v1951_v53, %v3944_v62  ;;  %v2201_v63 = vsel %vm919_vm9, %v2195_v57, -inf }
 0xa7c   : > { %v3376_v55 = vpop.f32.mrf.mxu1 }
 0xa7d   : > { %v1958_v60 = vsel %vm919_vm9, %v1952_v54, -inf }
 0xa7e   : > { %2081 = vmax.xlane.f32.xlu1 %v2080_v58  ;;  %1959 = vmax.xlane.f32.xlu0 %v1958_v60 }
 0xa82   : > { %2202 = vmax.xlane.f32.xlu1 %v2201_v63  ;;  %2078 = vmax.xlane.f32.xlu0 %v2077_v0  ;;  %v3545_v63 = vld [vmem:[%s4475_s11 + $0x30] sm:$0xff]   ;;  %v3546_v0 = vld [vmem:[%s4475_s11 + $0x28] sm:$0xff]  }
 0xa86   : > { %2199 = vmax.xlane.f32.xlu0 %v2198_v2  ;;  %v3547_v2 = vld [vmem:[%s4475_s11 + $0x20] sm:$0xff]  }
 0xb03   : > { %v1957_v50 = vpop.xlane.xlu1 %1956 }
 0xb04   : > { %v1961_v16 = vsub.f32 %v1949_v46, %v1957_v50  ;;  %v3548_v50 = vld [vmem:[%s4475_s11 + $0x18] sm:$0xff]  }
 0xb06   : > { %v1963_v20 = vmul.f32 1.442695, %v1961_v16 }
 0xb07   : > { %v2082_v3 = vpop.xlane.xlu1 %2081  ;;  %v1960_v4 = vpop.xlane.xlu0 %1959 }
 0xb08   : > { %v2084_v5 = vsub.f32 %v2074_v49, %v2082_v3  ;;  %v1962_v7 = vsub.f32 %v1952_v54, %v1960_v4 }
 0xb0a   : > { %v2087_v6 = vmul.f32 1.442695, %v2084_v5  ;;  %v1965_v12 = vmul.f32 1.442695, %v1962_v7  ;;  %v3549_v5 = vld [vmem:[%s4475_s11 + $0x10] sm:$0xff]  }
 0xb0b   : > { %v2203_v8 = vpop.xlane.xlu1 %2202  ;;  %v2079_v10 = vpop.xlane.xlu0 %2078 }
 0xb0c   : > { %3664 = vpow2.f32 %v2087_v6  ;;  %v2205_v11 = vsub.f32 %v2195_v57, %v2203_v8  ;;  %v2083_v62 = vsub.f32 %v2071_v56, %v2079_v10  ;;  %v3550_v8 = vld [vmem:[%s4475_s11 + $0x8] sm:$0xff]  }
 0xb0e   : > { %v2208_v13 = vmul.f32 1.442695, %v2205_v11  ;;  %v2085_v15 = vmul.f32 1.442695, %v2083_v62 }
 0xb0f   : > { %v2200_v17 = vpop.xlane.xlu0 %2199 }
 0xb10   : > { %3666 = vpow2.f32 %v2208_v13  ;;  %v2204_v18 = vsub.f32 %v2192_v61, %v2200_v17  ;;  %v3544_v61 = vld [vmem:[%s4475_s11 + $0x38] sm:$0xff]  }
 0xb11   : > { %3668 = vpow2.f32 %v2085_v15  ;;  %3408 = vmatpush3.bf16.msra.mxu0 %v3544_v61  ;;  %v3581_v61 = vld [vmem:[%s4477_s13 + $0x6c] ss:$16 sps:$4 sm:$0xff]  }
 0xb12   : > { %3670 = vpow2.f32 %v1965_v12  ;;  %v2206_v19 = vmul.f32 1.442695, %v2204_v18  ;;  %3409 = vmatprep.subr.bf16.mxu0 %v3710_v1  ;;  %v3551_v12 = vld [vmem:[%s4475_s11] sm:$0xff]  }
 0xb14   : > { %3672 = vpow2.f32 %v2206_v19 }
 0xb15   : > { %3674 = vpow2.f32 %v1963_v20  ;;  %3410 = vmatpush3.bf16.msra.mxu0 %v3545_v63  ;;  %v3576_v63 = vld [vmem:[%s4477_s13 + $0x60] ss:$16 sps:$4 sm:$0xff]  }
 0xb16   : > { %3411 = vmatprep.subr.bf16.mxu0 %v3710_v1 }
 0xb19   : > { %v3665_v21 = vpop.eup %3664  ;;  %3412 = vmatpush3.bf16.msra.mxu0 %v3546_v0  ;;  %v3579_v0 = vld [vmem:[%s4477_s13 + $0x68] ss:$16 sps:$4 sm:$0xff]  }
 0xb1a   : > { %v2092_v22 = vsel %vm919_vm9, %v3665_v21, 0.0  ;;  %3413 = vmatprep.subr.bf16.mxu0 %v3710_v1 }
 0xb1b   : > { %2093 = vadd.xlane.f32.xlu1 %v2092_v22 }
 0xb1d   : > { %v3667_v23 = vpop.eup %3666  ;;  %3414 = vmatpush3.bf16.msra.mxu0 %v3547_v2  ;;  %v3584_v2 = vld [vmem:[%s4477_s13 + $0x44] ss:$16 sps:$4 sm:$0xff]  }
 0xb1e   : > { %v3669_v24 = vpop.eup %3668  ;;  %v2213_v25 = vsel %vm919_vm9, %v3667_v23, 0.0  ;;  %3415 = vmatprep.subr.bf16.mxu0 %v3710_v1 }
 0xb1f   : > { %v3671_v27 = vpop.eup %3670  ;;  %2214 = vadd.xlane.f32.xlu1 %v2213_v25  ;;  %v2089_v28 = vsel %vm919_vm9, %v3669_v24, 0.0 }
 0xb20   : > { %2090 = vadd.xlane.f32.xlu0 %v2089_v28  ;;  %v1970_v30 = vsel %vm919_vm9, %v3671_v27, 0.0 }
 0xb21   : > { %v3673_v29 = vpop.eup %3672  ;;  %3416 = vmatpush3.bf16.msra.mxu0 %v3548_v50  ;;  %v3587_v50 = vld [vmem:[%s4477_s13 + $0x4c] ss:$16 sps:$4 sm:$0xff]  }
 0xb22   : > { %v2210_v31 = vsel %vm919_vm9, %v3673_v29, 0.0  ;;  %v3675_v32 = vpop.eup %3674  ;;  %3417 = vmatprep.subr.bf16.mxu0 %v3710_v1 }
 0xb23   : > { %1971 = vadd.xlane.f32.xlu1 %v1970_v30  ;;  %v1967_v33 = vsel %vm919_vm9, %v3675_v32, 0.0 }
 0xb24   : > { %2211 = vadd.xlane.f32.xlu0 %v2210_v31 }
 0xb25   : > { %3418 = vmatpush3.bf16.msra.mxu0 %v3549_v5  ;;  %v3590_v5 = vld [vmem:[%s4477_s13 + $0x24] ss:$16 sps:$4 sm:$0xff]  }
 0xb26   : > { %3419 = vmatprep.subr.bf16.mxu0 %v3710_v1 }
 0xb28   : > { %1968 = vadd.xlane.f32.xlu0 %v1967_v33 }
 0xb29   : > { %3420 = vmatpush3.bf16.msra.mxu0 %v3550_v8  ;;  %v3591_v8 = vld [vmem:[%s4477_s13 + $0x28] ss:$16 sps:$4 sm:$0xff]  }
 0xb2a   : > { %3421 = vmatprep.subr.bf16.mxu0 %v3710_v1 }
 0xb2d   : > { %3422 = vmatpush3.bf16.msra.mxu0 %v3551_v12  ;;  %v3597_v12 = vld [vmem:[%s4477_s13 + $0x8] ss:$16 sps:$4 sm:$0xff]  }
 0xb34   : > { %2100 = vrot.lane.b32.xlu1 %v4178_v59, %s3713_s27 }
 0xb38   : > { %2221 = vrot.lane.b32.xlu1 %v4178_v59, %s3715_s30 }
 0xb3e   : > { %1979 = vrot.lane.b32.xlu0 %v4178_v59, %s3714_s29 }
 0xba4   : > { %v2094_v34 = vpop.xlane.xlu1 %2093 }
 0xba8   : > { %v2215_v35 = vpop.xlane.xlu1 %2214 }
 0xba9   : > { %v2091_v37 = vpop.xlane.xlu0 %2090 }
 0xbac   : > { %v1972_v38 = vpop.xlane.xlu1 %1971 }
 0xbad   : > { %v2212_v39 = vpop.xlane.xlu0 %2211  ;;  %3676 = vrcp.f32 %v1972_v38 }
 0xbb0   : > { %v2101_v48 = vpop.permute.xlu1 %2100 }
 0xbb1   : > { %v1969_v41 = vpop.xlane.xlu0 %1968 }
 0xbb2   : > { %3678 = vrcp.f32 %v1969_v41  ;;  %v3557_v41 = vld [vmem:[%s4477_s13 + $0xec] ss:$16 sps:$4 sm:$0xff]  }
 0xbb3   : > { %3680 = vrcp.f32 %v2091_v37  ;;  %2665 = vmatprep.subr.bf16.mxu0 %v3557_v41  ;;  %v3613_v41 = vld [vmem:[%s4478_s14 + $0x8] sm:$0xff]  }
 0xbb4   : > { %3682 = vrcp.f32 %v2094_v34  ;;  %v2222_v55 = vpop.permute.xlu1 %2221 }
 0xbb5   : > { %v1980_v42 = vpop.permute.xlu0 %1979  ;;  %3684 = vrcp.f32 %v2212_v39  ;;  %v3555_v39 = vld [vmem:[%s4477_s13 + $0xe8] ss:$16 sps:$4 sm:$0xff]  }
 0xbb6   : > { %3378 = vmatpush3.bf16.msra.mxu1 %v1980_v42  ;;  %3686 = vrcp.f32 %v2215_v35 }
 0xbb7   : > { %3389 = vmatprep.subr.bf16.mxu1 %v3710_v1 }
 0xbba   : > { %v3677_v43 = vpop.eup %3676 }
 0xbbb   : > { %v1976_v59 = vmul.f32 %v3677_v43, %v3671_v27 }
 0xbbf   : > { %v3679_v44 = vpop.eup %3678 }
 0xbc0   : > { %v1975_v45 = vmul.f32 %v3679_v44, %v3675_v32  ;;  %v3681_v47 = vpop.eup %3680 }
 0xbc1   : > { %v3683_v49 = vpop.eup %3682  ;;  %v2097_v51 = vmul.f32 %v3681_v47, %v3669_v24 }
 0xbc2   : > { %v1977_v46 = vpack.c.bf16 %v1976_v59, %v1975_v45  ;;  %v2098_v52 = vmul.f32 %v3683_v49, %v3665_v21  ;;  %v3685_v54 = vpop.eup %3684  ;;  %v3558_v49 = vld [vmem:[%s4477_s13 + $0xc0] ss:$16 sps:$4 sm:$0xff]  }
 0xbc3   : > { %v3687_v56 = vpop.eup %3686  ;;  %v2218_v57 = vmul.f32 %v3685_v54, %v3673_v29  ;;  %v3567_v54 = vld [vmem:[%s4477_s13 + $0xa8] ss:$16 sps:$4 sm:$0xff]  }
 0xbc4   : > { %3380 = vmatmul.mubr.msk.bf16.vlgmr.msra.gmra.mxu1 %vm919_vm9, %v1977_v46  ;;  %v2099_v53 = vpack.c.bf16 %v2098_v52, %v2097_v51  ;;  %v2219_v58 = vmul.f32 %v3687_v56, %v3667_v23  ;;  %v3566_v51 = vld [vmem:[%s4477_s13 + $0xa4] ss:$16 sps:$4 sm:$0xff]   ;;  %v3569_v52 = vld [vmem:[%s4477_s13 + $0xac] ss:$16 sps:$4 sm:$0xff]  }
 0xbc5   : > { %3390 = vmatpush3.bf16.msra.mxu1 %v2101_v48  ;;  %3391 = vmatprep.mubr.msk.bf16.mxu1 %vm3712_vm0, %v3710_v1  ;;  %v3560_v48 = vld [vmem:[%s4477_s13 + $0xc4] ss:$16 sps:$4 sm:$0xff]   ;;  %v3575_v56 = vld [vmem:[%s4477_s13 + $0x8c] ss:$16 sps:$4 sm:$0xff]  }
 0xbc6   : > { %3401 = vmatprep.subr.bf16.mxu1 %v3710_v1  ;;  %v2220_v60 = vpack.c.bf16 %v2219_v58, %v2218_v57  ;;  %v3570_v57 = vld [vmem:[%s4477_s13 + $0x80] ss:$16 sps:$4 sm:$0xff]   ;;  %v3573_v58 = vld [vmem:[%s4477_s13 + $0x88] ss:$16 sps:$4 sm:$0xff]  }
 0xbcc   : > { %3392 = vmatmul.mubr.msk.bf16.vlgmr.msra.gmra.mxu1 %vm919_vm9, %v2099_v53  ;;  %v3564_v53 = vld [vmem:[%s4477_s13 + $0xa0] ss:$16 sps:$4 sm:$0xff]  }
 0xbcd   : > { %3402 = vmatpush3.bf16.msra.mxu1 %v2222_v55  ;;  %3403 = vmatprep.mubr.msk.bf16.mxu1 %vm3712_vm0, %v3710_v1  ;;  %v3572_v55 = vld [vmem:[%s4477_s13 + $0x84] ss:$16 sps:$4 sm:$0xff]  }
 0xbd4   : > { %3404 = vmatmul.mubr.msk.bf16.vlgmr.msra.gmra.mxu1 %vm919_vm9, %v2220_v60  ;;  %v3578_v60 = vld [vmem:[%s4477_s13 + $0x64] ss:$16 sps:$4 sm:$0xff]  }
 0xbd5   : > { %2654 = vmatprep.mubr.bf16.mxu1 %v3711_v26 }
 0xc84   : > { %v2019_v3 = vpop.f32.mrf.mxu1 }
 0xc86   : > { %v3381_v4 = vpop.f32.mrf.mxu1 }
 0xc87   : > { %v3585_v4 = vld [vmem:[%s4477_s13 + $0x48] ss:$16 sps:$4 sm:$0xff]  }
 0xc88   : > { %v2022_v6 = vpop.f32.mrf.mxu1 }
 0xc89   : > { %v3457_v7 = vpack.i.bf16 %v2022_v6, %v2019_v3  ;;  %v3582_v3 = vld [vmem:[%s4477_s13 + $0x40] ss:$16 sps:$4 sm:$0xff]   ;;  %v3593_v6 = vld [vmem:[%s4477_s13 + $0x2c] ss:$16 sps:$4 sm:$0xff]  }
 0xc8a   : > { %v3382_v10 = vpop.f32.mrf.mxu1 }
 0xc8b   : > { %3458 = vrot.lane.b32.xlu0 %v3457_v7, %s3715_s30  ;;  %v3588_v7 = vld [vmem:[%s4477_s13 + $0x20] ss:$16 sps:$4 sm:$0xff]   ;;  %v3596_v10 = vld [vmem:[%s4477_s13 + $0x4] ss:$16 sps:$4 sm:$0xff]   ;;  %s569_s30 = scalar_lea.vmem %s4480_s16, %s3823_s28 }
 0xc8c   : > { %v2140_v11 = vpop.f32.mrf.mxu1 }
 0xc8e   : > { %v3393_v62 = vpop.f32.mrf.mxu1 }
 0xc8f   : > { %v3594_v62 = vld [vmem:[%s4477_s13] ss:$16 sps:$4 sm:$0xff]  }
 0xc90   : > { %v2143_v13 = vpop.f32.mrf.mxu1 }
 0xc91   : > { %v3462_v15 = vpack.i.bf16 %v2143_v13, %v2140_v11  ;;  %v3599_v11 = vld [vmem:[%s4477_s13 + $0xc] ss:$16 sps:$4 sm:$0xff]  }
 0xc92   : > { %v3394_v16 = vpop.f32.mrf.mxu1 }
 0xc93   : > { %3463 = vrot.lane.b32.xlu1 %v3462_v15, %s3713_s27 }
 0xc94   : > { %v2261_v17 = vpop.f32.mrf.mxu1 }
 0xc96   : > { %v3405_v18 = vpop.f32.mrf.mxu1 }
 0xc98   : > { %v2264_v19 = vpop.f32.mrf.mxu1 }
 0xc99   : > { %v3467_v20 = vpack.i.bf16 %v2264_v19, %v2261_v17 }
 0xc9a   : > { %v3406_v21 = vpop.f32.mrf.mxu1 }
 0xc9b   : > { %3468 = vrot.lane.b32.xlu0 %v3467_v20, %s3714_s29 }
 0xcfd   : > { %v3459_v22 = vpop.permute.xlu0 %3458 }
 0xcfe   : > { %v3461_v1 = vunpack.i.h.bf16 %v3459_v22  ;;  %v3460_v24 = vunpack.i.l.bf16 %v3459_v22 }
 0xd00   : > { %v2293_v29 = vsel %vm869_vm1, %v4217_v40, %v3461_v1  ;;  %v2292_v30 = vsel %vm869_vm1, %v4215_v36, %v3460_v24  ;;  %v3552_v40 = vld [vmem:[%s4477_s13 + $0xe0] ss:$16 sps:$4 sm:$0xff]   ;;  %v3554_v36 = vld [vmem:[%s4477_s13 + $0xe4] ss:$16 sps:$4 sm:$0xff]  }
 0xd01   : > { %2622 = vmatprep.subr.bf16.mxu1 %v3554_v36  ;;  %v3611_v36 = vld [vmem:[%s4478_s14 + $0x10] sm:$0xff]  }
 0xd02   : > { %2623 = vmatpush1.bf16.msra.mxu1 %v3552_v40  ;;  %v3610_v40 = vld [vmem:[%s4478_s14 + $0x50] sm:$0xff]  }
 0xd03   : > { %2624 = vmatprep.subr.bf16.mxu1 %v3560_v48 }
 0xd05   : > { %v3464_v23 = vpop.permute.xlu1 %3463 }
 0xd06   : > { %v3466_v25 = vunpack.i.h.bf16 %v3464_v23  ;;  %v3465_v27 = vunpack.i.l.bf16 %v3464_v23  ;;  %2625 = vmatpush1.bf16.msra.mxu1 %v3558_v49  ;;  %v3107_v23 = vld [vmem:[%s4476_s12] ss:$0 sm:$0xff] }
 0xd07   : > { %2626 = vmatprep.subr.bf16.mxu1 %v3566_v51 }
 0xd08   : > { %v2295_v33 = vsel %vm1394_vm10, %v2293_v29, %v3466_v25  ;;  %v2294_v34 = vsel %vm1394_vm10, %v2292_v30, %v3465_v27  ;;  %v3601_v29 = vld [vmem:[%s4478_s14 + $0x38] sm:$0xff]   ;;  %v3602_v30 = vld [vmem:[%s4478_s14 + $0x70] sm:$0xff]  }
 0xd0a   : > { %2627 = vmatpush1.bf16.msra.mxu1 %v3564_v53 }
 0xd0b   : > { %2628 = vmatprep.subr.bf16.mxu1 %v3572_v55 }
 0xd0d   : > { %v3469_v28 = vpop.permute.xlu0 %3468 }
 0xd0e   : > { %v3471_v31 = vunpack.i.h.bf16 %v3469_v28  ;;  %v3470_v32 = vunpack.i.l.bf16 %v3469_v28  ;;  %2629 = vmatpush1.bf16.msra.mxu1 %v3570_v57  ;;  %v3600_v28 = vld [vmem:[%s4478_s14 + $0x78] sm:$0xff]  }
 0xd0f   : > { %2630 = vmatprep.subr.bf16.mxu1 %v3578_v60 }
 0xd10   : > { %v2297_v35 = vsel %vm1397_vm11, %v2295_v33, %v3471_v31  ;;  %v2296_v37 = vsel %vm1397_vm11, %v2294_v34, %v3470_v32  ;;  %v3603_v31 = vld [vmem:[%s4478_s14 + $0x30] sm:$0xff]   ;;  %v3604_v32 = vld [vmem:[%s4478_s14 + $0x68] sm:$0xff]   ;;  %v3606_v34 = vld [vmem:[%s4478_s14 + $0x60] sm:$0xff]  }
 0xd11   : > { %v2298_v38 = vpack.c.bf16 %v2297_v35, %v2296_v37  ;;  %v3605_v33 = vld [vmem:[%s4478_s14 + $0x28] sm:$0xff]   ;;  %v3607_v35 = vld [vmem:[%s4478_s14 + $0x20] sm:$0xff]   ;;  %v3608_v37 = vld [vmem:[%s4478_s14 + $0x58] sm:$0xff]  }
 0xd12   : > { %2631 = vmatpush1.bf16.msra.mxu1 %v3576_v63 }
 0xd13   : > { %3424 = vmatmul.mubr.bf16.vlgmr.msra.gmra.mxu0 %v2298_v38  ;;  %2632 = vmatprep.subr.bf16.mxu1 %v3584_v2  ;;  %v3609_v38 = vld [vmem:[%s4478_s14 + $0x18] sm:$0xff]  }
 0xd14   : > { %2697 = vmatprep.mubr.bf16.mxu0 %v3711_v26  ;;  %2666 = vmatpush1.bf16.msra.mxu0 %v3555_v39  ;;  %v3612_v39 = vld [vmem:[%s4478_s14 + $0x48] sm:$0xff]  }
 0xd16   : > { %2633 = vmatpush1.bf16.msra.mxu1 %v3582_v3 }
 0xd17   : > { %2634 = vmatprep.subr.bf16.mxu1 %v3590_v5 }
 0xd1a   : > { %2635 = vmatpush1.bf16.msra.mxu1 %v3588_v7 }
 0xd1b   : > { %2636 = vmatprep.subr.bf16.mxu1 %v3596_v10 }
 0xd1e   : > { %2637 = vmatpush1.bf16.msra.mxu1 %v3594_v62 }
 0xd1f   : > { %3229 = vmatprep.subr.bf16.mxu1 %v3600_v28 }
 0xdd3   : > { %v2397_v26 = vpop.f32.mrf.mxu0 }
 0xdd4   : > { %v4309_v42 = vadd.f32 %v2397_v26, %v4107_v9  ;;  %v3563_v9 = vld [vmem:[%s4477_s13 + $0xcc] ss:$16 sps:$4 sm:$0xff]   ;;  %v3614_v26 = vld [vmem:[%s4478_s14 + $0x40] sm:$0xff]  }
 0xdd5   : > { %v3425_v43 = vpop.f32.mrf.mxu0  ;;  %2667 = vmatprep.subr.bf16.mxu0 %v3563_v9 }
 0xdd6   : > { %v2407_v44 = vmul.f32 %v4309_v42, %v4309_v42  ;;  %v3615_v43 = vld [vmem:[%s4478_s14] sm:$0xff]  }
 0xdd7   : > { %v2400_v45 = vpop.f32.mrf.mxu0 }
 0xdd8   : > { %v4314_v59 = vadd.f32 %v2400_v45, %v4112_v14  ;;  %2409 = vadd.xlane.f32.xlu1 %v2407_v44  ;;  %v3561_v14 = vld [vmem:[%s4477_s13 + $0xc8] ss:$16 sps:$4 sm:$0xff]  }
 0xdd9   : > { %v3426_v46 = vpop.f32.mrf.mxu0  ;;  %2668 = vmatpush1.bf16.msra.mxu0 %v3561_v14 }
 0xdda   : > { %v2408_v47 = vmul.f32 %v4314_v59, %v4314_v59  ;;  %2669 = vmatprep.subr.bf16.mxu0 %v3569_v52 }
 0xddc   : > { %2411 = vadd.xlane.f32.xlu0 %v2408_v47 }
 0xddd   : > { %2670 = vmatpush1.bf16.msra.mxu0 %v3567_v54 }
 0xdde   : > { %2671 = vmatprep.subr.bf16.mxu0 %v3575_v56 }
 0xde1   : > { %2672 = vmatpush1.bf16.msra.mxu0 %v3573_v58 }
 0xde2   : > { %2673 = vmatprep.subr.bf16.mxu0 %v3581_v61 }
 0xde5   : > { %2674 = vmatpush1.bf16.msra.mxu0 %v3579_v0 }
 0xde6   : > { %2675 = vmatprep.subr.bf16.mxu0 %v3587_v50 }
 0xde9   : > { %2676 = vmatpush1.bf16.msra.mxu0 %v3585_v4 }
 0xdea   : > { %2677 = vmatprep.subr.bf16.mxu0 %v3593_v6 }
 0xded   : > { %2678 = vmatpush1.bf16.msra.mxu0 %v3591_v8 }
 0xdee   : > { %2679 = vmatprep.subr.bf16.mxu0 %v3599_v11 }
 0xdf1   : > { %2680 = vmatpush1.bf16.msra.mxu0 %v3597_v12 }
 0xe61   : > { %v2410_v13 = vpop.xlane.xlu1 %2409 }
 0xe62   : > { %v2413_v15 = vmul.f32 0.0078125, %v2410_v13 }
 0xe64   : > { %v2415_v16 = vadd.f32 1e-06, %v2413_v15 }
 0xe65   : > { %v2412_v17 = vpop.xlane.xlu0 %2411 }
 0xe66   : > { %3688 = vrsqrt.f32 %v2415_v16  ;;  %v2414_v18 = vmul.f32 0.0078125, %v2412_v17 }
 0xe68   : > { %v2416_v19 = vadd.f32 1e-06, %v2414_v18 }
 0xe6a   : > { %3690 = vrsqrt.f32 %v2416_v19 }
 0xe73   : > { %v3689_v20 = vpop.eup %3688 }
 0xe74   : > { %v2419_v21 = vmul.f32 %v3689_v20, %v4309_v42 }
 0xe76   : > { %v2427_v24 = vmul.f32 %v3107_v23, %v2419_v21 }
 0xe77   : > { %v3691_v22 = vpop.eup %3690 }
 0xe78   : > { %v2420_v1 = vmul.f32 %v3691_v22, %v4314_v59 }
 0xe7a   : > { %v2428_v25 = vmul.f32 %v3107_v23, %v2420_v1 }
 0xe7c   : > { %v2429_v27 = vpack.c.bf16 %v2428_v25, %v2427_v24 }
 0xe7e   : > { %2655 = vmatmul.mubr.bf16.vlgmr.msra.gmra.mxu1 %v2429_v27  ;;  %2698 = vmatmul.mubr.bf16.vlgmr.msra.gmra.mxu0 %v2429_v27 }
 0xe7f   : > { %3230 = vmatpush3.bf16.msra.mxu1 %v3601_v29 }
 0xe80   : > { %3231 = vmatprep.subr.bf16.mxu1 %v3602_v30 }
 0xe83   : > { %3232 = vmatpush3.bf16.msra.mxu1 %v3603_v31 }
 0xe84   : > { %3233 = vmatprep.subr.bf16.mxu1 %v3604_v32 }
 0xe87   : > { %3234 = vmatpush3.bf16.msra.mxu1 %v3605_v33 }
 0xe88   : > { %3235 = vmatprep.subr.bf16.mxu1 %v3606_v34 }
 0xe8b   : > { %3236 = vmatpush3.bf16.msra.mxu1 %v3607_v35 }
 0xe8c   : > { %3237 = vmatprep.subr.bf16.mxu1 %v3608_v37 }
 0xe8f   : > { %3238 = vmatpush3.bf16.msra.mxu1 %v3609_v38 }
 0xe90   : > { %3239 = vmatprep.subr.bf16.mxu1 %v3610_v40 }
 0xe93   : > { %3240 = vmatpush3.bf16.msra.mxu1 %v3611_v36 }
 0xe94   : > { %3241 = vmatprep.subr.bf16.mxu1 %v3612_v39 }
 0xe97   : > { %3242 = vmatpush3.bf16.msra.mxu1 %v3613_v41 }
 0xe98   : > { %3243 = vmatprep.subr.bf16.mxu1 %v3614_v26 }
 0xe9b   : > { %3244 = vmatpush3.bf16.msra.mxu1 %v3615_v43 }
 0xf3e   : > { %v2656_v44 = vpop.f32.mrf.mxu1  ;;  %v2699_v5 = vpop.f32.mrf.mxu0 }
 0xf3f   : > { %v2712_v45 = vmul.f32 0.044715, %v2656_v44  ;;  %v2708_v17 = vmul.f32 0.5, %v2656_v44 }
 0xf40   : > { %v2658_v46 = vpop.f32.mrf.mxu1  ;;  %v2701_v8 = vpop.f32.mrf.mxu0 }
 0xf41   : > { %v2716_v47 = vmul.f32 %v2712_v45, %v2656_v44  ;;  %v2713_v48 = vmul.f32 0.044715, %v2658_v46  ;;  %v2709_v12 = vmul.f32 0.5, %v2658_v46 }
 0xf42   : > { %v2660_v9 = vpop.f32.mrf.mxu1  ;;  %v2703_v18 = vpop.f32.mrf.mxu0 }
 0xf43   : > { %v2720_v49 = vmul.f32 %v2716_v47, %v2656_v44  ;;  %v2717_v14 = vmul.f32 %v2713_v48, %v2658_v46  ;;  %v2714_v51 = vmul.f32 0.044715, %v2660_v9  ;;  %v2710_v13 = vmul.f32 0.5, %v2660_v9 }
 0xf44   : > { %v2662_v52 = vpop.f32.mrf.mxu1  ;;  %v2705_v25 = vpop.f32.mrf.mxu0 }
 0xf45   : > { %v2724_v53 = vadd.f32 %v2720_v49, %v2656_v44  ;;  %v2721_v54 = vmul.f32 %v2717_v14, %v2658_v46  ;;  %v2718_v55 = vmul.f32 %v2714_v51, %v2660_v9  ;;  %v2715_v56 = vmul.f32 0.044715, %v2662_v52 }
 0xf46   : > { %v2711_v21 = vmul.f32 0.5, %v2662_v52 }
 0xf47   : > { %v2728_v57 = vmul.f32 0.7978846, %v2724_v53  ;;  %v2725_v58 = vadd.f32 %v2721_v54, %v2658_v46  ;;  %v2722_v60 = vmul.f32 %v2718_v55, %v2660_v9  ;;  %v2719_v61 = vmul.f32 %v2715_v56, %v2662_v52 }
 0xf49   : > { %v2729_v63 = vmul.f32 0.7978846, %v2725_v58  ;;  %v2726_v0 = vadd.f32 %v2722_v60, %v2660_v9  ;;  %v2723_v2 = vmul.f32 %v2719_v61, %v2662_v52  ;;  %3692 = vtanh.f32 %v2728_v57 }
 0xf4b   : > { %3694 = vtanh.f32 %v2729_v63  ;;  %v2730_v50 = vmul.f32 0.7978846, %v2726_v0  ;;  %v2727_v3 = vadd.f32 %v2723_v2, %v2662_v52 }
 0xf4d   : > { %3696 = vtanh.f32 %v2730_v50  ;;  %v2731_v4 = vmul.f32 0.7978846, %v2727_v3 }
 0xf4f   : > { %3698 = vtanh.f32 %v2731_v4 }
 0xf56   : > { %v3693_v6 = vpop.eup %3692 }
 0xf57   : > { %v2736_v62 = vadd.f32 1.0, %v3693_v6 }
 0xf58   : > { %v3695_v7 = vpop.eup %3694 }
 0xf59   : > { %v2737_v10 = vadd.f32 1.0, %v3695_v7  ;;  %v2740_v23 = vmul.f32 %v2736_v62, %v2708_v17 }
 0xf5a   : > { %v3697_v11 = vpop.eup %3696 }
 0xf5b   : > { %v2738_v15 = vadd.f32 1.0, %v3697_v11  ;;  %v2741_v19 = vmul.f32 %v2737_v10, %v2709_v12  ;;  %v2744_v29 = vmul.f32 %v2740_v23, %v2699_v5 }
 0xf5c   : > { %v3699_v16 = vpop.eup %3698 }
 0xf5d   : > { %v2742_v20 = vmul.f32 %v2738_v15, %v2710_v13  ;;  %v2739_v22 = vadd.f32 1.0, %v3699_v16  ;;  %v2745_v27 = vmul.f32 %v2741_v19, %v2701_v8 }
 0xf5f   : > { %v2743_v1 = vmul.f32 %v2739_v22, %v2711_v21  ;;  %v2746_v24 = vmul.f32 %v2742_v20, %v2703_v18 }
 0xf61   : > { %v2747_v28 = vmul.f32 %v2743_v1, %v2705_v25  ;;  %v2748_v31 = vpack.c.bf16 %v2746_v24, %v2744_v29 }
 0xf63   : > { %v2749_v30 = vpack.c.bf16 %v2747_v28, %v2745_v27 }
 0xf65   : > { %2910 = vmatprep.mubr.bf16.mxu1 %v2749_v30 }
 0xf66   : > { %2911 = vmatmul.mubr.bf16.vlgmr.msra.gmra.mxu1 %v2748_v31 }
0x1026   : > { %v3245_v32 = vpop.f32.mrf.mxu1 }
0x1028   : > { %v3246_v33 = vpop.f32.mrf.mxu1 }
0x1029   : > { %v3247_v34 = vadd.f32 %v3246_v33, %v3245_v32 }
0x102a   : > { %v3248_v35 = vpop.f32.mrf.mxu1 }
0x102b   : > { %v2919_v37 = vadd.f32 %v3247_v34, %v4309_v42 }
0x102c   : > { %v3249_v38 = vpop.f32.mrf.mxu1 }
0x102d   : > { %2921 = vst [vmem:[%s569_s30] sm:$0xff] %v2919_v37  ;;  %v3250_v40 = vadd.f32 %v3249_v38, %v3248_v35 }
0x102f   : > { %v2920_v36 = vadd.f32 %v3250_v40, %v4314_v59 }
0x1031   : > { %2922 = vst [vmem:[%s569_s30 + $0x8] sm:$0xff] %v2920_v36 }
0x1032 PF: > { %s26_s21 = sadd.s32 1, %s3708_s21  }
0x1033   : > { %p23_p4 = scmp.ge.s32.totalorder %s26_s21, 4  }
0x1035   :  { %25 = sbr.rel (!%p23_p4) target bundleno = 2 (0x2), region = 126 }

</bundles_post_ra>
